<compile_context>
chip_gen: v7x
topology: tpu7x:2x2x1
jax: 0.10.0
libtpu: 0.0.40
codegen_flags: <defaults>
</compile_context>

<pallas_src>
import functools
import math

import jax
import jax.numpy as jnp
from jax.experimental import pallas as pl
from jax.experimental.pallas import tpu as pltpu

NEG_INF = float("-inf")
BANK_W = 512          # lane width of the consolidated bias/scale bank


# ---------------------------------------------------------------------------
# The single fused kernel: stem -> Res1 -> Res2 -> Res3 -> FC head
# ---------------------------------------------------------------------------

def _ecg_fused_kernel(x_ref, w_stem_ref,
                      w1a_ref, w2a_ref, wsa_ref,
                      w1b_ref, w2b_ref, wsb_ref,
                      w1c_ref, w2c_ref, wsc_ref,
                      wfc1_ref, wfc2_ref, bank_ref,
                      out_ref, feat_ref,
                      *, batch, length, pools, widths):
    m = batch * length

    # Hoisted row-position masks: one iota + two compares for the whole kernel.
    pos = jax.lax.broadcasted_iota(jnp.int32, (m, 1), 0) % length
    has_prev = pos >= 1                   # row t-1 exists inside this batch element
    has_next = pos <= length - 2          # row t+1 exists inside this batch element

    def mm(a, w):                         # bf16 MXU matmul, f32 accumulation
        return jnp.dot(a.astype(jnp.bfloat16), w,
                       preferred_element_type=jnp.float32)

    def shift(x, offset, fill):           # x[t+offset]; 'same' borders per batch elem
        rolled = pltpu.roll(x, (-offset) % m, axis=0)
        return jnp.where(has_prev if offset < 0 else has_next, rolled, fill)

    def conv3(x, w_ref, bias, relu):      # k=3 'same' conv (+ bias, optional ReLU)
        acc = mm(x, w_ref[1])
        acc = acc + mm(shift(x, -1, 0.0), w_ref[0])
        acc = acc + mm(shift(x, 1, 0.0), w_ref[2])
        acc = acc + bias
        return jnp.maximum(acc, 0.0) if relu else acc

    def maxpool3(x):                      # MaxPool1d(kernel=3, stride=1, padding=1)
        return jnp.maximum(jnp.maximum(shift(x, -1, NEG_INF), x),
                           shift(x, 1, NEG_INF))

    def brow(r, w):                       # (1, w) row of the consolidated bias bank
        return bank_ref[r:r + 1, :w]

    # --- CNN stem: im2col'd k=16 conv (+ folded eval-BN) + ReLU: one matmul --
    act = jnp.maximum(mm(x_ref[...], w_stem_ref[...]) + brow(0, 64), 0.0)

    # --- Residual blocks (Dropout == identity at inference) -----------------
    low, up = act, act
    blocks = ((w1a_ref, w2a_ref, wsa_ref),
              (w1b_ref, w2b_ref, wsb_ref),
              (w1c_ref, w2c_ref, wsc_ref))
    for i, ((w1, w2, wsk), pool, cout) in enumerate(zip(blocks, pools, widths)):
        base = 1 + 5 * i
        h = conv3(low, w1, brow(base, 64), relu=True)          # conv1 + BN1 + ReLU
        direct = conv3(h, w2, brow(base + 1, cout), relu=False)
        skip = maxpool3(up) if pool else up                    # skip path
        skip = mm(skip, wsk[0]) + brow(base + 2, cout)         # 1x1 skip conv
        upper = direct + skip
        low = jnp.maximum(upper * brow(base + 3, cout)
                          + brow(base + 4, cout), 0.0)         # BN2(eval) + ReLU
        up = upper                                             # stays in registers

    # --- FC head: one matmul over the flattened features --------------------
    # torch flattens (C, L) channel-major; wfc1 is repacked so our t-major /
    # c-minor flatten is equivalent.  The flatten itself is done with explicit
    # static row stores into a VMEM scratch (guaranteed Mosaic lowering).
    c3 = low.shape[1]
    for b in range(batch):
        for t in range(length):
            r = b * length + t
            feat_ref[b:b + 1, t * c3:(t + 1) * c3] = low[r:r + 1, :]
    fc_row = 1 + 5 * len(blocks)
    hdim = wfc1_ref.shape[1]
    hid = jnp.maximum(mm(feat_ref[...], wfc1_ref[...]) + brow(fc_row, hdim), 0.0)
    out_dim = out_ref.shape[-1]
    out_ref[...] = mm(hid, wfc2_ref[...]) + brow(fc_row + 1, out_dim)


# ---------------------------------------------------------------------------
# One-time parameter packing: fold eval-BN, channels-last, bf16, zero padding
# ---------------------------------------------------------------------------

def _bn_fold(bn, eps=1e-5):
    gamma, beta, mean, var = bn
    scale = gamma / jnp.sqrt(var + eps)
    shift = beta - mean * scale
    return scale, shift


def _fold_conv(w, b, scale=None, shift=None, pad_in=0, pad_out=0):
    """torch Conv1d weight (C_out, C_in, K) -> bf16 (K, C_in+pad_in, C_out+pad_out).

    Eval-mode BatchNorm folded into weight/bias when given; zero channel
    padding keeps every matmul operand lane-dense and is numerically exact.
    """
    if scale is not None:
        w = w * scale[:, None, None]
        b = b * scale + shift
    w = jnp.transpose(w, (2, 1, 0))
    if pad_in:
        w = jnp.pad(w, ((0, 0), (0, pad_in), (0, 0)))
    if pad_out:
        w = jnp.pad(w, ((0, 0), (0, 0), (0, pad_out)))
        b = jnp.pad(b, (0, pad_out))
    return w.astype(jnp.bfloat16), b


def _bank_row(vec):
    vec = vec.reshape(-1)
    return jnp.pad(vec, (0, BANK_W - vec.shape[0]))


def pack_params(params, length):
    weights, rows = [], []

    cnn = params['cnn']
    s, t = _bn_fold(cnn['bn'])
    w_stem, b_stem = _fold_conv(cnn['w'], cnn['b'], s, t)         # (16, C_in, 64)
    k, c_in, c_out = w_stem.shape
    weights.append(w_stem.reshape(k * c_in, c_out))               # stem im2col layout
    rows.append(_bank_row(b_stem))

    # Zero-pad the lane-odd 196 channel count to 256 at the res2/res3 boundary.
    pad_to = {'res1': (0, 0), 'res2': (0, 60), 'res3': (60, 0)}
    for name in ('res1', 'res2', 'res3'):
        r = params[name]
        pin, pout = pad_to[name]
        s1, t1 = _bn_fold(r['bn1'])
        w1, b1 = _fold_conv(r['w1'], r['b1'], s1, t1, pad_in=pin)
        w2, b2 = _fold_conv(r['w2'], r['b2'], pad_out=pout)
        wsk, bsk = _fold_conv(r['ws'], r['bs'], pad_in=pin, pad_out=pout)
        s2, t2 = _bn_fold(r['bn2'])
        if pout:
            s2 = jnp.pad(s2, (0, pout))
            t2 = jnp.pad(t2, (0, pout))
        weights += [w1, w2, wsk]
        rows += [_bank_row(b1), _bank_row(b2), _bank_row(bsk),
                 _bank_row(s2), _bank_row(t2)]

    fc = params['fc']
    hdim, feat = fc['w1'].shape
    c3 = feat // length
    # wflat[t*C3 + c, h] = w1[h, c*L + t]  (matches the kernel's t-major flatten)
    w1r = jnp.transpose(fc['w1'].reshape(hdim, c3, length), (2, 1, 0))
    w1flat = w1r.reshape(length * c3, hdim)
    hpad = 128 - hdim                                             # 100 -> 128 hidden
    w1flat = jnp.pad(w1flat, ((0, 0), (0, hpad))).astype(jnp.bfloat16)
    w2 = jnp.pad(fc['w2'].T, ((0, hpad), (0, 0))).astype(jnp.bfloat16)
    weights += [w1flat, w2]
    rows += [_bank_row(jnp.pad(fc['b1'], (0, hpad))), _bank_row(fc['b2'])]

    bank = jnp.stack(rows, axis=0)                                # (18, 512) f32
    return weights + [bank]


# ---------------------------------------------------------------------------
# Forward wrapper: one fused pallas_call, single grid step, batch folded in M
# ---------------------------------------------------------------------------

def ecg_forward(packed, x):
    """x: (B, C_in, L) float32 in PyTorch NCL layout."""
    B, C_in, L = x.shape
    K = 16
    pad_l, pad_r = (K - 1) // 2, K - 1 - (K - 1) // 2

    # Wrapper-side layout plumbing: channels-last + im2col of the k=16 stem so
    # the in-kernel stem is one lane-dense matmul; batch folded into M.
    # TODO(synk): for long ECG records build the stem in-kernel as tap matmuls
    # (or tile L on a grid axis) instead of materializing the im2col slab.
    x_lc = jnp.transpose(x, (0, 2, 1))                            # (B, L, C_in)
    xp = jnp.pad(x_lc, ((0, 0), (pad_l, pad_r), (0, 0)))
    x_cols = jnp.concatenate([xp[:, j:j + L, :] for j in range(K)], axis=2)
    x_cols = x_cols.reshape(B * L, K * C_in)                      # (B*L, K*C_in)

    # ResBlk ctor: MaxPool in the skip path iff n_samples_in // n_samples_out > 1
    # ('same' convs keep the length, so Res1's n_samples_in == L for this model).
    pools = (L // 512 > 1, 512 // 256 > 1, 256 // 16 > 1)
    widths = (128, 256, 320)                                      # padded block outputs
    c3 = widths[-1]

    weights, bank = packed[:-1], packed[-1]
    out_dim = weights[-1].shape[-1]

    def const_spec(arr):
        nd = arr.ndim
        return pl.BlockSpec(arr.shape, lambda i, _nd=nd: (0,) * _nd)

    kernel = functools.partial(_ecg_fused_kernel, batch=B, length=L,
                               pools=pools, widths=widths)
    out = pl.pallas_call(
        kernel,
        out_shape=jax.ShapeDtypeStruct((B, out_dim), jnp.float32),
        grid=(1,),
        in_specs=[pl.BlockSpec((B * L, K * C_in), lambda i: (0, 0))]
                 + [const_spec(a) for a in weights]
                 + [const_spec(bank)],
        out_specs=pl.BlockSpec((B, out_dim), lambda i: (0, 0)),
        scratch_shapes=[pltpu.VMEM((B, L * c3), jnp.float32)],    # FC flatten scratch
        compiler_params=pltpu.CompilerParams(
            dimension_semantics=("arbitrary",),
            vmem_limit_bytes=32 * 1024 * 1024),
    )(x_cols, *weights, bank)
    return jnp.squeeze(out)                                       # == torch.squeeze


# ---------------------------------------------------------------------------
# Deterministic parameter initialization (fresh-module style)
# ---------------------------------------------------------------------------

def _conv_init(key, c_out, c_in, k):
    bound = 1.0 / math.sqrt(c_in * k)
    kw, kb = jax.random.split(key)
    w = jax.random.uniform(kw, (c_out, c_in, k), jnp.float32, -bound, bound)
    b = jax.random.uniform(kb, (c_out,), jnp.float32, -bound, bound)
    return w, b


def _linear_init(key, c_out, c_in):
    bound = 1.0 / math.sqrt(c_in)
    kw, kb = jax.random.split(key)
    w = jax.random.uniform(kw, (c_out, c_in), jnp.float32, -bound, bound)
    b = jax.random.uniform(kb, (c_out,), jnp.float32, -bound, bound)
    return w, b


def _bn_init(key, c):
    k1, k2, k3, k4 = jax.random.split(key, 4)
    gamma = 1.0 + 0.1 * jax.random.normal(k1, (c,), jnp.float32)
    beta = 0.1 * jax.random.normal(k2, (c,), jnp.float32)
    mean = 0.1 * jax.random.normal(k3, (c,), jnp.float32)
    var = 1.0 + 0.1 * jnp.abs(jax.random.normal(k4, (c,), jnp.float32))
    return (gamma, beta, mean, var)


def init_params(key, in_channels, length, task='classification'):
    keys = iter(jax.random.split(key, 32))
    p = {}
    w, b = _conv_init(next(keys), 64, in_channels, 16)
    p['cnn'] = {'w': w, 'b': b, 'bn': _bn_init(next(keys), 64)}

    def res_params(in_c, out_c):
        w1, b1 = _conv_init(next(keys), 64, in_c, 3)
        bn1 = _bn_init(next(keys), 64)
        w2, b2 = _conv_init(next(keys), out_c, 64, 3)
        ws, bs = _conv_init(next(keys), out_c, in_c, 1)
        bn2 = _bn_init(next(keys), out_c)
        return {'w1': w1, 'b1': b1, 'bn1': bn1,
                'w2': w2, 'b2': b2,
                'ws': ws, 'bs': bs,
                'bn2': bn2}

    p['res1'] = res_params(64, 128)
    p['res2'] = res_params(128, 196)
    p['res3'] = res_params(196, 320)

    fc_in = 320 * length
    out_dim = 6 if task == 'classification' else 1
    w1, b1 = _linear_init(next(keys), 100, fc_in)
    w2, b2 = _linear_init(next(keys), out_dim, 100)
    p['fc'] = {'w1': w1, 'b1': b1, 'w2': w2, 'b2': b2}
    return p


# ---------------------------------------------------------------------------

if __name__ == "__main__":
    key = jax.random.PRNGKey(0)
    B, C, L = 2, 8, 16                       # input_shape = (2, 8, 16), NCL
    kx, kp = jax.random.split(key)
    x = jax.random.normal(kx, (B, C, L), jnp.float32)
    params = init_params(kp, C, L, task='classification')

    packed = pack_params(params, L)          # one-time repack / BN fold / bf16 cast
    fwd = jax.jit(ecg_forward)
    out = jax.block_until_ready(fwd(packed, x))
    assert out.shape == (B, 6), out.shape
    assert bool(jnp.all(jnp.isfinite(out)))
    print("KERNEL_OK")
</pallas_src>

<mosaic_0001>
module attributes {stable_mosaic.version = 11 : i64} {
  func.func @_ecg_fused_kernel(%arg0: i32, %arg1: memref<32x128xf32, #tpu.memory_space<vmem>>, %arg2: memref<128x64xbf16, #tpu.memory_space<vmem>>, %arg3: memref<3x64x64xbf16, #tpu.memory_space<vmem>>, %arg4: memref<3x64x128xbf16, #tpu.memory_space<vmem>>, %arg5: memref<1x64x128xbf16, #tpu.memory_space<vmem>>, %arg6: memref<3x128x64xbf16, #tpu.memory_space<vmem>>, %arg7: memref<3x64x256xbf16, #tpu.memory_space<vmem>>, %arg8: memref<1x128x256xbf16, #tpu.memory_space<vmem>>, %arg9: memref<3x256x64xbf16, #tpu.memory_space<vmem>>, %arg10: memref<3x64x320xbf16, #tpu.memory_space<vmem>>, %arg11: memref<1x256x320xbf16, #tpu.memory_space<vmem>>, %arg12: memref<5120x128xbf16, #tpu.memory_space<vmem>>, %arg13: memref<128x6xbf16, #tpu.memory_space<vmem>>, %arg14: memref<18x512xf32, #tpu.memory_space<vmem>>, %arg15: memref<2x6xf32, #tpu.memory_space<vmem>>, %arg16: memref<2x5120xf32, #tpu.memory_space<vmem>>) attributes {dimension_semantics = [#tpu.dimension_semantics<arbitrary>], iteration_bounds = array<i64: 1>, scalar_prefetch = 0 : i64, scratch_operands = 1 : i64, tpu.core_type = #tpu.core_type<tc>, window_params = [{pipeline_mode = #tpu.pipeline_mode<synchronous>, transform_indices = @transform_0, window_bounds = array<i64: 32, 128>}, {pipeline_mode = #tpu.pipeline_mode<synchronous>, transform_indices = @transform_1, window_bounds = array<i64: 128, 64>}, {pipeline_mode = #tpu.pipeline_mode<synchronous>, transform_indices = @transform_2, window_bounds = array<i64: 3, 64, 64>}, {pipeline_mode = #tpu.pipeline_mode<synchronous>, transform_indices = @transform_3, window_bounds = array<i64: 3, 64, 128>}, {pipeline_mode = #tpu.pipeline_mode<synchronous>, transform_indices = @transform_4, window_bounds = array<i64: 1, 64, 128>}, {pipeline_mode = #tpu.pipeline_mode<synchronous>, transform_indices = @transform_5, window_bounds = array<i64: 3, 128, 64>}, {pipeline_mode = #tpu.pipeline_mode<synchronous>, transform_indices = @transform_6, window_bounds = array<i64: 3, 64, 256>}, {pipeline_mode = #tpu.pipeline_mode<synchronous>, transform_indices = @transform_7, window_bounds = array<i64: 1, 128, 256>}, {pipeline_mode = #tpu.pipeline_mode<synchronous>, transform_indices = @transform_8, window_bounds = array<i64: 3, 256, 64>}, {pipeline_mode = #tpu.pipeline_mode<synchronous>, transform_indices = @transform_9, window_bounds = array<i64: 3, 64, 320>}, {pipeline_mode = #tpu.pipeline_mode<synchronous>, transform_indices = @transform_10, window_bounds = array<i64: 1, 256, 320>}, {pipeline_mode = #tpu.pipeline_mode<synchronous>, transform_indices = @transform_11, window_bounds = array<i64: 5120, 128>}, {pipeline_mode = #tpu.pipeline_mode<synchronous>, transform_indices = @transform_12, window_bounds = array<i64: 128, 6>}, {pipeline_mode = #tpu.pipeline_mode<synchronous>, transform_indices = @transform_13, window_bounds = array<i64: 18, 512>}, {pipeline_mode = #tpu.pipeline_mode<synchronous>, transform_indices = @transform_14, window_bounds = array<i64: 2, 6>}]} {
    %0 = tpu.iota {dimensions = array<i32: 0>} : vector<32x1xi32>
    %c16_i32 = arith.constant 16 : i32
    %c0_i32 = arith.constant 0 : i32
    %1 = arith.cmpi eq, %c16_i32, %c0_i32 : i32
    %c1_i32 = arith.constant 1 : i32
    %2 = arith.select %1, %c1_i32, %c16_i32 : i32
    %3 = vector.broadcast %2 : i32 to vector<32x1xi32>
    %4 = arith.remsi %0, %3 : vector<32x1xi32>
    %c0_i32_0 = arith.constant 0 : i32
    %5 = vector.broadcast %c0_i32_0 : i32 to vector<32x1xi32>
    %6 = arith.cmpi ne, %4, %5 : vector<32x1xi32>
    %c0_i32_1 = arith.constant 0 : i32
    %7 = vector.broadcast %c0_i32_1 : i32 to vector<32x1xi32>
    %8 = arith.cmpi slt, %4, %7 : vector<32x1xi32>
    %c0_i32_2 = arith.constant 0 : i32
    %9 = arith.cmpi slt, %2, %c0_i32_2 : i32
    %10 = vector.broadcast %9 : i1 to vector<32x1xi1>
    %11 = vector.broadcast %10 : vector<32x1xi1> to vector<32x1xi1>
    %12 = arith.xori %8, %11 : vector<32x1xi1>
    %13 = arith.andi %12, %6 : vector<32x1xi1>
    %14 = vector.broadcast %2 : i32 to vector<32x1xi32>
    %15 = arith.addi %4, %14 : vector<32x1xi32>
    %16 = arith.select %13, %15, %4 : vector<32x1xi1>, vector<32x1xi32>
    %c1_i32_3 = arith.constant 1 : i32
    %17 = vector.broadcast %c1_i32_3 : i32 to vector<32x1xi32>
    %18 = arith.cmpi sge, %16, %17 : vector<32x1xi32>
    %c14_i32 = arith.constant 14 : i32
    %19 = vector.broadcast %c14_i32 : i32 to vector<32x1xi32>
    %20 = arith.cmpi sle, %16, %19 : vector<32x1xi32>
    %c0 = arith.constant 0 : index
    %c0_4 = arith.constant 0 : index
    %21 = vector.load %arg1[%c0, %c0_4] : memref<32x128xf32, #tpu.memory_space<vmem>>, vector<32x128xf32>
    %c0_5 = arith.constant 0 : index
    %c0_6 = arith.constant 0 : index
    %22 = vector.load %arg2[%c0_5, %c0_6] : memref<128x64xbf16, #tpu.memory_space<vmem>>, vector<128x64xbf16>
    %23 = arith.truncf %21 : vector<32x128xf32> to vector<32x128xbf16>
    %cst = arith.constant dense<0.000000e+00> : vector<32x64xf32>
    %24 = tpu.matmul %23, %22, %cst {dimension_numbers = #tpu.dot_dimension_numbers<[1], [0], [0], [1], [0, 0, 1, 1], [], []>} : vector<32x128xbf16>, vector<128x64xbf16>, vector<32x64xf32> -> vector<32x64xf32>
    %c0_7 = arith.constant 0 : index
    %c0_8 = arith.constant 0 : index
    %25 = vector.load %arg14[%c0_7, %c0_8] : memref<18x512xf32, #tpu.memory_space<vmem>>, vector<1x64xf32>
    %26 = vector.broadcast %25 : vector<1x64xf32> to vector<32x64xf32>
    %27 = arith.addf %24, %26 : vector<32x64xf32>
    %cst_9 = arith.constant 0.000000e+00 : f32
    %28 = vector.broadcast %cst_9 : f32 to vector<32x64xf32>
    %29 = arith.maximumf %27, %28 : vector<32x64xf32>
    %c1 = arith.constant 1 : index
    %c0_10 = arith.constant 0 : index
    %30 = vector.load %arg14[%c1, %c0_10] : memref<18x512xf32, #tpu.memory_space<vmem>>, vector<1x64xf32>
    %c1_11 = arith.constant 1 : index
    %c0_12 = arith.constant 0 : index
    %c0_13 = arith.constant 0 : index
    %31 = vector.load %arg3[%c1_11, %c0_12, %c0_13] : memref<3x64x64xbf16, #tpu.memory_space<vmem>>, vector<1x64x64xbf16>
    %32 = vector.shape_cast %31 : vector<1x64x64xbf16> to vector<64x64xbf16>
    %33 = arith.truncf %29 : vector<32x64xf32> to vector<32x64xbf16>
    %cst_14 = arith.constant dense<0.000000e+00> : vector<32x64xf32>
    %34 = tpu.matmul %33, %32, %cst_14 {dimension_numbers = #tpu.dot_dimension_numbers<[1], [0], [0], [1], [0, 0, 1, 1], [], []>} : vector<32x64xbf16>, vector<64x64xbf16>, vector<32x64xf32> -> vector<32x64xf32>
    %c1_i32_15 = arith.constant 1 : i32
    %35 = tpu.dynamic_rotate %29 by %c1_i32_15 dim 0 : vector<32x64xf32>, i32 -> vector<32x64xf32>
    %cst_16 = arith.constant 0.000000e+00 : f32
    %36 = vector.shape_cast %18 : vector<32x1xi1> to vector<32x1xi1>
    %37 = vector.broadcast %36 : vector<32x1xi1> to vector<32x64xi1>
    %38 = vector.broadcast %cst_16 : f32 to vector<32x64xf32>
    %39 = arith.select %37, %35, %38 : vector<32x64xi1>, vector<32x64xf32>
    %c0_17 = arith.constant 0 : index
    %c0_18 = arith.constant 0 : index
    %c0_19 = arith.constant 0 : index
    %40 = vector.load %arg3[%c0_17, %c0_18, %c0_19] : memref<3x64x64xbf16, #tpu.memory_space<vmem>>, vector<1x64x64xbf16>
    %41 = vector.shape_cast %40 : vector<1x64x64xbf16> to vector<64x64xbf16>
    %42 = arith.truncf %39 : vector<32x64xf32> to vector<32x64xbf16>
    %cst_20 = arith.constant dense<0.000000e+00> : vector<32x64xf32>
    %43 = tpu.matmul %42, %41, %cst_20 {dimension_numbers = #tpu.dot_dimension_numbers<[1], [0], [0], [1], [0, 0, 1, 1], [], []>} : vector<32x64xbf16>, vector<64x64xbf16>, vector<32x64xf32> -> vector<32x64xf32>
    %44 = arith.addf %34, %43 : vector<32x64xf32>
    %c31_i32 = arith.constant 31 : i32
    %45 = tpu.dynamic_rotate %29 by %c31_i32 dim 0 : vector<32x64xf32>, i32 -> vector<32x64xf32>
    %cst_21 = arith.constant 0.000000e+00 : f32
    %46 = vector.shape_cast %20 : vector<32x1xi1> to vector<32x1xi1>
    %47 = vector.broadcast %46 : vector<32x1xi1> to vector<32x64xi1>
    %48 = vector.broadcast %cst_21 : f32 to vector<32x64xf32>
    %49 = arith.select %47, %45, %48 : vector<32x64xi1>, vector<32x64xf32>
    %c2 = arith.constant 2 : index
    %c0_22 = arith.constant 0 : index
    %c0_23 = arith.constant 0 : index
    %50 = vector.load %arg3[%c2, %c0_22, %c0_23] : memref<3x64x64xbf16, #tpu.memory_space<vmem>>, vector<1x64x64xbf16>
    %51 = vector.shape_cast %50 : vector<1x64x64xbf16> to vector<64x64xbf16>
    %52 = arith.truncf %49 : vector<32x64xf32> to vector<32x64xbf16>
    %cst_24 = arith.constant dense<0.000000e+00> : vector<32x64xf32>
    %53 = tpu.matmul %52, %51, %cst_24 {dimension_numbers = #tpu.dot_dimension_numbers<[1], [0], [0], [1], [0, 0, 1, 1], [], []>} : vector<32x64xbf16>, vector<64x64xbf16>, vector<32x64xf32> -> vector<32x64xf32>
    %54 = arith.addf %44, %53 : vector<32x64xf32>
    %55 = vector.broadcast %30 : vector<1x64xf32> to vector<32x64xf32>
    %56 = arith.addf %54, %55 : vector<32x64xf32>
    %cst_25 = arith.constant 0.000000e+00 : f32
    %57 = vector.broadcast %cst_25 : f32 to vector<32x64xf32>
    %58 = arith.maximumf %56, %57 : vector<32x64xf32>
    %c2_26 = arith.constant 2 : index
    %c0_27 = arith.constant 0 : index
    %59 = vector.load %arg14[%c2_26, %c0_27] : memref<18x512xf32, #tpu.memory_space<vmem>>, vector<1x128xf32>
    %c1_28 = arith.constant 1 : index
    %c0_29 = arith.constant 0 : index
    %c0_30 = arith.constant 0 : index
    %60 = vector.load %arg4[%c1_28, %c0_29, %c0_30] : memref<3x64x128xbf16, #tpu.memory_space<vmem>>, vector<1x64x128xbf16>
    %61 = vector.shape_cast %60 : vector<1x64x128xbf16> to vector<64x128xbf16>
    %62 = arith.truncf %58 : vector<32x64xf32> to vector<32x64xbf16>
    %cst_31 = arith.constant dense<0.000000e+00> : vector<32x128xf32>
    %63 = tpu.matmul %62, %61, %cst_31 {dimension_numbers = #tpu.dot_dimension_numbers<[1], [0], [0], [1], [0, 0, 1, 1], [], []>} : vector<32x64xbf16>, vector<64x128xbf16>, vector<32x128xf32> -> vector<32x128xf32>
    %c1_i32_32 = arith.constant 1 : i32
    %64 = tpu.dynamic_rotate %58 by %c1_i32_32 dim 0 : vector<32x64xf32>, i32 -> vector<32x64xf32>
    %cst_33 = arith.constant 0.000000e+00 : f32
    %65 = vector.shape_cast %18 : vector<32x1xi1> to vector<32x1xi1>
    %66 = vector.broadcast %65 : vector<32x1xi1> to vector<32x64xi1>
    %67 = vector.broadcast %cst_33 : f32 to vector<32x64xf32>
    %68 = arith.select %66, %64, %67 : vector<32x64xi1>, vector<32x64xf32>
    %c0_34 = arith.constant 0 : index
    %c0_35 = arith.constant 0 : index
    %c0_36 = arith.constant 0 : index
    %69 = vector.load %arg4[%c0_34, %c0_35, %c0_36] : memref<3x64x128xbf16, #tpu.memory_space<vmem>>, vector<1x64x128xbf16>
    %70 = vector.shape_cast %69 : vector<1x64x128xbf16> to vector<64x128xbf16>
    %71 = arith.truncf %68 : vector<32x64xf32> to vector<32x64xbf16>
    %cst_37 = arith.constant dense<0.000000e+00> : vector<32x128xf32>
    %72 = tpu.matmul %71, %70, %cst_37 {dimension_numbers = #tpu.dot_dimension_numbers<[1], [0], [0], [1], [0, 0, 1, 1], [], []>} : vector<32x64xbf16>, vector<64x128xbf16>, vector<32x128xf32> -> vector<32x128xf32>
    %73 = arith.addf %63, %72 : vector<32x128xf32>
    %c31_i32_38 = arith.constant 31 : i32
    %74 = tpu.dynamic_rotate %58 by %c31_i32_38 dim 0 : vector<32x64xf32>, i32 -> vector<32x64xf32>
    %cst_39 = arith.constant 0.000000e+00 : f32
    %75 = vector.shape_cast %20 : vector<32x1xi1> to vector<32x1xi1>
    %76 = vector.broadcast %75 : vector<32x1xi1> to vector<32x64xi1>
    %77 = vector.broadcast %cst_39 : f32 to vector<32x64xf32>
    %78 = arith.select %76, %74, %77 : vector<32x64xi1>, vector<32x64xf32>
    %c2_40 = arith.constant 2 : index
    %c0_41 = arith.constant 0 : index
    %c0_42 = arith.constant 0 : index
    %79 = vector.load %arg4[%c2_40, %c0_41, %c0_42] : memref<3x64x128xbf16, #tpu.memory_space<vmem>>, vector<1x64x128xbf16>
    %80 = vector.shape_cast %79 : vector<1x64x128xbf16> to vector<64x128xbf16>
    %81 = arith.truncf %78 : vector<32x64xf32> to vector<32x64xbf16>
    %cst_43 = arith.constant dense<0.000000e+00> : vector<32x128xf32>
    %82 = tpu.matmul %81, %80, %cst_43 {dimension_numbers = #tpu.dot_dimension_numbers<[1], [0], [0], [1], [0, 0, 1, 1], [], []>} : vector<32x64xbf16>, vector<64x128xbf16>, vector<32x128xf32> -> vector<32x128xf32>
    %83 = arith.addf %73, %82 : vector<32x128xf32>
    %84 = vector.broadcast %59 : vector<1x128xf32> to vector<32x128xf32>
    %85 = arith.addf %83, %84 : vector<32x128xf32>
    %c0_44 = arith.constant 0 : index
    %c0_45 = arith.constant 0 : index
    %c0_46 = arith.constant 0 : index
    %86 = vector.load %arg5[%c0_44, %c0_45, %c0_46] : memref<1x64x128xbf16, #tpu.memory_space<vmem>>, vector<1x64x128xbf16>
    %87 = vector.shape_cast %86 : vector<1x64x128xbf16> to vector<64x128xbf16>
    %88 = arith.truncf %29 : vector<32x64xf32> to vector<32x64xbf16>
    %cst_47 = arith.constant dense<0.000000e+00> : vector<32x128xf32>
    %89 = tpu.matmul %88, %87, %cst_47 {dimension_numbers = #tpu.dot_dimension_numbers<[1], [0], [0], [1], [0, 0, 1, 1], [], []>} : vector<32x64xbf16>, vector<64x128xbf16>, vector<32x128xf32> -> vector<32x128xf32>
    %c3 = arith.constant 3 : index
    %c0_48 = arith.constant 0 : index
    %90 = vector.load %arg14[%c3, %c0_48] : memref<18x512xf32, #tpu.memory_space<vmem>>, vector<1x128xf32>
    %91 = vector.broadcast %90 : vector<1x128xf32> to vector<32x128xf32>
    %92 = arith.addf %89, %91 : vector<32x128xf32>
    %93 = arith.addf %85, %92 : vector<32x128xf32>
    %c4 = arith.constant 4 : index
    %c0_49 = arith.constant 0 : index
    %94 = vector.load %arg14[%c4, %c0_49] : memref<18x512xf32, #tpu.memory_space<vmem>>, vector<1x128xf32>
    %95 = vector.broadcast %94 : vector<1x128xf32> to vector<32x128xf32>
    %96 = arith.mulf %93, %95 : vector<32x128xf32>
    %c5 = arith.constant 5 : index
    %c0_50 = arith.constant 0 : index
    %97 = vector.load %arg14[%c5, %c0_50] : memref<18x512xf32, #tpu.memory_space<vmem>>, vector<1x128xf32>
    %98 = vector.broadcast %97 : vector<1x128xf32> to vector<32x128xf32>
    %99 = arith.addf %96, %98 : vector<32x128xf32>
    %cst_51 = arith.constant 0.000000e+00 : f32
    %100 = vector.broadcast %cst_51 : f32 to vector<32x128xf32>
    %101 = arith.maximumf %99, %100 : vector<32x128xf32>
    %c6 = arith.constant 6 : index
    %c0_52 = arith.constant 0 : index
    %102 = vector.load %arg14[%c6, %c0_52] : memref<18x512xf32, #tpu.memory_space<vmem>>, vector<1x64xf32>
    %c1_53 = arith.constant 1 : index
    %c0_54 = arith.constant 0 : index
    %c0_55 = arith.constant 0 : index
    %103 = vector.load %arg6[%c1_53, %c0_54, %c0_55] : memref<3x128x64xbf16, #tpu.memory_space<vmem>>, vector<1x128x64xbf16>
    %104 = vector.shape_cast %103 : vector<1x128x64xbf16> to vector<128x64xbf16>
    %105 = arith.truncf %101 : vector<32x128xf32> to vector<32x128xbf16>
    %cst_56 = arith.constant dense<0.000000e+00> : vector<32x64xf32>
    %106 = tpu.matmul %105, %104, %cst_56 {dimension_numbers = #tpu.dot_dimension_numbers<[1], [0], [0], [1], [0, 0, 1, 1], [], []>} : vector<32x128xbf16>, vector<128x64xbf16>, vector<32x64xf32> -> vector<32x64xf32>
    %c1_i32_57 = arith.constant 1 : i32
    %107 = tpu.dynamic_rotate %101 by %c1_i32_57 dim 0 : vector<32x128xf32>, i32 -> vector<32x128xf32>
    %cst_58 = arith.constant 0.000000e+00 : f32
    %108 = vector.shape_cast %18 : vector<32x1xi1> to vector<32x1xi1>
    %109 = vector.broadcast %108 : vector<32x1xi1> to vector<32x128xi1>
    %110 = vector.broadcast %cst_58 : f32 to vector<32x128xf32>
    %111 = arith.select %109, %107, %110 : vector<32x128xi1>, vector<32x128xf32>
    %c0_59 = arith.constant 0 : index
    %c0_60 = arith.constant 0 : index
    %c0_61 = arith.constant 0 : index
    %112 = vector.load %arg6[%c0_59, %c0_60, %c0_61] : memref<3x128x64xbf16, #tpu.memory_space<vmem>>, vector<1x128x64xbf16>
    %113 = vector.shape_cast %112 : vector<1x128x64xbf16> to vector<128x64xbf16>
    %114 = arith.truncf %111 : vector<32x128xf32> to vector<32x128xbf16>
    %cst_62 = arith.constant dense<0.000000e+00> : vector<32x64xf32>
    %115 = tpu.matmul %114, %113, %cst_62 {dimension_numbers = #tpu.dot_dimension_numbers<[1], [0], [0], [1], [0, 0, 1, 1], [], []>} : vector<32x128xbf16>, vector<128x64xbf16>, vector<32x64xf32> -> vector<32x64xf32>
    %116 = arith.addf %106, %115 : vector<32x64xf32>
    %c31_i32_63 = arith.constant 31 : i32
    %117 = tpu.dynamic_rotate %101 by %c31_i32_63 dim 0 : vector<32x128xf32>, i32 -> vector<32x128xf32>
    %cst_64 = arith.constant 0.000000e+00 : f32
    %118 = vector.shape_cast %20 : vector<32x1xi1> to vector<32x1xi1>
    %119 = vector.broadcast %118 : vector<32x1xi1> to vector<32x128xi1>
    %120 = vector.broadcast %cst_64 : f32 to vector<32x128xf32>
    %121 = arith.select %119, %117, %120 : vector<32x128xi1>, vector<32x128xf32>
    %c2_65 = arith.constant 2 : index
    %c0_66 = arith.constant 0 : index
    %c0_67 = arith.constant 0 : index
    %122 = vector.load %arg6[%c2_65, %c0_66, %c0_67] : memref<3x128x64xbf16, #tpu.memory_space<vmem>>, vector<1x128x64xbf16>
    %123 = vector.shape_cast %122 : vector<1x128x64xbf16> to vector<128x64xbf16>
    %124 = arith.truncf %121 : vector<32x128xf32> to vector<32x128xbf16>
    %cst_68 = arith.constant dense<0.000000e+00> : vector<32x64xf32>
    %125 = tpu.matmul %124, %123, %cst_68 {dimension_numbers = #tpu.dot_dimension_numbers<[1], [0], [0], [1], [0, 0, 1, 1], [], []>} : vector<32x128xbf16>, vector<128x64xbf16>, vector<32x64xf32> -> vector<32x64xf32>
    %126 = arith.addf %116, %125 : vector<32x64xf32>
    %127 = vector.broadcast %102 : vector<1x64xf32> to vector<32x64xf32>
    %128 = arith.addf %126, %127 : vector<32x64xf32>
    %cst_69 = arith.constant 0.000000e+00 : f32
    %129 = vector.broadcast %cst_69 : f32 to vector<32x64xf32>
    %130 = arith.maximumf %128, %129 : vector<32x64xf32>
    %c7 = arith.constant 7 : index
    %c0_70 = arith.constant 0 : index
    %131 = vector.load %arg14[%c7, %c0_70] : memref<18x512xf32, #tpu.memory_space<vmem>>, vector<1x256xf32>
    %c1_71 = arith.constant 1 : index
    %c0_72 = arith.constant 0 : index
    %c0_73 = arith.constant 0 : index
    %132 = vector.load %arg7[%c1_71, %c0_72, %c0_73] : memref<3x64x256xbf16, #tpu.memory_space<vmem>>, vector<1x64x256xbf16>
    %133 = vector.shape_cast %132 : vector<1x64x256xbf16> to vector<64x256xbf16>
    %134 = arith.truncf %130 : vector<32x64xf32> to vector<32x64xbf16>
    %cst_74 = arith.constant dense<0.000000e+00> : vector<32x256xf32>
    %135 = tpu.matmul %134, %133, %cst_74 {dimension_numbers = #tpu.dot_dimension_numbers<[1], [0], [0], [1], [0, 0, 1, 1], [], []>} : vector<32x64xbf16>, vector<64x256xbf16>, vector<32x256xf32> -> vector<32x256xf32>
    %c1_i32_75 = arith.constant 1 : i32
    %136 = tpu.dynamic_rotate %130 by %c1_i32_75 dim 0 : vector<32x64xf32>, i32 -> vector<32x64xf32>
    %cst_76 = arith.constant 0.000000e+00 : f32
    %137 = vector.shape_cast %18 : vector<32x1xi1> to vector<32x1xi1>
    %138 = vector.broadcast %137 : vector<32x1xi1> to vector<32x64xi1>
    %139 = vector.broadcast %cst_76 : f32 to vector<32x64xf32>
    %140 = arith.select %138, %136, %139 : vector<32x64xi1>, vector<32x64xf32>
    %c0_77 = arith.constant 0 : index
    %c0_78 = arith.constant 0 : index
    %c0_79 = arith.constant 0 : index
    %141 = vector.load %arg7[%c0_77, %c0_78, %c0_79] : memref<3x64x256xbf16, #tpu.memory_space<vmem>>, vector<1x64x256xbf16>
    %142 = vector.shape_cast %141 : vector<1x64x256xbf16> to vector<64x256xbf16>
    %143 = arith.truncf %140 : vector<32x64xf32> to vector<32x64xbf16>
    %cst_80 = arith.constant dense<0.000000e+00> : vector<32x256xf32>
    %144 = tpu.matmul %143, %142, %cst_80 {dimension_numbers = #tpu.dot_dimension_numbers<[1], [0], [0], [1], [0, 0, 1, 1], [], []>} : vector<32x64xbf16>, vector<64x256xbf16>, vector<32x256xf32> -> vector<32x256xf32>
    %145 = arith.addf %135, %144 : vector<32x256xf32>
    %c31_i32_81 = arith.constant 31 : i32
    %146 = tpu.dynamic_rotate %130 by %c31_i32_81 dim 0 : vector<32x64xf32>, i32 -> vector<32x64xf32>
    %cst_82 = arith.constant 0.000000e+00 : f32
    %147 = vector.shape_cast %20 : vector<32x1xi1> to vector<32x1xi1>
    %148 = vector.broadcast %147 : vector<32x1xi1> to vector<32x64xi1>
    %149 = vector.broadcast %cst_82 : f32 to vector<32x64xf32>
    %150 = arith.select %148, %146, %149 : vector<32x64xi1>, vector<32x64xf32>
    %c2_83 = arith.constant 2 : index
    %c0_84 = arith.constant 0 : index
    %c0_85 = arith.constant 0 : index
    %151 = vector.load %arg7[%c2_83, %c0_84, %c0_85] : memref<3x64x256xbf16, #tpu.memory_space<vmem>>, vector<1x64x256xbf16>
    %152 = vector.shape_cast %151 : vector<1x64x256xbf16> to vector<64x256xbf16>
    %153 = arith.truncf %150 : vector<32x64xf32> to vector<32x64xbf16>
    %cst_86 = arith.constant dense<0.000000e+00> : vector<32x256xf32>
    %154 = tpu.matmul %153, %152, %cst_86 {dimension_numbers = #tpu.dot_dimension_numbers<[1], [0], [0], [1], [0, 0, 1, 1], [], []>} : vector<32x64xbf16>, vector<64x256xbf16>, vector<32x256xf32> -> vector<32x256xf32>
    %155 = arith.addf %145, %154 : vector<32x256xf32>
    %156 = vector.broadcast %131 : vector<1x256xf32> to vector<32x256xf32>
    %157 = arith.addf %155, %156 : vector<32x256xf32>
    %c1_i32_87 = arith.constant 1 : i32
    %158 = tpu.dynamic_rotate %93 by %c1_i32_87 dim 0 : vector<32x128xf32>, i32 -> vector<32x128xf32>
    %cst_88 = arith.constant 0xFF800000 : f32
    %159 = vector.shape_cast %18 : vector<32x1xi1> to vector<32x1xi1>
    %160 = vector.broadcast %159 : vector<32x1xi1> to vector<32x128xi1>
    %161 = vector.broadcast %cst_88 : f32 to vector<32x128xf32>
    %162 = arith.select %160, %158, %161 : vector<32x128xi1>, vector<32x128xf32>
    %163 = arith.maximumf %162, %93 : vector<32x128xf32>
    %c31_i32_89 = arith.constant 31 : i32
    %164 = tpu.dynamic_rotate %93 by %c31_i32_89 dim 0 : vector<32x128xf32>, i32 -> vector<32x128xf32>
    %cst_90 = arith.constant 0xFF800000 : f32
    %165 = vector.shape_cast %20 : vector<32x1xi1> to vector<32x1xi1>
    %166 = vector.broadcast %165 : vector<32x1xi1> to vector<32x128xi1>
    %167 = vector.broadcast %cst_90 : f32 to vector<32x128xf32>
    %168 = arith.select %166, %164, %167 : vector<32x128xi1>, vector<32x128xf32>
    %169 = arith.maximumf %163, %168 : vector<32x128xf32>
    %c0_91 = arith.constant 0 : index
    %c0_92 = arith.constant 0 : index
    %c0_93 = arith.constant 0 : index
    %170 = vector.load %arg8[%c0_91, %c0_92, %c0_93] : memref<1x128x256xbf16, #tpu.memory_space<vmem>>, vector<1x128x256xbf16>
    %171 = vector.shape_cast %170 : vector<1x128x256xbf16> to vector<128x256xbf16>
    %172 = arith.truncf %169 : vector<32x128xf32> to vector<32x128xbf16>
    %cst_94 = arith.constant dense<0.000000e+00> : vector<32x256xf32>
    %173 = tpu.matmul %172, %171, %cst_94 {dimension_numbers = #tpu.dot_dimension_numbers<[1], [0], [0], [1], [0, 0, 1, 1], [], []>} : vector<32x128xbf16>, vector<128x256xbf16>, vector<32x256xf32> -> vector<32x256xf32>
    %c8 = arith.constant 8 : index
    %c0_95 = arith.constant 0 : index
    %174 = vector.load %arg14[%c8, %c0_95] : memref<18x512xf32, #tpu.memory_space<vmem>>, vector<1x256xf32>
    %175 = vector.broadcast %174 : vector<1x256xf32> to vector<32x256xf32>
    %176 = arith.addf %173, %175 : vector<32x256xf32>
    %177 = arith.addf %157, %176 : vector<32x256xf32>
    %c9 = arith.constant 9 : index
    %c0_96 = arith.constant 0 : index
    %178 = vector.load %arg14[%c9, %c0_96] : memref<18x512xf32, #tpu.memory_space<vmem>>, vector<1x256xf32>
    %179 = vector.broadcast %178 : vector<1x256xf32> to vector<32x256xf32>
    %180 = arith.mulf %177, %179 : vector<32x256xf32>
    %c10 = arith.constant 10 : index
    %c0_97 = arith.constant 0 : index
    %181 = vector.load %arg14[%c10, %c0_97] : memref<18x512xf32, #tpu.memory_space<vmem>>, vector<1x256xf32>
    %182 = vector.broadcast %181 : vector<1x256xf32> to vector<32x256xf32>
    %183 = arith.addf %180, %182 : vector<32x256xf32>
    %cst_98 = arith.constant 0.000000e+00 : f32
    %184 = vector.broadcast %cst_98 : f32 to vector<32x256xf32>
    %185 = arith.maximumf %183, %184 : vector<32x256xf32>
    %c11 = arith.constant 11 : index
    %c0_99 = arith.constant 0 : index
    %186 = vector.load %arg14[%c11, %c0_99] : memref<18x512xf32, #tpu.memory_space<vmem>>, vector<1x64xf32>
    %c1_100 = arith.constant 1 : index
    %c0_101 = arith.constant 0 : index
    %c0_102 = arith.constant 0 : index
    %187 = vector.load %arg9[%c1_100, %c0_101, %c0_102] : memref<3x256x64xbf16, #tpu.memory_space<vmem>>, vector<1x256x64xbf16>
    %188 = vector.shape_cast %187 : vector<1x256x64xbf16> to vector<256x64xbf16>
    %189 = arith.truncf %185 : vector<32x256xf32> to vector<32x256xbf16>
    %cst_103 = arith.constant dense<0.000000e+00> : vector<32x64xf32>
    %190 = tpu.matmul %189, %188, %cst_103 {dimension_numbers = #tpu.dot_dimension_numbers<[1], [0], [0], [1], [0, 0, 1, 1], [], []>} : vector<32x256xbf16>, vector<256x64xbf16>, vector<32x64xf32> -> vector<32x64xf32>
    %c1_i32_104 = arith.constant 1 : i32
    %191 = tpu.dynamic_rotate %185 by %c1_i32_104 dim 0 : vector<32x256xf32>, i32 -> vector<32x256xf32>
    %cst_105 = arith.constant 0.000000e+00 : f32
    %192 = vector.shape_cast %18 : vector<32x1xi1> to vector<32x1xi1>
    %193 = vector.broadcast %192 : vector<32x1xi1> to vector<32x256xi1>
    %194 = vector.broadcast %cst_105 : f32 to vector<32x256xf32>
    %195 = arith.select %193, %191, %194 : vector<32x256xi1>, vector<32x256xf32>
    %c0_106 = arith.constant 0 : index
    %c0_107 = arith.constant 0 : index
    %c0_108 = arith.constant 0 : index
    %196 = vector.load %arg9[%c0_106, %c0_107, %c0_108] : memref<3x256x64xbf16, #tpu.memory_space<vmem>>, vector<1x256x64xbf16>
    %197 = vector.shape_cast %196 : vector<1x256x64xbf16> to vector<256x64xbf16>
    %198 = arith.truncf %195 : vector<32x256xf32> to vector<32x256xbf16>
    %cst_109 = arith.constant dense<0.000000e+00> : vector<32x64xf32>
    %199 = tpu.matmul %198, %197, %cst_109 {dimension_numbers = #tpu.dot_dimension_numbers<[1], [0], [0], [1], [0, 0, 1, 1], [], []>} : vector<32x256xbf16>, vector<256x64xbf16>, vector<32x64xf32> -> vector<32x64xf32>
    %200 = arith.addf %190, %199 : vector<32x64xf32>
    %c31_i32_110 = arith.constant 31 : i32
    %201 = tpu.dynamic_rotate %185 by %c31_i32_110 dim 0 : vector<32x256xf32>, i32 -> vector<32x256xf32>
    %cst_111 = arith.constant 0.000000e+00 : f32
    %202 = vector.shape_cast %20 : vector<32x1xi1> to vector<32x1xi1>
    %203 = vector.broadcast %202 : vector<32x1xi1> to vector<32x256xi1>
    %204 = vector.broadcast %cst_111 : f32 to vector<32x256xf32>
    %205 = arith.select %203, %201, %204 : vector<32x256xi1>, vector<32x256xf32>
    %c2_112 = arith.constant 2 : index
    %c0_113 = arith.constant 0 : index
    %c0_114 = arith.constant 0 : index
    %206 = vector.load %arg9[%c2_112, %c0_113, %c0_114] : memref<3x256x64xbf16, #tpu.memory_space<vmem>>, vector<1x256x64xbf16>
    %207 = vector.shape_cast %206 : vector<1x256x64xbf16> to vector<256x64xbf16>
    %208 = arith.truncf %205 : vector<32x256xf32> to vector<32x256xbf16>
    %cst_115 = arith.constant dense<0.000000e+00> : vector<32x64xf32>
    %209 = tpu.matmul %208, %207, %cst_115 {dimension_numbers = #tpu.dot_dimension_numbers<[1], [0], [0], [1], [0, 0, 1, 1], [], []>} : vector<32x256xbf16>, vector<256x64xbf16>, vector<32x64xf32> -> vector<32x64xf32>
    %210 = arith.addf %200, %209 : vector<32x64xf32>
    %211 = vector.broadcast %186 : vector<1x64xf32> to vector<32x64xf32>
    %212 = arith.addf %210, %211 : vector<32x64xf32>
    %cst_116 = arith.constant 0.000000e+00 : f32
    %213 = vector.broadcast %cst_116 : f32 to vector<32x64xf32>
    %214 = arith.maximumf %212, %213 : vector<32x64xf32>
    %c12 = arith.constant 12 : index
    %c0_117 = arith.constant 0 : index
    %215 = vector.load %arg14[%c12, %c0_117] : memref<18x512xf32, #tpu.memory_space<vmem>>, vector<1x320xf32>
    %c1_118 = arith.constant 1 : index
    %c0_119 = arith.constant 0 : index
    %c0_120 = arith.constant 0 : index
    %216 = vector.load %arg10[%c1_118, %c0_119, %c0_120] : memref<3x64x320xbf16, #tpu.memory_space<vmem>>, vector<1x64x320xbf16>
    %217 = vector.shape_cast %216 : vector<1x64x320xbf16> to vector<64x320xbf16>
    %218 = arith.truncf %214 : vector<32x64xf32> to vector<32x64xbf16>
    %cst_121 = arith.constant dense<0.000000e+00> : vector<32x320xf32>
    %219 = tpu.matmul %218, %217, %cst_121 {dimension_numbers = #tpu.dot_dimension_numbers<[1], [0], [0], [1], [0, 0, 1, 1], [], []>} : vector<32x64xbf16>, vector<64x320xbf16>, vector<32x320xf32> -> vector<32x320xf32>
    %c1_i32_122 = arith.constant 1 : i32
    %220 = tpu.dynamic_rotate %214 by %c1_i32_122 dim 0 : vector<32x64xf32>, i32 -> vector<32x64xf32>
    %cst_123 = arith.constant 0.000000e+00 : f32
    %221 = vector.shape_cast %18 : vector<32x1xi1> to vector<32x1xi1>
    %222 = vector.broadcast %221 : vector<32x1xi1> to vector<32x64xi1>
    %223 = vector.broadcast %cst_123 : f32 to vector<32x64xf32>
    %224 = arith.select %222, %220, %223 : vector<32x64xi1>, vector<32x64xf32>
    %c0_124 = arith.constant 0 : index
    %c0_125 = arith.constant 0 : index
    %c0_126 = arith.constant 0 : index
    %225 = vector.load %arg10[%c0_124, %c0_125, %c0_126] : memref<3x64x320xbf16, #tpu.memory_space<vmem>>, vector<1x64x320xbf16>
    %226 = vector.shape_cast %225 : vector<1x64x320xbf16> to vector<64x320xbf16>
    %227 = arith.truncf %224 : vector<32x64xf32> to vector<32x64xbf16>
    %cst_127 = arith.constant dense<0.000000e+00> : vector<32x320xf32>
    %228 = tpu.matmul %227, %226, %cst_127 {dimension_numbers = #tpu.dot_dimension_numbers<[1], [0], [0], [1], [0, 0, 1, 1], [], []>} : vector<32x64xbf16>, vector<64x320xbf16>, vector<32x320xf32> -> vector<32x320xf32>
    %229 = arith.addf %219, %228 : vector<32x320xf32>
    %c31_i32_128 = arith.constant 31 : i32
    %230 = tpu.dynamic_rotate %214 by %c31_i32_128 dim 0 : vector<32x64xf32>, i32 -> vector<32x64xf32>
    %cst_129 = arith.constant 0.000000e+00 : f32
    %231 = vector.shape_cast %20 : vector<32x1xi1> to vector<32x1xi1>
    %232 = vector.broadcast %231 : vector<32x1xi1> to vector<32x64xi1>
    %233 = vector.broadcast %cst_129 : f32 to vector<32x64xf32>
    %234 = arith.select %232, %230, %233 : vector<32x64xi1>, vector<32x64xf32>
    %c2_130 = arith.constant 2 : index
    %c0_131 = arith.constant 0 : index
    %c0_132 = arith.constant 0 : index
    %235 = vector.load %arg10[%c2_130, %c0_131, %c0_132] : memref<3x64x320xbf16, #tpu.memory_space<vmem>>, vector<1x64x320xbf16>
    %236 = vector.shape_cast %235 : vector<1x64x320xbf16> to vector<64x320xbf16>
    %237 = arith.truncf %234 : vector<32x64xf32> to vector<32x64xbf16>
    %cst_133 = arith.constant dense<0.000000e+00> : vector<32x320xf32>
    %238 = tpu.matmul %237, %236, %cst_133 {dimension_numbers = #tpu.dot_dimension_numbers<[1], [0], [0], [1], [0, 0, 1, 1], [], []>} : vector<32x64xbf16>, vector<64x320xbf16>, vector<32x320xf32> -> vector<32x320xf32>
    %239 = arith.addf %229, %238 : vector<32x320xf32>
    %240 = vector.broadcast %215 : vector<1x320xf32> to vector<32x320xf32>
    %241 = arith.addf %239, %240 : vector<32x320xf32>
    %c1_i32_134 = arith.constant 1 : i32
    %242 = tpu.dynamic_rotate %177 by %c1_i32_134 dim 0 : vector<32x256xf32>, i32 -> vector<32x256xf32>
    %cst_135 = arith.constant 0xFF800000 : f32
    %243 = vector.shape_cast %18 : vector<32x1xi1> to vector<32x1xi1>
    %244 = vector.broadcast %243 : vector<32x1xi1> to vector<32x256xi1>
    %245 = vector.broadcast %cst_135 : f32 to vector<32x256xf32>
    %246 = arith.select %244, %242, %245 : vector<32x256xi1>, vector<32x256xf32>
    %247 = arith.maximumf %246, %177 : vector<32x256xf32>
    %c31_i32_136 = arith.constant 31 : i32
    %248 = tpu.dynamic_rotate %177 by %c31_i32_136 dim 0 : vector<32x256xf32>, i32 -> vector<32x256xf32>
    %cst_137 = arith.constant 0xFF800000 : f32
    %249 = vector.shape_cast %20 : vector<32x1xi1> to vector<32x1xi1>
    %250 = vector.broadcast %249 : vector<32x1xi1> to vector<32x256xi1>
    %251 = vector.broadcast %cst_137 : f32 to vector<32x256xf32>
    %252 = arith.select %250, %248, %251 : vector<32x256xi1>, vector<32x256xf32>
    %253 = arith.maximumf %247, %252 : vector<32x256xf32>
    %c0_138 = arith.constant 0 : index
    %c0_139 = arith.constant 0 : index
    %c0_140 = arith.constant 0 : index
    %254 = vector.load %arg11[%c0_138, %c0_139, %c0_140] : memref<1x256x320xbf16, #tpu.memory_space<vmem>>, vector<1x256x320xbf16>
    %255 = vector.shape_cast %254 : vector<1x256x320xbf16> to vector<256x320xbf16>
    %256 = arith.truncf %253 : vector<32x256xf32> to vector<32x256xbf16>
    %cst_141 = arith.constant dense<0.000000e+00> : vector<32x320xf32>
    %257 = tpu.matmul %256, %255, %cst_141 {dimension_numbers = #tpu.dot_dimension_numbers<[1], [0], [0], [1], [0, 0, 1, 1], [], []>} : vector<32x256xbf16>, vector<256x320xbf16>, vector<32x320xf32> -> vector<32x320xf32>
    %c13 = arith.constant 13 : index
    %c0_142 = arith.constant 0 : index
    %258 = vector.load %arg14[%c13, %c0_142] : memref<18x512xf32, #tpu.memory_space<vmem>>, vector<1x320xf32>
    %259 = vector.broadcast %258 : vector<1x320xf32> to vector<32x320xf32>
    %260 = arith.addf %257, %259 : vector<32x320xf32>
    %261 = arith.addf %241, %260 : vector<32x320xf32>
    %c14 = arith.constant 14 : index
    %c0_143 = arith.constant 0 : index
    %262 = vector.load %arg14[%c14, %c0_143] : memref<18x512xf32, #tpu.memory_space<vmem>>, vector<1x320xf32>
    %263 = vector.broadcast %262 : vector<1x320xf32> to vector<32x320xf32>
    %264 = arith.mulf %261, %263 : vector<32x320xf32>
    %c15 = arith.constant 15 : index
    %c0_144 = arith.constant 0 : index
    %265 = vector.load %arg14[%c15, %c0_144] : memref<18x512xf32, #tpu.memory_space<vmem>>, vector<1x320xf32>
    %266 = vector.broadcast %265 : vector<1x320xf32> to vector<32x320xf32>
    %267 = arith.addf %264, %266 : vector<32x320xf32>
    %cst_145 = arith.constant 0.000000e+00 : f32
    %268 = vector.broadcast %cst_145 : f32 to vector<32x320xf32>
    %269 = arith.maximumf %267, %268 : vector<32x320xf32>
    %270 = vector.extract_strided_slice %269 {offsets = [0, 0], sizes = [1, 320], strides = [1, 1]} : vector<32x320xf32> to vector<1x320xf32>
    %c0_146 = arith.constant 0 : index
    %c0_147 = arith.constant 0 : index
    %271 = vector.load %arg16[%c0_146, %c0_147] : memref<2x5120xf32, #tpu.memory_space<vmem>>, vector<1x320xf32>
    tpu.vector_store %arg16[%c0_146, %c0_147], %270 {strides = array<i32>} : memref<2x5120xf32, #tpu.memory_space<vmem>>, vector<1x320xf32>,
    %272 = vector.extract_strided_slice %269 {offsets = [1, 0], sizes = [1, 320], strides = [1, 1]} : vector<32x320xf32> to vector<1x320xf32>
    %c0_148 = arith.constant 0 : index
    %c320 = arith.constant 320 : index
    %273 = vector.load %arg16[%c0_148, %c320] : memref<2x5120xf32, #tpu.memory_space<vmem>>, vector<1x320xf32>
    tpu.vector_store %arg16[%c0_148, %c320], %272 {strides = array<i32>} : memref<2x5120xf32, #tpu.memory_space<vmem>>, vector<1x320xf32>,
    %274 = vector.extract_strided_slice %269 {offsets = [2, 0], sizes = [1, 320], strides = [1, 1]} : vector<32x320xf32> to vector<1x320xf32>
    %c0_149 = arith.constant 0 : index
    %c640 = arith.constant 640 : index
    %275 = vector.load %arg16[%c0_149, %c640] : memref<2x5120xf32, #tpu.memory_space<vmem>>, vector<1x320xf32>
    tpu.vector_store %arg16[%c0_149, %c640], %274 {strides = array<i32>} : memref<2x5120xf32, #tpu.memory_space<vmem>>, vector<1x320xf32>,
    %276 = vector.extract_strided_slice %269 {offsets = [3, 0], sizes = [1, 320], strides = [1, 1]} : vector<32x320xf32> to vector<1x320xf32>
    %c0_150 = arith.constant 0 : index
    %c960 = arith.constant 960 : index
    %277 = vector.load %arg16[%c0_150, %c960] : memref<2x5120xf32, #tpu.memory_space<vmem>>, vector<1x320xf32>
    tpu.vector_store %arg16[%c0_150, %c960], %276 {strides = array<i32>} : memref<2x5120xf32, #tpu.memory_space<vmem>>, vector<1x320xf32>,
    %278 = vector.extract_strided_slice %269 {offsets = [4, 0], sizes = [1, 320], strides = [1, 1]} : vector<32x320xf32> to vector<1x320xf32>
    %c0_151 = arith.constant 0 : index
    %c1280 = arith.constant 1280 : index
    %279 = vector.load %arg16[%c0_151, %c1280] : memref<2x5120xf32, #tpu.memory_space<vmem>>, vector<1x320xf32>
    tpu.vector_store %arg16[%c0_151, %c1280], %278 {strides = array<i32>} : memref<2x5120xf32, #tpu.memory_space<vmem>>, vector<1x320xf32>,
    %280 = vector.extract_strided_slice %269 {offsets = [5, 0], sizes = [1, 320], strides = [1, 1]} : vector<32x320xf32> to vector<1x320xf32>
    %c0_152 = arith.constant 0 : index
    %c1600 = arith.constant 1600 : index
    %281 = vector.load %arg16[%c0_152, %c1600] : memref<2x5120xf32, #tpu.memory_space<vmem>>, vector<1x320xf32>
    tpu.vector_store %arg16[%c0_152, %c1600], %280 {strides = array<i32>} : memref<2x5120xf32, #tpu.memory_space<vmem>>, vector<1x320xf32>,
    %282 = vector.extract_strided_slice %269 {offsets = [6, 0], sizes = [1, 320], strides = [1, 1]} : vector<32x320xf32> to vector<1x320xf32>
    %c0_153 = arith.constant 0 : index
    %c1920 = arith.constant 1920 : index
    %283 = vector.load %arg16[%c0_153, %c1920] : memref<2x5120xf32, #tpu.memory_space<vmem>>, vector<1x320xf32>
    tpu.vector_store %arg16[%c0_153, %c1920], %282 {strides = array<i32>} : memref<2x5120xf32, #tpu.memory_space<vmem>>, vector<1x320xf32>,
    %284 = vector.extract_strided_slice %269 {offsets = [7, 0], sizes = [1, 320], strides = [1, 1]} : vector<32x320xf32> to vector<1x320xf32>
    %c0_154 = arith.constant 0 : index
    %c2240 = arith.constant 2240 : index
    %285 = vector.load %arg16[%c0_154, %c2240] : memref<2x5120xf32, #tpu.memory_space<vmem>>, vector<1x320xf32>
    tpu.vector_store %arg16[%c0_154, %c2240], %284 {strides = array<i32>} : memref<2x5120xf32, #tpu.memory_space<vmem>>, vector<1x320xf32>,
    %286 = vector.extract_strided_slice %269 {offsets = [8, 0], sizes = [1, 320], strides = [1, 1]} : vector<32x320xf32> to vector<1x320xf32>
    %c0_155 = arith.constant 0 : index
    %c2560 = arith.constant 2560 : index
    %287 = vector.load %arg16[%c0_155, %c2560] : memref<2x5120xf32, #tpu.memory_space<vmem>>, vector<1x320xf32>
    tpu.vector_store %arg16[%c0_155, %c2560], %286 {strides = array<i32>} : memref<2x5120xf32, #tpu.memory_space<vmem>>, vector<1x320xf32>,
    %288 = vector.extract_strided_slice %269 {offsets = [9, 0], sizes = [1, 320], strides = [1, 1]} : vector<32x320xf32> to vector<1x320xf32>
    %c0_156 = arith.constant 0 : index
    %c2880 = arith.constant 2880 : index
    %289 = vector.load %arg16[%c0_156, %c2880] : memref<2x5120xf32, #tpu.memory_space<vmem>>, vector<1x320xf32>
    tpu.vector_store %arg16[%c0_156, %c2880], %288 {strides = array<i32>} : memref<2x5120xf32, #tpu.memory_space<vmem>>, vector<1x320xf32>,
    %290 = vector.extract_strided_slice %269 {offsets = [10, 0], sizes = [1, 320], strides = [1, 1]} : vector<32x320xf32> to vector<1x320xf32>
    %c0_157 = arith.constant 0 : index
    %c3200 = arith.constant 3200 : index
    %291 = vector.load %arg16[%c0_157, %c3200] : memref<2x5120xf32, #tpu.memory_space<vmem>>, vector<1x320xf32>
    tpu.vector_store %arg16[%c0_157, %c3200], %290 {strides = array<i32>} : memref<2x5120xf32, #tpu.memory_space<vmem>>, vector<1x320xf32>,
    %292 = vector.extract_strided_slice %269 {offsets = [11, 0], sizes = [1, 320], strides = [1, 1]} : vector<32x320xf32> to vector<1x320xf32>
    %c0_158 = arith.constant 0 : index
    %c3520 = arith.constant 3520 : index
    %293 = vector.load %arg16[%c0_158, %c3520] : memref<2x5120xf32, #tpu.memory_space<vmem>>, vector<1x320xf32>
    tpu.vector_store %arg16[%c0_158, %c3520], %292 {strides = array<i32>} : memref<2x5120xf32, #tpu.memory_space<vmem>>, vector<1x320xf32>,
    %294 = vector.extract_strided_slice %269 {offsets = [12, 0], sizes = [1, 320], strides = [1, 1]} : vector<32x320xf32> to vector<1x320xf32>
    %c0_159 = arith.constant 0 : index
    %c3840 = arith.constant 3840 : index
    %295 = vector.load %arg16[%c0_159, %c3840] : memref<2x5120xf32, #tpu.memory_space<vmem>>, vector<1x320xf32>
    tpu.vector_store %arg16[%c0_159, %c3840], %294 {strides = array<i32>} : memref<2x5120xf32, #tpu.memory_space<vmem>>, vector<1x320xf32>,
    %296 = vector.extract_strided_slice %269 {offsets = [13, 0], sizes = [1, 320], strides = [1, 1]} : vector<32x320xf32> to vector<1x320xf32>
    %c0_160 = arith.constant 0 : index
    %c4160 = arith.constant 4160 : index
    %297 = vector.load %arg16[%c0_160, %c4160] : memref<2x5120xf32, #tpu.memory_space<vmem>>, vector<1x320xf32>
    tpu.vector_store %arg16[%c0_160, %c4160], %296 {strides = array<i32>} : memref<2x5120xf32, #tpu.memory_space<vmem>>, vector<1x320xf32>,
    %298 = vector.extract_strided_slice %269 {offsets = [14, 0], sizes = [1, 320], strides = [1, 1]} : vector<32x320xf32> to vector<1x320xf32>
    %c0_161 = arith.constant 0 : index
    %c4480 = arith.constant 4480 : index
    %299 = vector.load %arg16[%c0_161, %c4480] : memref<2x5120xf32, #tpu.memory_space<vmem>>, vector<1x320xf32>
    tpu.vector_store %arg16[%c0_161, %c4480], %298 {strides = array<i32>} : memref<2x5120xf32, #tpu.memory_space<vmem>>, vector<1x320xf32>,
    %300 = vector.extract_strided_slice %269 {offsets = [15, 0], sizes = [1, 320], strides = [1, 1]} : vector<32x320xf32> to vector<1x320xf32>
    %c0_162 = arith.constant 0 : index
    %c4800 = arith.constant 4800 : index
    %301 = vector.load %arg16[%c0_162, %c4800] : memref<2x5120xf32, #tpu.memory_space<vmem>>, vector<1x320xf32>
    tpu.vector_store %arg16[%c0_162, %c4800], %300 {strides = array<i32>} : memref<2x5120xf32, #tpu.memory_space<vmem>>, vector<1x320xf32>,
    %302 = vector.extract_strided_slice %269 {offsets = [16, 0], sizes = [1, 320], strides = [1, 1]} : vector<32x320xf32> to vector<1x320xf32>
    %c1_163 = arith.constant 1 : index
    %c0_164 = arith.constant 0 : index
    %303 = vector.load %arg16[%c1_163, %c0_164] : memref<2x5120xf32, #tpu.memory_space<vmem>>, vector<1x320xf32>
    tpu.vector_store %arg16[%c1_163, %c0_164], %302 {strides = array<i32>} : memref<2x5120xf32, #tpu.memory_space<vmem>>, vector<1x320xf32>,
    %304 = vector.extract_strided_slice %269 {offsets = [17, 0], sizes = [1, 320], strides = [1, 1]} : vector<32x320xf32> to vector<1x320xf32>
    %c1_165 = arith.constant 1 : index
    %c320_166 = arith.constant 320 : index
    %305 = vector.load %arg16[%c1_165, %c320_166] : memref<2x5120xf32, #tpu.memory_space<vmem>>, vector<1x320xf32>
    tpu.vector_store %arg16[%c1_165, %c320_166], %304 {strides = array<i32>} : memref<2x5120xf32, #tpu.memory_space<vmem>>, vector<1x320xf32>,
    %306 = vector.extract_strided_slice %269 {offsets = [18, 0], sizes = [1, 320], strides = [1, 1]} : vector<32x320xf32> to vector<1x320xf32>
    %c1_167 = arith.constant 1 : index
    %c640_168 = arith.constant 640 : index
    %307 = vector.load %arg16[%c1_167, %c640_168] : memref<2x5120xf32, #tpu.memory_space<vmem>>, vector<1x320xf32>
    tpu.vector_store %arg16[%c1_167, %c640_168], %306 {strides = array<i32>} : memref<2x5120xf32, #tpu.memory_space<vmem>>, vector<1x320xf32>,
    %308 = vector.extract_strided_slice %269 {offsets = [19, 0], sizes = [1, 320], strides = [1, 1]} : vector<32x320xf32> to vector<1x320xf32>
    %c1_169 = arith.constant 1 : index
    %c960_170 = arith.constant 960 : index
    %309 = vector.load %arg16[%c1_169, %c960_170] : memref<2x5120xf32, #tpu.memory_space<vmem>>, vector<1x320xf32>
    tpu.vector_store %arg16[%c1_169, %c960_170], %308 {strides = array<i32>} : memref<2x5120xf32, #tpu.memory_space<vmem>>, vector<1x320xf32>,
    %310 = vector.extract_strided_slice %269 {offsets = [20, 0], sizes = [1, 320], strides = [1, 1]} : vector<32x320xf32> to vector<1x320xf32>
    %c1_171 = arith.constant 1 : index
    %c1280_172 = arith.constant 1280 : index
    %311 = vector.load %arg16[%c1_171, %c1280_172] : memref<2x5120xf32, #tpu.memory_space<vmem>>, vector<1x320xf32>
    tpu.vector_store %arg16[%c1_171, %c1280_172], %310 {strides = array<i32>} : memref<2x5120xf32, #tpu.memory_space<vmem>>, vector<1x320xf32>,
    %312 = vector.extract_strided_slice %269 {offsets = [21, 0], sizes = [1, 320], strides = [1, 1]} : vector<32x320xf32> to vector<1x320xf32>
    %c1_173 = arith.constant 1 : index
    %c1600_174 = arith.constant 1600 : index
    %313 = vector.load %arg16[%c1_173, %c1600_174] : memref<2x5120xf32, #tpu.memory_space<vmem>>, vector<1x320xf32>
    tpu.vector_store %arg16[%c1_173, %c1600_174], %312 {strides = array<i32>} : memref<2x5120xf32, #tpu.memory_space<vmem>>, vector<1x320xf32>,
    %314 = vector.extract_strided_slice %269 {offsets = [22, 0], sizes = [1, 320], strides = [1, 1]} : vector<32x320xf32> to vector<1x320xf32>
    %c1_175 = arith.constant 1 : index
    %c1920_176 = arith.constant 1920 : index
    %315 = vector.load %arg16[%c1_175, %c1920_176] : memref<2x5120xf32, #tpu.memory_space<vmem>>, vector<1x320xf32>
    tpu.vector_store %arg16[%c1_175, %c1920_176], %314 {strides = array<i32>} : memref<2x5120xf32, #tpu.memory_space<vmem>>, vector<1x320xf32>,
    %316 = vector.extract_strided_slice %269 {offsets = [23, 0], sizes = [1, 320], strides = [1, 1]} : vector<32x320xf32> to vector<1x320xf32>
    %c1_177 = arith.constant 1 : index
    %c2240_178 = arith.constant 2240 : index
    %317 = vector.load %arg16[%c1_177, %c2240_178] : memref<2x5120xf32, #tpu.memory_space<vmem>>, vector<1x320xf32>
    tpu.vector_store %arg16[%c1_177, %c2240_178], %316 {strides = array<i32>} : memref<2x5120xf32, #tpu.memory_space<vmem>>, vector<1x320xf32>,
    %318 = vector.extract_strided_slice %269 {offsets = [24, 0], sizes = [1, 320], strides = [1, 1]} : vector<32x320xf32> to vector<1x320xf32>
    %c1_179 = arith.constant 1 : index
    %c2560_180 = arith.constant 2560 : index
    %319 = vector.load %arg16[%c1_179, %c2560_180] : memref<2x5120xf32, #tpu.memory_space<vmem>>, vector<1x320xf32>
    tpu.vector_store %arg16[%c1_179, %c2560_180], %318 {strides = array<i32>} : memref<2x5120xf32, #tpu.memory_space<vmem>>, vector<1x320xf32>,
    %320 = vector.extract_strided_slice %269 {offsets = [25, 0], sizes = [1, 320], strides = [1, 1]} : vector<32x320xf32> to vector<1x320xf32>
    %c1_181 = arith.constant 1 : index
    %c2880_182 = arith.constant 2880 : index
    %321 = vector.load %arg16[%c1_181, %c2880_182] : memref<2x5120xf32, #tpu.memory_space<vmem>>, vector<1x320xf32>
    tpu.vector_store %arg16[%c1_181, %c2880_182], %320 {strides = array<i32>} : memref<2x5120xf32, #tpu.memory_space<vmem>>, vector<1x320xf32>,
    %322 = vector.extract_strided_slice %269 {offsets = [26, 0], sizes = [1, 320], strides = [1, 1]} : vector<32x320xf32> to vector<1x320xf32>
    %c1_183 = arith.constant 1 : index
    %c3200_184 = arith.constant 3200 : index
    %323 = vector.load %arg16[%c1_183, %c3200_184] : memref<2x5120xf32, #tpu.memory_space<vmem>>, vector<1x320xf32>
    tpu.vector_store %arg16[%c1_183, %c3200_184], %322 {strides = array<i32>} : memref<2x5120xf32, #tpu.memory_space<vmem>>, vector<1x320xf32>,
    %324 = vector.extract_strided_slice %269 {offsets = [27, 0], sizes = [1, 320], strides = [1, 1]} : vector<32x320xf32> to vector<1x320xf32>
    %c1_185 = arith.constant 1 : index
    %c3520_186 = arith.constant 3520 : index
    %325 = vector.load %arg16[%c1_185, %c3520_186] : memref<2x5120xf32, #tpu.memory_space<vmem>>, vector<1x320xf32>
    tpu.vector_store %arg16[%c1_185, %c3520_186], %324 {strides = array<i32>} : memref<2x5120xf32, #tpu.memory_space<vmem>>, vector<1x320xf32>,
    %326 = vector.extract_strided_slice %269 {offsets = [28, 0], sizes = [1, 320], strides = [1, 1]} : vector<32x320xf32> to vector<1x320xf32>
    %c1_187 = arith.constant 1 : index
    %c3840_188 = arith.constant 3840 : index
    %327 = vector.load %arg16[%c1_187, %c3840_188] : memref<2x5120xf32, #tpu.memory_space<vmem>>, vector<1x320xf32>
    tpu.vector_store %arg16[%c1_187, %c3840_188], %326 {strides = array<i32>} : memref<2x5120xf32, #tpu.memory_space<vmem>>, vector<1x320xf32>,
    %328 = vector.extract_strided_slice %269 {offsets = [29, 0], sizes = [1, 320], strides = [1, 1]} : vector<32x320xf32> to vector<1x320xf32>
    %c1_189 = arith.constant 1 : index
    %c4160_190 = arith.constant 4160 : index
    %329 = vector.load %arg16[%c1_189, %c4160_190] : memref<2x5120xf32, #tpu.memory_space<vmem>>, vector<1x320xf32>
    tpu.vector_store %arg16[%c1_189, %c4160_190], %328 {strides = array<i32>} : memref<2x5120xf32, #tpu.memory_space<vmem>>, vector<1x320xf32>,
    %330 = vector.extract_strided_slice %269 {offsets = [30, 0], sizes = [1, 320], strides = [1, 1]} : vector<32x320xf32> to vector<1x320xf32>
    %c1_191 = arith.constant 1 : index
    %c4480_192 = arith.constant 4480 : index
    %331 = vector.load %arg16[%c1_191, %c4480_192] : memref<2x5120xf32, #tpu.memory_space<vmem>>, vector<1x320xf32>
    tpu.vector_store %arg16[%c1_191, %c4480_192], %330 {strides = array<i32>} : memref<2x5120xf32, #tpu.memory_space<vmem>>, vector<1x320xf32>,
    %332 = vector.extract_strided_slice %269 {offsets = [31, 0], sizes = [1, 320], strides = [1, 1]} : vector<32x320xf32> to vector<1x320xf32>
    %c1_193 = arith.constant 1 : index
    %c4800_194 = arith.constant 4800 : index
    %333 = vector.load %arg16[%c1_193, %c4800_194] : memref<2x5120xf32, #tpu.memory_space<vmem>>, vector<1x320xf32>
    tpu.vector_store %arg16[%c1_193, %c4800_194], %332 {strides = array<i32>} : memref<2x5120xf32, #tpu.memory_space<vmem>>, vector<1x320xf32>,
    %c0_195 = arith.constant 0 : index
    %c0_196 = arith.constant 0 : index
    %334 = vector.load %arg16[%c0_195, %c0_196] : memref<2x5120xf32, #tpu.memory_space<vmem>>, vector<2x5120xf32>
    %c0_197 = arith.constant 0 : index
    %c0_198 = arith.constant 0 : index
    %335 = vector.load %arg12[%c0_197, %c0_198] : memref<5120x128xbf16, #tpu.memory_space<vmem>>, vector<5120x128xbf16>
    %336 = arith.truncf %334 : vector<2x5120xf32> to vector<2x5120xbf16>
    %cst_199 = arith.constant dense<0.000000e+00> : vector<2x128xf32>
    %337 = tpu.matmul %336, %335, %cst_199 {dimension_numbers = #tpu.dot_dimension_numbers<[1], [0], [0], [1], [0, 0, 1, 1], [], []>} : vector<2x5120xbf16>, vector<5120x128xbf16>, vector<2x128xf32> -> vector<2x128xf32>
    %c16 = arith.constant 16 : index
    %c0_200 = arith.constant 0 : index
    %338 = vector.load %arg14[%c16, %c0_200] : memref<18x512xf32, #tpu.memory_space<vmem>>, vector<1x128xf32>
    %339 = vector.broadcast %338 : vector<1x128xf32> to vector<2x128xf32>
    %340 = arith.addf %337, %339 : vector<2x128xf32>
    %cst_201 = arith.constant 0.000000e+00 : f32
    %341 = vector.broadcast %cst_201 : f32 to vector<2x128xf32>
    %342 = arith.maximumf %340, %341 : vector<2x128xf32>
    %c0_202 = arith.constant 0 : index
    %c0_203 = arith.constant 0 : index
    %343 = vector.load %arg13[%c0_202, %c0_203] : memref<128x6xbf16, #tpu.memory_space<vmem>>, vector<128x6xbf16>
    %344 = arith.truncf %342 : vector<2x128xf32> to vector<2x128xbf16>
    %cst_204 = arith.constant dense<0.000000e+00> : vector<2x6xf32>
    %345 = tpu.matmul %344, %343, %cst_204 {dimension_numbers = #tpu.dot_dimension_numbers<[1], [0], [0], [1], [0, 0, 1, 1], [], []>} : vector<2x128xbf16>, vector<128x6xbf16>, vector<2x6xf32> -> vector<2x6xf32>
    %c17 = arith.constant 17 : index
    %c0_205 = arith.constant 0 : index
    %346 = vector.load %arg14[%c17, %c0_205] : memref<18x512xf32, #tpu.memory_space<vmem>>, vector<1x6xf32>
    %347 = vector.broadcast %346 : vector<1x6xf32> to vector<2x6xf32>
    %348 = arith.addf %345, %347 : vector<2x6xf32>
    %c0_206 = arith.constant 0 : index
    %c0_207 = arith.constant 0 : index
    %349 = vector.load %arg15[%c0_206, %c0_207] : memref<2x6xf32, #tpu.memory_space<vmem>>, vector<2x6xf32>
    tpu.vector_store %arg15[%c0_206, %c0_207], %348 {strides = array<i32>} : memref<2x6xf32, #tpu.memory_space<vmem>>, vector<2x6xf32>,
    return
  }
  func.func @transform_0(%arg0: i32) -> (i32, i32) {
    %c0_i32 = arith.constant 0 : i32
    %c0_i32_0 = arith.constant 0 : i32
    %c0_i32_1 = arith.constant 0 : i32
    return %c0_i32, %c0_i32_0 : i32, i32
  }
  func.func @transform_1(%arg0: i32) -> (i32, i32) {
    %c0_i32 = arith.constant 0 : i32
    %c0_i32_0 = arith.constant 0 : i32
    %c0_i32_1 = arith.constant 0 : i32
    return %c0_i32, %c0_i32_0 : i32, i32
  }
  func.func @transform_2(%arg0: i32) -> (i32, i32, i32) {
    %c0_i32 = arith.constant 0 : i32
    %c0_i32_0 = arith.constant 0 : i32
    %c0_i32_1 = arith.constant 0 : i32
    %c0_i32_2 = arith.constant 0 : i32
    return %c0_i32, %c0_i32_0, %c0_i32_1 : i32, i32, i32
  }
  func.func @transform_3(%arg0: i32) -> (i32, i32, i32) {
    %c0_i32 = arith.constant 0 : i32
    %c0_i32_0 = arith.constant 0 : i32
    %c0_i32_1 = arith.constant 0 : i32
    %c0_i32_2 = arith.constant 0 : i32
    return %c0_i32, %c0_i32_0, %c0_i32_1 : i32, i32, i32
  }
  func.func @transform_4(%arg0: i32) -> (i32, i32, i32) {
    %c0_i32 = arith.constant 0 : i32
    %c0_i32_0 = arith.constant 0 : i32
    %c0_i32_1 = arith.constant 0 : i32
    %c0_i32_2 = arith.constant 0 : i32
    return %c0_i32, %c0_i32_0, %c0_i32_1 : i32, i32, i32
  }
  func.func @transform_5(%arg0: i32) -> (i32, i32, i32) {
    %c0_i32 = arith.constant 0 : i32
    %c0_i32_0 = arith.constant 0 : i32
    %c0_i32_1 = arith.constant 0 : i32
    %c0_i32_2 = arith.constant 0 : i32
    return %c0_i32, %c0_i32_0, %c0_i32_1 : i32, i32, i32
  }
  func.func @transform_6(%arg0: i32) -> (i32, i32, i32) {
    %c0_i32 = arith.constant 0 : i32
    %c0_i32_0 = arith.constant 0 : i32
    %c0_i32_1 = arith.constant 0 : i32
    %c0_i32_2 = arith.constant 0 : i32
    return %c0_i32, %c0_i32_0, %c0_i32_1 : i32, i32, i32
  }
  func.func @transform_7(%arg0: i32) -> (i32, i32, i32) {
    %c0_i32 = arith.constant 0 : i32
    %c0_i32_0 = arith.constant 0 : i32
    %c0_i32_1 = arith.constant 0 : i32
    %c0_i32_2 = arith.constant 0 : i32
    return %c0_i32, %c0_i32_0, %c0_i32_1 : i32, i32, i32
  }
  func.func @transform_8(%arg0: i32) -> (i32, i32, i32) {
    %c0_i32 = arith.constant 0 : i32
    %c0_i32_0 = arith.constant 0 : i32
    %c0_i32_1 = arith.constant 0 : i32
    %c0_i32_2 = arith.constant 0 : i32
    return %c0_i32, %c0_i32_0, %c0_i32_1 : i32, i32, i32
  }
  func.func @transform_9(%arg0: i32) -> (i32, i32, i32) {
    %c0_i32 = arith.constant 0 : i32
    %c0_i32_0 = arith.constant 0 : i32
    %c0_i32_1 = arith.constant 0 : i32
    %c0_i32_2 = arith.constant 0 : i32
    return %c0_i32, %c0_i32_0, %c0_i32_1 : i32, i32, i32
  }
  func.func @transform_10(%arg0: i32) -> (i32, i32, i32) {
    %c0_i32 = arith.constant 0 : i32
    %c0_i32_0 = arith.constant 0 : i32
    %c0_i32_1 = arith.constant 0 : i32
    %c0_i32_2 = arith.constant 0 : i32
    return %c0_i32, %c0_i32_0, %c0_i32_1 : i32, i32, i32
  }
  func.func @transform_11(%arg0: i32) -> (i32, i32) {
    %c0_i32 = arith.constant 0 : i32
    %c0_i32_0 = arith.constant 0 : i32
    %c0_i32_1 = arith.constant 0 : i32
    return %c0_i32, %c0_i32_0 : i32, i32
  }
  func.func @transform_12(%arg0: i32) -> (i32, i32) {
    %c0_i32 = arith.constant 0 : i32
    %c0_i32_0 = arith.constant 0 : i32
    %c0_i32_1 = arith.constant 0 : i32
    return %c0_i32, %c0_i32_0 : i32, i32
  }
  func.func @transform_13(%arg0: i32) -> (i32, i32) {
    %c0_i32 = arith.constant 0 : i32
    %c0_i32_0 = arith.constant 0 : i32
    %c0_i32_1 = arith.constant 0 : i32
    return %c0_i32, %c0_i32_0 : i32, i32
  }
  func.func @transform_14(%arg0: i32) -> (i32, i32) {
    %c0_i32 = arith.constant 0 : i32
    %c0_i32_0 = arith.constant 0 : i32
    %c0_i32_1 = arith.constant 0 : i32
    return %c0_i32, %c0_i32_0 : i32, i32
  }
}

</mosaic_0001>

<bundles_post_ra>
// kernel: ecg_forward.1
= control target key start
LH: loop header
LB: loop body
LE: loop exit
PB: predicated region body
PF: predicated region fallthrough
CT: control target
= control target key end

     0   :  { %19 = vsyncpa [#allocation4], 0  ;;  %s13341_s0 = inlined_call_operand.vmem [shape: f32[32,128], index: 0, kind: input, shape index: {}]   ;;  %s13342_s1 = inlined_call_operand.vmem [shape: bf16[128,64], index: 1, kind: input, shape index: {}]   ;;  %s13343_s2 = inlined_call_operand.hbm [shape: bf16[3,64,64], index: 2, kind: input, shape index: {}]   ;;  %s13344_s3 = inlined_call_operand.hbm [shape: bf16[3,64,128], index: 3, kind: input, shape index: {}]   ;;  %s13345_s4 = inlined_call_operand.vmem [shape: bf16[1,64,128], index: 4, kind: input, shape index: {}]   ;;  %s13346_s5 = inlined_call_operand.vmem [shape: bf16[3,128,64], index: 5, kind: input, shape index: {}]   ;;  %s13347_s6 = inlined_call_operand.hbm [shape: bf16[3,64,256], index: 6, kind: input, shape index: {}]   ;;  %s13348_s7 = inlined_call_operand.hbm [shape: bf16[1,128,256], index: 7, kind: input, shape index: {}]   ;;  %s13349_s8 = inlined_call_operand.vmem [shape: bf16[3,256,64], index: 8, kind: input, shape index: {}]   ;;  %s13350_s9 = inlined_call_operand.vmem [shape: bf16[3,64,320], index: 9, kind: input, shape index: {}]   ;;  %s13351_s10 = inlined_call_operand.vmem [shape: bf16[1,256,320], index: 10, kind: input, shape index: {}]   ;;  %s13352_s11 = inlined_call_operand.vmem [shape: bf16[5120,128], index: 11, kind: input, shape index: {}]   ;;  %s13353_s12 = inlined_call_operand.vmem [shape: bf16[128,6], index: 12, kind: input, shape index: {}]   ;;  %s13354_s13 = inlined_call_operand.hbm [shape: f32[18,512], index: 13, kind: input, shape index: {}]   ;;  %s13355_s14 = inlined_call_operand.hbm [shape: f32[2,6], index: 14, kind: output, shape index: {}]  }
   0x1   :  { %20 = vsyncpa [#allocation7], 0 }
   0x2   :  { %21 = vsyncpa [#allocation10], 0 }
   0x3   :  { %22 = vsyncpa [#allocation5], 0  ;;  %s10624_s29 = smov [#allocation6]   ;;  %s10484_s17 = scalar_lea.hbm %s13344_s3, 1536 }
   0x4   :  { %s44_s30 = sshll.u32 %s10624_s29, 4  ;;  %p10485_p0 = scmp.ne.s32.totalorder %s13344_s3, %s10484_s17  ;;  %s45_s30 = int_to_ptr.vmem [resolvable:$true] %s44_s30 }
   0x5   :  { %p10488_p1 = scmp.lt.u32.totalorder %s10484_s17, %s13344_s3 }
   0x7   :  { %p10490_p2 = pnand %p10488_p1, %p10485_p0 }
   0x9   :  { %10493 = shalt.err (!%p10490_p2)
}
   0xa   :  { %s10494_s22 = scalar_lea.vmem %s45_s30, 1536  ;;  %p10499_p4 = scmp.lt.s32.totalorder %s45_s30, %s45_s30 }
   0xb   :  { %p10495_p3 = scmp.ne.s32.totalorder %s45_s30, %s10494_s22  ;;  %p10500_p5 = scmp.lt.s32.totalorder %s10494_s22, %s10494_s22 }
   0xd   :  { %p10501_p6 = por %p10500_p5, %p10499_p4 }
   0xf   :  { %p10502_p7 = pnand %p10501_p6, %p10495_p3 }
  0x11   :  { %10505 = shalt.err (!%p10502_p7)
}
  0x12   :  { %s10625_s23 = smov 64   ;;  %s10626_s24 = smov 4  }
  0x13   :  { %50 = dma.hbm_to_vmem [thread:$0]  %s13344_s3, 1536, %s45_s30, [#allocation7], %s10625_s23, %s10625_s23, %s10626_s24  }
  0x14   :  { %s10627_s27 = smov [#allocation9]   ;;  %s10628_s29 = smov [#allocation3]  }
  0x15   :  { %s72_s28 = sshll.u32 %s10627_s27, 4  ;;  %s32_s15 = sshll.u32 %s10628_s29, 4  ;;  %s73_s28 = int_to_ptr.vmem [resolvable:$true] %s72_s28  ;;  %s33_s15 = int_to_ptr.vmem [resolvable:$true] %s32_s15 }
  0x16   :  { %s10506_s18 = scalar_lea.hbm %s13348_s7, 2048 }
  0x17   :  { %p10507_p8 = scmp.ne.s32.totalorder %s13348_s7, %s10506_s18  ;;  %p10510_p9 = scmp.lt.u32.totalorder %s10506_s18, %s13348_s7 }
  0x19   :  { %p10512_p10 = pnand %p10510_p9, %p10507_p8 }
  0x1b   :  { %10515 = shalt.err (!%p10512_p10)
}
  0x1c   :  { %s10516_s3 = scalar_lea.vmem %s73_s28, 2048  ;;  %p10521_p12 = scmp.lt.s32.totalorder %s73_s28, %s73_s28 }
  0x1d   :  { %p10517_p11 = scmp.ne.s32.totalorder %s73_s28, %s10516_s3  ;;  %p10522_p13 = scmp.lt.s32.totalorder %s10516_s3, %s10516_s3 }
  0x1f   :  { %p10523_p0 = por %p10522_p13, %p10521_p12 }
  0x21   :  { %p10524_p1 = pnand %p10523_p0, %p10517_p11 }
  0x23   :  { %10527 = shalt.err (!%p10524_p1)
}
  0x24   :  { %s10629_s30 = smov 128   ;;  %s10630_s25 = smov 8  }
  0x25   :  { %78 = dma.hbm_to_vmem [thread:$0]  %s13348_s7, 2048, %s73_s28, [#allocation10], %s10629_s30, %s10629_s30, %s10630_s25  }
  0x26   :  { %s10528_s17 = scalar_lea.hbm %s13343_s2, 1536 }
  0x27   :  { %p10529_p2 = scmp.ne.s32.totalorder %s13343_s2, %s10528_s17  ;;  %p10532_p3 = scmp.lt.u32.totalorder %s10528_s17, %s13343_s2 }
  0x29   :  { %p10534_p4 = pnand %p10532_p3, %p10529_p2 }
  0x2b   :  { %10537 = shalt.err (!%p10534_p4)
}
  0x2c   :  { %s10538_s22 = scalar_lea.vmem %s33_s15, 1536  ;;  %p10543_p6 = scmp.lt.s32.totalorder %s33_s15, %s33_s15 }
  0x2d   :  { %p10539_p5 = scmp.ne.s32.totalorder %s33_s15, %s10538_s22  ;;  %p10544_p7 = scmp.lt.s32.totalorder %s10538_s22, %s10538_s22 }
  0x2f   :  { %p10545_p8 = por %p10544_p7, %p10543_p6 }
  0x31   :  { %p10546_p9 = pnand %p10545_p8, %p10539_p5 }
  0x33   :  { %10549 = shalt.err (!%p10546_p9)
}
  0x34   :  { %38 = dma.hbm_to_vmem [thread:$0]  %s13343_s2, 1536, %s33_s15, [#allocation4], %s10625_s23, %s10625_s23, %s10626_s24  }
  0x35   :  { %s10631_s3 = smov [#allocation8]   ;;  %s10632_s27 = smov [#allocation11]  }
  0x36   :  { %s60_s26 = sshll.u32 %s10631_s3, 4  ;;  %s94_s29 = sshll.u32 %s10632_s27, 4  ;;  %s61_s26 = int_to_ptr.vmem [resolvable:$true] %s60_s26  ;;  %s95_s29 = int_to_ptr.vmem [resolvable:$true] %s94_s29 }
  0x37   :  { %s10550_s18 = scalar_lea.hbm %s13347_s6, 3072 }
  0x38   :  { %p10551_p10 = scmp.ne.s32.totalorder %s13347_s6, %s10550_s18  ;;  %p10554_p11 = scmp.lt.u32.totalorder %s10550_s18, %s13347_s6 }
  0x3a   :  { %p10556_p12 = pnand %p10554_p11, %p10551_p10 }
  0x3c   :  { %10559 = shalt.err (!%p10556_p12)
}
  0x3d   :  { %s10560_s2 = scalar_lea.vmem %s61_s26, 3072  ;;  %p10565_p0 = scmp.lt.s32.totalorder %s61_s26, %s61_s26 }
  0x3e   :  { %p10561_p13 = scmp.ne.s32.totalorder %s61_s26, %s10560_s2  ;;  %p10566_p1 = scmp.lt.s32.totalorder %s10560_s2, %s10560_s2 }
  0x40   :  { %p10567_p2 = por %p10566_p1, %p10565_p0 }
  0x42   :  { %p10568_p3 = pnand %p10567_p2, %p10561_p13 }
  0x44   :  { %10571 = shalt.err (!%p10568_p3)
}
  0x45   :  { %66 = dma.hbm_to_vmem [thread:$0]  %s13347_s6, 3072, %s61_s26, [#allocation7], %s10629_s30, %s10629_s30, %s10630_s25  }
  0x46   :  { %s10572_s3 = scalar_lea.hbm %s13354_s13, 1536 }
  0x47   :  { %p10573_p4 = scmp.ne.s32.totalorder %s13354_s13, %s10572_s3  ;;  %p10576_p5 = scmp.lt.u32.totalorder %s10572_s3, %s13354_s13 }
  0x49   :  { %p10578_p6 = pnand %p10576_p5, %p10573_p4 }
  0x4b   :  { %10581 = shalt.err (!%p10578_p6)
}
  0x4c   :  { %s10582_s19 = scalar_lea.vmem %s95_s29, 1536  ;;  %p10587_p8 = scmp.lt.s32.totalorder %s95_s29, %s95_s29 }
  0x4d   :  { %p10583_p7 = scmp.ne.s32.totalorder %s95_s29, %s10582_s19  ;;  %p10588_p9 = scmp.lt.s32.totalorder %s10582_s19, %s10582_s19 }
  0x4f   :  { %p10589_p10 = por %p10588_p9, %p10587_p8 }
  0x51   :  { %p10590_p11 = pnand %p10589_p10, %p10583_p7 }
  0x53   :  { %10593 = shalt.err (!%p10590_p11)
}
  0x54   :  { %s10633_s6 = smov 512   ;;  %s10634_s30 = smov 32  }
  0x55   :  { %100 = dma.hbm_to_vmem [thread:$0]  %s13354_s13, 1536, %s95_s29, [#allocation10], %s10633_s6, %s10633_s6, %s10634_s30  }
  0x56   :  { %10616 = dma.done.wait [#allocation4], 1536  }
  0x57   :  { %10617 = vsyncadd [#allocation4], 4294965760 }
  0x58   :  { %10618 = dma.done.wait [#allocation7], 4608  }
  0x59   :  { %10619 = vsyncadd [#allocation7], 4294962688 }
  0x5a   :  { %10620 = dma.done.wait [#allocation10], 3584  }
  0x5b   :  { %10621 = vsyncadd [#allocation10], 4294963712  ;;  %v9867_v0 = vld [vmem:[%s13342_s1] sm:$0xff]   ;;  %v9868_v1 = vld [vmem:[%s13342_s1 + $0x8] sm:$0xff]   ;;  %v13356_v19 = vlaneseq  ;;  %vm369_vm5 = vcmask 523264   ;;  %vm10635_vm7 = vmmov 1  }
  0x5c   :  { %9505 = vmatprep.subr.bf16.mxu0 %v9867_v0  ;;  %v9869_v2 = vld [vmem:[%s13342_s1 + $0x10] sm:$0xff]   ;;  %v9870_v3 = vld [vmem:[%s13342_s1 + $0x18] sm:$0xff]   ;;  %v178_v4 = vld [vmem:[%s13341_s0] sm:$0xff] }
  0x5d   :  { %9506 = vmatpush3.bf16.msra.mxu0 %v9867_v0  ;;  %v179_v5 = vld [vmem:[%s13341_s0 + $0x8] sm:$0xff]  ;;  %v9871_v7 = vld [vmem:[%s13342_s1 + $0x20] sm:$0xff]   ;;  %v9875_v8 = vld [vmem:[#allocation3] sm:$0xff]   ;;  %v10829_v20 = vshrl.u32 %v13356_v19, 7 }
  0x5e   :  { %9507 = vmatprep.subr.bf16.mxu0 %v9868_v1  ;;  %v198_v6 = vpack.c.bf16 %v179_v5, %v178_v4  ;;  %9525 = vmatprep.subr.bf16.mxu1 %v9875_v8  ;;  %v9872_v9 = vld [vmem:[%s13342_s1 + $0x28] sm:$0xff]   ;;  %v9873_v10 = vld [vmem:[%s13342_s1 + $0x30] sm:$0xff]   ;;  %v9874_v11 = vld [vmem:[%s13342_s1 + $0x38] sm:$0xff]  }
  0x5f   :  { %9526 = vmatpush3.bf16.msra.mxu1 %v9875_v8  ;;  %v180_v12 = vld [vmem:[%s13341_s0 + $0x10] sm:$0xff]  ;;  %v181_v13 = vld [vmem:[%s13341_s0 + $0x18] sm:$0xff]  ;;  %v9877_v16 = vld [vmem:[#allocation3 + $0x10] sm:$0xff]   ;;  %v121_v21 = vadd.s32 24, %v10829_v20  ;;  %v120_v23 = vadd.s32 16, %v10829_v20  ;;  %v126_v24 = vand.u32 15, %v10829_v20 }
  0x60   :  { %9521 = vmatprep.mubr.bf16.mxu0 %v198_v6  ;;  %v199_v14 = vpack.c.bf16 %v181_v13, %v180_v12  ;;  %v9876_v15 = vld [vmem:[#allocation3 + $0x8] sm:$0xff]   ;;  %v9878_v17 = vld [vmem:[#allocation3 + $0x18] sm:$0xff]   ;;  %v10825_v18 = vld [vmem:[#allocation3 + $0x20] sm:$0xff]   ;;  %v119_v26 = vadd.s32 8, %v10829_v20  ;;  %vm318_vm0 = vcmp.lt.s32.totalorder %v10829_v20, 1  ;;  %vm508_vm1 = vcmp.lt.s32.totalorder %v10829_v20, 7 }
  0x61   :  { %9508 = vmatpush3.bf16.msra.mxu0 %v9868_v1  ;;  %9527 = vmatprep.subr.bf16.mxu1 %v9876_v15  ;;  %v147_v22 = vand.u32 15, %v121_v21  ;;  %v140_v25 = vand.u32 15, %v120_v23  ;;  %v9887_v27 = vld [vmem:[#allocation6] sm:$0xff]   ;;  %vm10841_vm3 = vcmp.ge.s32.totalorder %v126_v24, 1  ;;  %v9880_v5 = vld [vmem:[#allocation3 + $0x28] sm:$0xff]   ;;  %v9885_v13 = vld [vmem:[#allocation3 + $0x50] sm:$0xff]  }
  0x62   :  { %9509 = vmatprep.subr.bf16.mxu0 %v9869_v2  ;;  %v200_v28 = vld [vmem:[#allocation11] ss:$0 sm:$0xff]  ;;  %v133_v33 = vand.u32 15, %v119_v26  ;;  %v9884_v12 = vld [vmem:[#allocation3 + $0x48] sm:$0xff]   ;;  %v9903_v21 = vld [vmem:[%s13346_s5] sm:$0xff]  }
  0x63   :  { %9528 = vmatpush3.bf16.msra.mxu1 %v9876_v15  ;;  %vm10837_vm2 = vcmp.le.s32.totalorder %v147_v22, 14  ;;  %vm10845_vm4 = vcmp.ge.s32.totalorder %v140_v25, 1  ;;  %v9888_v15 = vld [vmem:[#allocation6 + $0x8] sm:$0xff]   ;;  %v9904_v22 = vld [vmem:[%s13346_s5 + $0x8] sm:$0xff]   ;;  %v9905_v23 = vld [vmem:[%s13346_s5 + $0x10] sm:$0xff]  }
  0x64   :  { %9529 = vmatprep.subr.bf16.mxu1 %v9877_v16  ;;  %vm10849_vm6 = vcmp.le.s32.totalorder %v133_v33, 14  ;;  %v9906_v24 = vld [vmem:[%s13346_s5 + $0x18] sm:$0xff]   ;;  %v302_v25 = vld [vmem:[#allocation11 + $0x1] ss:$0 sm:$0xff]  ;;  %vm11012_vm8 = vmpackc.low %vm10635_vm7, %vm10841_vm3 }
  0x65   :  { %9510 = vmatpush3.bf16.msra.mxu0 %v9869_v2  ;;  %vm11022_vm9 = vmpackc.low %vm10635_vm7, %vm10845_vm4  ;;  %v10058_v36 = vld [vmem:[%s13350_s9 + $0x80] ss:$12 sps:$4 sm:$0xff]   ;;  %v10055_v30 = vld [vmem:[%s13350_s9 + $0x78] ss:$12 sps:$4 sm:$0xff]  }
  0x66   :  { %9511 = vmatprep.subr.bf16.mxu0 %v9870_v3  ;;  %vm11090_vm10 = vmpackc.low %vm10849_vm6, %vm10635_vm7 }
  0x67   :  { %9530 = vmatpush3.bf16.msra.mxu1 %v9877_v16  ;;  %v9889_v16 = vld [vmem:[#allocation6 + $0x10] sm:$0xff]   ;;  %vm11120_vm11 = vmpackc.low %vm10837_vm2, %vm10635_vm7 }
  0x68   :  { %9531 = vmatprep.subr.bf16.mxu1 %v9878_v17 }
  0x69   :  { %9512 = vmatpush3.bf16.msra.mxu0 %v9870_v3 }
  0x6a   :  { %9513 = vmatprep.subr.bf16.mxu0 %v9871_v7 }
  0x6b   :  { %9532 = vmatpush3.bf16.msra.mxu1 %v9878_v17  ;;  %v9890_v17 = vld [vmem:[#allocation6 + $0x18] sm:$0xff]  }
  0x6c   :  { %9537 = vmatprep.subr.bf16.mxu1 %v10825_v18 }
  0x6d   :  { %9514 = vmatpush3.bf16.msra.mxu0 %v9871_v7 }
  0x6e   :  { %9515 = vmatprep.subr.bf16.mxu0 %v9872_v9 }
  0x71   :  { %9516 = vmatpush3.bf16.msra.mxu0 %v9872_v9  ;;  %v9881_v9 = vld [vmem:[#allocation3 + $0x30] sm:$0xff]  }
  0x72   :  { %9517 = vmatprep.subr.bf16.mxu0 %v9873_v10 }
  0x75   :  { %9518 = vmatpush3.bf16.msra.mxu0 %v9873_v10  ;;  %v9882_v10 = vld [vmem:[#allocation3 + $0x38] sm:$0xff]  }
  0x76   :  { %9519 = vmatprep.subr.bf16.mxu0 %v9874_v11 }
  0x79   :  { %9520 = vmatpush3.bf16.msra.mxu0 %v9874_v11  ;;  %v9883_v11 = vld [vmem:[#allocation3 + $0x40] sm:$0xff]  }
  0x7a   :  { %9561 = vmatprep.subr.bf16.mxu0 %v9887_v27 }
  0x7c   :  { %9522 = vmatmul.mubr.bf16.vlgmr.msra.gmra.mrb[0].mxu0 %v199_v14  ;;  %v9886_v14 = vld [vmem:[#allocation3 + $0x58] sm:$0xff]  }
  0x7d   :  { %9562 = vmatpush3.bf16.msra.mxu0 %v9887_v27 }
  0x7e   :  { %9563 = vmatprep.subr.bf16.mxu0 %v9888_v15 }
  0x81   :  { %9564 = vmatpush3.bf16.msra.mxu0 %v9888_v15  ;;  %v9901_v15 = vld [vmem:[%s13345_s4 + $0x10] sm:$0xff]  }
  0x82   :  { %9565 = vmatprep.subr.bf16.mxu0 %v9889_v16 }
  0x85   :  { %9566 = vmatpush3.bf16.msra.mxu0 %v9889_v16  ;;  %v9902_v16 = vld [vmem:[%s13345_s4 + $0x18] sm:$0xff]  }
  0x86   :  { %9567 = vmatprep.subr.bf16.mxu0 %v9890_v17 }
  0x89   :  { %9568 = vmatpush3.bf16.msra.mxu0 %v9890_v17  ;;  %v9908_v17 = vld [vmem:[%s13346_s5 + $0x28] sm:$0xff]  }
 0x14f   :  { %v9523_v29 = vpop.f32.mrb[0].mxu0 }
 0x150   :  { %v292_v31 = vadd.f32 %v9523_v29, %v200_v28  ;;  %v283_v32 = vpop.f32.mrb[1].mxu0 }
 0x151   :  { %v284_v34 = vadd.f32 %v283_v32, %v200_v28  ;;  %v9524_v35 = vpop.f32.mrb[2].mxu0 }
 0x152   :  { %v300_v37 = vmax.f32 %v292_v31, 0.0  ;;  %v295_v38 = vadd.f32 %v9524_v35, %v200_v28  ;;  %v286_v39 = vpop.f32.mrb[3].mxu0 }
 0x153   :  { %v298_v40 = vmax.f32 %v284_v34, 0.0  ;;  %v287_v41 = vadd.f32 %v286_v39, %v200_v28 }
 0x154   :  { %v316_v43 = vrot.slane %v300_v37, 7  ;;  %v301_v44 = vmax.f32 %v295_v38, 0.0  ;;  %v506_v46 = vrot.slane %v300_v37, 1 }
 0x155   :  { %v314_v47 = vrot.slane %v298_v40, 7  ;;  %v504_v48 = vrot.slane %v298_v40, 1  ;;  %v299_v49 = vmax.f32 %v287_v41, 0.0 }
 0x156   :  { %v10853_v50 = vpack.c.bf16 %v301_v44, %v300_v37  ;;  %v317_v51 = vrot.slane %v301_v44, 7  ;;  %v507_v52 = vrot.slane %v301_v44, 1 }
 0x157   :  { %v10855_v53 = vpack.c.bf16 %v299_v49, %v298_v40  ;;  %v315_v54 = vrot.slane %v299_v49, 7  ;;  %v505_v55 = vrot.slane %v299_v49, 1 }
 0x158   :  { %v509_v56 = vsel %vm508_vm1, %v506_v46, %v507_v52  ;;  %v512_v57 = vsel %vm508_vm1, %v507_v52, %v504_v48  ;;  %v322_v58 = vsel %vm318_vm0, %v317_v51, %v314_v47  ;;  %v319_v59 = vsel %vm318_vm0, %v316_v43, %v317_v51 }
 0x159   :  { %v524_v60 = vsel %vm10837_vm2, %v512_v57, 0.0  ;;  %v321_v61 = vsel %vm318_vm0, %v314_v47, %v315_v54  ;;  %v331_v62 = vsel %vm10841_vm3, %v322_v58, 0.0  ;;  %v320_v63 = vsel %vm318_vm0, %v315_v54, %v316_v43 }
 0x15a   :  { %v535_v0 = vpack.c.bf16 %v524_v60, %v509_v56  ;;  %v343_v1 = vpack.c.bf16 %v321_v61, %v331_v62  ;;  %v333_v2 = vsel %vm10845_vm4, %v320_v63, 0.0  ;;  %v510_v3 = vsel %vm508_vm1, %v505_v55, %v506_v46 }
 0x15b   :  { %v344_v4 = vpack.c.bf16 %v319_v59, %v333_v2  ;;  %v511_v6 = vsel %vm508_vm1, %v504_v48, %v505_v55  ;;  %v522_v7 = vsel %vm10849_vm6, %v510_v3, 0.0  ;;  %v9892_v3 = vld [vmem:[#allocation6 + $0x28] sm:$0xff]  }
 0x15c   :  { %9533 = vmatprep.mubr.msk.bf16.mxu1 %vm369_vm5, %v343_v1  ;;  %v534_v8 = vpack.c.bf16 %v522_v7, %v511_v6  ;;  %v9893_v7 = vld [vmem:[#allocation6 + $0x30] sm:$0xff]  }
 0x15d   :  { %9534 = vmatmul.mubr.msk.bf16.vlgmr.msra.gmra.mrb[0].mxu1 %vm369_vm5, %v344_v4 }
 0x15e   :  { %9538 = vmatpush3.bf16.msra.mxu1 %v10825_v18  ;;  %9545 = vmatprep.mubr.msk.bf16.mxu1 %vm369_vm5, %v10855_v53  ;;  %v9891_v18 = vld [vmem:[#allocation6 + $0x20] sm:$0xff]  }
 0x15f   :  { %9539 = vmatprep.subr.bf16.mxu1 %v9880_v5  ;;  %9573 = vmatprep.subr.bf16.mxu0 %v9891_v18 }
 0x162   :  { %9540 = vmatpush3.bf16.msra.mxu1 %v9880_v5 }
 0x163   :  { %9541 = vmatprep.subr.bf16.mxu1 %v9881_v9 }
 0x166   :  { %9542 = vmatpush3.bf16.msra.mxu1 %v9881_v9  ;;  %v9895_v9 = vld [vmem:[#allocation6 + $0x40] sm:$0xff]  }
 0x167   :  { %9543 = vmatprep.subr.bf16.mxu1 %v9882_v10 }
 0x16a   :  { %9544 = vmatpush3.bf16.msra.mxu1 %v9882_v10  ;;  %v9896_v10 = vld [vmem:[#allocation6 + $0x48] sm:$0xff]  }
 0x16b   :  { %9549 = vmatprep.subr.bf16.mxu1 %v9883_v11 }
 0x16d   :  { %9546 = vmatmul.mubr.msk.bf16.vlgmr.msra.gmra.mrb[0].mxu1 %vm369_vm5, %v10853_v50 }
 0x16e   :  { %9550 = vmatpush3.bf16.msra.mxu1 %v9883_v11  ;;  %9557 = vmatprep.mubr.msk.bf16.mxu1 %vm369_vm5, %v534_v8  ;;  %v9894_v8 = vld [vmem:[#allocation6 + $0x38] sm:$0xff]   ;;  %v9897_v11 = vld [vmem:[#allocation6 + $0x50] sm:$0xff]  }
 0x16f   :  { %9551 = vmatprep.subr.bf16.mxu1 %v9884_v12 }
 0x172   :  { %9552 = vmatpush3.bf16.msra.mxu1 %v9884_v12  ;;  %v9898_v12 = vld [vmem:[#allocation6 + $0x58] sm:$0xff]  }
 0x173   :  { %9553 = vmatprep.subr.bf16.mxu1 %v9885_v13 }
 0x176   :  { %9554 = vmatpush3.bf16.msra.mxu1 %v9885_v13  ;;  %v9899_v13 = vld [vmem:[%s13345_s4] sm:$0xff]  }
 0x177   :  { %9555 = vmatprep.subr.bf16.mxu1 %v9886_v14 }
 0x17a   :  { %9556 = vmatpush3.bf16.msra.mxu1 %v9886_v14  ;;  %v9900_v14 = vld [vmem:[%s13345_s4 + $0x8] sm:$0xff]  }
 0x17b   :  { %9609 = vmatprep.subr.bf16.mxu1 %v9903_v21 }
 0x17d   :  { %9558 = vmatmul.mubr.msk.bf16.vlgmr.msra.gmra.mrb[0].mxu1 %vm369_vm5, %v535_v0 }
 0x17e   :  { %9610 = vmatpush3.bf16.msra.mxu1 %v9903_v21  ;;  %v10963_v21 = vld [vmem:[%s13346_s5 + $0x40] sm:$0xff]  }
 0x17f   :  { %9611 = vmatprep.subr.bf16.mxu1 %v9904_v22 }
 0x182   :  { %9612 = vmatpush3.bf16.msra.mxu1 %v9904_v22  ;;  %v9927_v22 = vld [vmem:[#allocation8] ss:$8 sps:$4 sm:$0xff]  }
 0x183   :  { %9613 = vmatprep.subr.bf16.mxu1 %v9905_v23 }
 0x186   :  { %9614 = vmatpush3.bf16.msra.mxu1 %v9905_v23  ;;  %v9929_v23 = vld [vmem:[#allocation8 + $0x4] ss:$8 sps:$4 sm:$0xff]  }
 0x187   :  { %9615 = vmatprep.subr.bf16.mxu1 %v9906_v24 }
 0x18a   :  { %9616 = vmatpush3.bf16.msra.mxu1 %v9906_v24  ;;  %v627_v24 = vld [vmem:[#allocation11 + $0x2] ss:$0 sm:$0xff] }
 0x250   :  { %v9559_v26 = vpop.f32.mrb[0].mxu1 }
 0x251   :  { %v621_v27 = vadd.f32 %v9559_v26, %v302_v25  ;;  %v600_v28 = vpop.f32.mrb[1].mxu1 }
 0x252   :  { %v619_v29 = vadd.f32 %v600_v28, %v302_v25  ;;  %v9560_v31 = vpop.f32.mrb[2].mxu1 }
 0x253   :  { %v625_v32 = vmax.f32 %v621_v27, 0.0  ;;  %v622_v33 = vadd.f32 %v9560_v31, %v302_v25  ;;  %v603_v34 = vpop.f32.mrb[3].mxu1  ;;  %v1015_v31 = vld [vmem:[#allocation11 + $0x4] ss:$0 sm:$0xff] }
 0x254   :  { %v623_v35 = vmax.f32 %v619_v29, 0.0  ;;  %v620_v37 = vadd.f32 %v603_v34, %v302_v25  ;;  %v937_v25 = vld [vmem:[#allocation11 + $0x3] ss:$0 sm:$0xff] }
 0x255   :  { %v626_v38 = vmax.f32 %v622_v33, 0.0  ;;  %v641_v39 = vrot.slane %v625_v32, 7  ;;  %v821_v44 = vrot.slane %v625_v32, 1  ;;  %v9731_v26 = vadd.f32 %v937_v25, %v627_v24 }
 0x256   :  { %v639_v40 = vrot.slane %v623_v35, 7  ;;  %v819_v41 = vrot.slane %v623_v35, 1  ;;  %v624_v43 = vmax.f32 %v620_v37, 0.0 }
 0x257   :  { %v638_v46 = vpack.c.bf16 %v626_v38, %v625_v32  ;;  %v642_v47 = vrot.slane %v626_v38, 7  ;;  %v822_v48 = vrot.slane %v626_v38, 1  ;;  %v1020_v38 = vld [vmem:[#allocation11 + $0x5] ss:$0 sm:$0xff] }
 0x258   :  { %v637_v49 = vpack.c.bf16 %v624_v43, %v623_v35  ;;  %v640_v51 = vrot.slane %v624_v43, 7  ;;  %v820_v52 = vrot.slane %v624_v43, 1 }
 0x259   :  { %v643_v54 = vsel %vm318_vm0, %v641_v39, %v642_v47  ;;  %v823_v55 = vsel %vm508_vm1, %v821_v44, %v822_v48  ;;  %v826_v56 = vsel %vm508_vm1, %v822_v48, %v819_v41  ;;  %v646_v57 = vsel %vm318_vm0, %v642_v47, %v639_v40 }
 0x25a   :  { %v830_v58 = vsel %vm10837_vm2, %v826_v56, 0.0  ;;  %v644_v59 = vsel %vm318_vm0, %v640_v51, %v641_v39  ;;  %v645_v60 = vsel %vm318_vm0, %v639_v40, %v640_v51  ;;  %v647_v61 = vsel %vm10841_vm3, %v646_v57, 0.0 }
 0x25b   :  { %v841_v62 = vpack.c.bf16 %v830_v58, %v823_v55  ;;  %v649_v63 = vsel %vm10845_vm4, %v644_v59, 0.0  ;;  %v659_v0 = vpack.c.bf16 %v645_v60, %v647_v61  ;;  %v824_v1 = vsel %vm508_vm1, %v820_v52, %v821_v44 }
 0x25c   :  { %v660_v2 = vpack.c.bf16 %v643_v54, %v649_v63  ;;  %v825_v4 = vsel %vm508_vm1, %v819_v41, %v820_v52  ;;  %v828_v5 = vsel %vm10849_vm6, %v824_v1, 0.0 }
 0x25d   :  { %9569 = vmatprep.mubr.msk.bf16.mxu0 %vm369_vm5, %v659_v0  ;;  %v840_v6 = vpack.c.bf16 %v828_v5, %v825_v4 }
 0x25e   :  { %9570 = vmatmul.mubr.msk.bf16.vlgmr.msra.gmra.mrb[4].mxu0 %vm369_vm5, %v660_v2 }
 0x25f   :  { %9574 = vmatpush3.bf16.msra.mxu0 %v9891_v18  ;;  %9581 = vmatprep.mubr.msk.bf16.mxu0 %vm369_vm5, %v637_v49  ;;  %v9909_v18 = vld [vmem:[%s13346_s5 + $0x30] sm:$0xff]  }
 0x260   :  { %9575 = vmatprep.subr.bf16.mxu0 %v9892_v3 }
 0x263   :  { %9576 = vmatpush3.bf16.msra.mxu0 %v9892_v3 }
 0x264   :  { %9577 = vmatprep.subr.bf16.mxu0 %v9893_v7 }
 0x267   :  { %9578 = vmatpush3.bf16.msra.mxu0 %v9893_v7 }
 0x268   :  { %9579 = vmatprep.subr.bf16.mxu0 %v9894_v8 }
 0x26b   :  { %9580 = vmatpush3.bf16.msra.mxu0 %v9894_v8 }
 0x26c   :  { %9585 = vmatprep.subr.bf16.mxu0 %v9895_v9 }
 0x26e   :  { %9582 = vmatmul.mubr.msk.bf16.vlgmr.msra.gmra.mrb[4].mxu0 %vm369_vm5, %v638_v46 }
 0x26f   :  { %9586 = vmatpush3.bf16.msra.mxu0 %v9895_v9  ;;  %9593 = vmatprep.mubr.msk.bf16.mxu0 %vm369_vm5, %v840_v6 }
 0x270   :  { %9587 = vmatprep.subr.bf16.mxu0 %v9896_v10 }
 0x273   :  { %9588 = vmatpush3.bf16.msra.mxu0 %v9896_v10 }
 0x274   :  { %9589 = vmatprep.subr.bf16.mxu0 %v9897_v11 }
 0x277   :  { %9590 = vmatpush3.bf16.msra.mxu0 %v9897_v11 }
 0x278   :  { %9591 = vmatprep.subr.bf16.mxu0 %v9898_v12 }
 0x27b   :  { %9592 = vmatpush3.bf16.msra.mxu0 %v9898_v12 }
 0x27c   :  { %9597 = vmatprep.subr.bf16.mxu0 %v9899_v13 }
 0x27e   :  { %9594 = vmatmul.mubr.msk.bf16.vlgmr.msra.gmra.mrb[4].mxu0 %vm369_vm5, %v841_v62 }
 0x27f   :  { %9598 = vmatpush3.bf16.msra.mxu0 %v9899_v13  ;;  %9605 = vmatprep.mubr.msk.bf16.mxu0 %vm369_vm5, %v10855_v53  ;;  %v9907_v53 = vld [vmem:[%s13346_s5 + $0x20] sm:$0xff]  }
 0x280   :  { %9599 = vmatprep.subr.bf16.mxu0 %v9900_v14  ;;  %9617 = vmatprep.subr.bf16.mxu1 %v9907_v53 }
 0x281   :  { %9618 = vmatpush3.bf16.msra.mxu1 %v9907_v53 }
 0x282   :  { %9619 = vmatprep.subr.bf16.mxu1 %v9908_v17 }
 0x283   :  { %9600 = vmatpush3.bf16.msra.mxu0 %v9900_v14 }
 0x284   :  { %9601 = vmatprep.subr.bf16.mxu0 %v9901_v15 }
 0x285   :  { %9620 = vmatpush3.bf16.msra.mxu1 %v9908_v17 }
 0x286   :  { %9621 = vmatprep.subr.bf16.mxu1 %v9909_v18 }
 0x287   :  { %9602 = vmatpush3.bf16.msra.mxu0 %v9901_v15 }
 0x288   :  { %9603 = vmatprep.subr.bf16.mxu0 %v9902_v16 }
 0x289   :  { %9622 = vmatpush3.bf16.msra.mxu1 %v9909_v18 }
 0x28b   :  { %9604 = vmatpush3.bf16.msra.mxu0 %v9902_v16 }
 0x28c   :  { %1494 = vmatprep.subr.bf16.mxu0 %v9929_v23 }
 0x28e   :  { %9606 = vmatmul.mubr.msk.bf16.vlgmr.msra.gmra.mrb[4].mxu0 %vm369_vm5, %v10853_v50  ;;  %v9910_v50 = vld [vmem:[%s13346_s5 + $0x38] sm:$0xff]  }
 0x28f   :  { %9623 = vmatprep.subr.bf16.mxu1 %v9910_v50  ;;  %1495 = vmatpush1.bf16.msra.mxu0 %v9927_v22 }
 0x290   :  { %9624 = vmatpush3.bf16.msra.mxu1 %v9910_v50 }
 0x291   :  { %9629 = vmatprep.subr.bf16.mxu1 %v10963_v21 }
 0x361   :  { %v9607_v27 = vpop.f32.mrb[4].mxu0 }
 0x362   :  { %v9725_v28 = vadd.f32 %v9607_v27, %v627_v24  ;;  %v996_v29 = vpop.f32.mrb[5].mxu0 }
 0x363   :  { %v9727_v32 = vadd.f32 %v996_v29, %v627_v24  ;;  %v9608_v33 = vpop.f32.mrb[6].mxu0 }
 0x364   :  { %v10966_v34 = vadd.f32 %v9725_v28, %v937_v25  ;;  %v10968_v35 = vadd.f32 %v9731_v26, %v9608_v33  ;;  %v999_v37 = vpop.f32.mrb[7].mxu0  ;;  %v9912_v33 = vld [vmem:[%s13346_s5 + $0x48] sm:$0xff]   ;;  %v10027_v28 = vld [vmem:[%s13349_s8 + $0x160] sm:$0xff]  }
 0x365   :  { %v10970_v39 = vadd.f32 %v9727_v32, %v937_v25  ;;  %v9732_v40 = vadd.f32 %v9731_v26, %v999_v37 }
 0x366   :  { %v1018_v41 = vmul.f32 %v10966_v34, %v1015_v31  ;;  %v1797_v43 = vrot.slane %v10966_v34, 7  ;;  %v1813_v44 = vrot.slane %v10966_v34, 1  ;;  %v1019_v46 = vmul.f32 %v10968_v35, %v1015_v31 }
 0x367   :  { %v1016_v47 = vmul.f32 %v10970_v39, %v1015_v31  ;;  %v1795_v48 = vrot.slane %v10970_v39, 7  ;;  %v1811_v49 = vrot.slane %v10970_v39, 1  ;;  %v1798_v51 = vrot.slane %v10968_v35, 7 }
 0x368   :  { %v1023_v52 = vadd.f32 %v1020_v38, %v1018_v41  ;;  %v1024_v54 = vadd.f32 %v1020_v38, %v1019_v46  ;;  %v1814_v55 = vrot.slane %v10968_v35, 1  ;;  %v1017_v56 = vmul.f32 %v9732_v40, %v1015_v31 }
 0x369   :  { %v1021_v57 = vadd.f32 %v1020_v38, %v1016_v47  ;;  %v1802_v58 = vsel %vm318_vm0, %v1798_v51, %v1795_v48  ;;  %v1796_v59 = vrot.slane %v9732_v40, 7  ;;  %v1812_v60 = vrot.slane %v9732_v40, 1 }
 0x36a   :  { %v10983_v61 = vmax.f32 %v1023_v52, 0.0  ;;  %v10985_v62 = vmax.f32 %v1024_v54, 0.0  ;;  %v1803_v63 = vsel %vm10841_vm3, %v1802_v58, -inf  ;;  %v1022_v0 = vadd.f32 %v1020_v38, %v1017_v56 }
 0x36b   :  { %v1025_v1 = vmax.f32 %v1021_v57, 0.0  ;;  %v1807_v2 = vmax.f32 %v1803_v63, %v10970_v39  ;;  %v1801_v3 = vsel %vm318_vm0, %v1795_v48, %v1796_v59  ;;  %v1816_v4 = vsel %vm508_vm1, %v1812_v60, %v1813_v44  ;;  %v9921_v63 = vld [vmem:[%s13346_s5 + $0x90] sm:$0xff]  }
 0x36c   :  { %v1276_v5 = vrot.slane %v10985_v62, 1  ;;  %v1026_v6 = vmax.f32 %v1022_v0, 0.0  ;;  %v1808_v7 = vmax.f32 %v1801_v3, %v9732_v40  ;;  %v1817_v8 = vsel %vm508_vm1, %v1811_v49, %v1812_v60  ;;  %v9919_v60 = vld [vmem:[%s13346_s5 + $0x80] sm:$0xff]   ;;  %v9922_v0 = vld [vmem:[%s13346_s5 + $0x98] sm:$0xff]   ;;  %v9925_v3 = vld [vmem:[%s13346_s5 + $0xb0] sm:$0xff]  }
 0x36d   :  { %v1820_v9 = vsel %vm10849_vm6, %v1816_v4, -inf  ;;  %v1049_v10 = vrot.slane %v1025_v1, 7  ;;  %v1052_v11 = vrot.slane %v10985_v62, 7  ;;  %v1051_v12 = vrot.slane %v10983_v61, 7  ;;  %v9926_v4 = vld [vmem:[%s13346_s5 + $0xb8] sm:$0xff]  }
 0x36e   :  { %v1824_v13 = vmax.f32 %v1808_v7, %v1820_v9  ;;  %v1050_v14 = vrot.slane %v1026_v6, 7  ;;  %v1047_v15 = vpack.c.bf16 %v1026_v6, %v1025_v1  ;;  %v1048_v16 = vpack.c.bf16 %v10985_v62, %v10983_v61  ;;  %v9920_v62 = vld [vmem:[%s13346_s5 + $0x88] sm:$0xff]   ;;  %v9933_v9 = vld [vmem:[#allocation8 + $0x20] ss:$8 sps:$4 sm:$0xff]  }
 0x36f   :  { %v1056_v53 = vsel %vm318_vm0, %v1052_v11, %v1049_v10  ;;  %v1053_v17 = vsel %vm318_vm0, %v1051_v12, %v1052_v11  ;;  %v1273_v18 = vrot.slane %v1025_v1, 1  ;;  %v1274_v50 = vrot.slane %v1026_v6, 1  ;;  %v9923_v1 = vld [vmem:[%s13346_s5 + $0xa0] sm:$0xff]  }
 0x370   :  { %v1055_v22 = vsel %vm318_vm0, %v1049_v10, %v1050_v14  ;;  %v1054_v24 = vsel %vm318_vm0, %v1050_v14, %v1051_v12  ;;  %v1275_v25 = vrot.slane %v10983_v61, 1  ;;  %v1823_v26 = vmax.f32 %v1807_v2, %v1817_v8  ;;  %v9924_v2 = vld [vmem:[%s13346_s5 + $0xa8] sm:$0xff]   ;;  %v9935_v8 = vld [vmem:[#allocation8 + $0x24] ss:$8 sps:$4 sm:$0xff]   ;;  %v9993_v14 = vld [vmem:[%s13349_s8 + $0x40] sm:$0xff]  }
 0x371   :  { %v8163_v27 = vpack.c.bf16 %v1055_v22, %v1056_v53  ;;  %v8166_v29 = vpack.c.bf16 %v1053_v17, %v1054_v24  ;;  %v1279_v31 = vsel %vm508_vm1, %v1273_v18, %v1274_v50  ;;  %v11030_v32 = vsel %vm508_vm1, %v1276_v5, %v1273_v18  ;;  %v9932_v6 = vld [vmem:[#allocation8 + $0x14] ss:$8 sps:$4 sm:$0xff]   ;;  %v9930_v7 = vld [vmem:[#allocation8 + $0x10] ss:$8 sps:$4 sm:$0xff]   ;;  %v9941_v12 = vld [vmem:[#allocation8 + $0x44] ss:$8 sps:$4 sm:$0xff]  }
 0x372   :  { %v1278_v37 = vsel %vm508_vm1, %v1274_v50, %v1275_v25  ;;  %v11039_v38 = vsel %vm508_vm1, %v1275_v25, %v1276_v5  ;;  %v11041_v39 = vpack.c.bf16 %v1824_v13, %v1823_v26  ;;  %v1799_v40 = vsel %vm318_vm0, %v1797_v43, %v1798_v51  ;;  %1496 = vmatprep.subr.bf16.mxu0 %v9932_v6  ;;  %v9938_v10 = vld [vmem:[#allocation8 + $0x34] ss:$8 sps:$4 sm:$0xff]   ;;  %v9936_v11 = vld [vmem:[#allocation8 + $0x30] ss:$8 sps:$4 sm:$0xff]   ;;  %v1029_v17 = vld [vmem:[#allocation11 + $0x6] ss:$0 sm:$0xff] }
 0x373   :  { %9625 = vmatprep.mubr.msk.bf16.mxu1 %vm11012_vm8, %v8163_v27  ;;  %v8201_v41 = vpack.c.bf16 %v1278_v37, %v1279_v31  ;;  %v8204_v46 = vpack.c.bf16 %v11030_v32, %v11039_v38  ;;  %v1800_v47 = vsel %vm318_vm0, %v1796_v59, %v1797_v43  ;;  %v1810_v48 = vmax.f32 %v1799_v40, %v10968_v35  ;;  %v9913_v43 = vld [vmem:[%s13346_s5 + $0x50] sm:$0xff]   ;;  %v9918_v59 = vld [vmem:[%s13346_s5 + $0x78] sm:$0xff]   ;;  %v9998_v53 = vld [vmem:[%s13349_s8 + $0x8] sm:$0xff]  }
 0x374   :  { %9626 = vmatmul.mubr.msk.bf16.vlgmr.msra.gmra.mrb[4].mxu1 %vm11022_vm9, %v8166_v29  ;;  %v1805_v52 = vsel %vm10845_vm4, %v1800_v47, -inf  ;;  %v1815_v51 = vsel %vm508_vm1, %v1813_v44, %v1814_v55  ;;  %v1818_v54 = vsel %vm508_vm1, %v1814_v55, %v1811_v49  ;;  %v9916_v49 = vld [vmem:[%s13346_s5 + $0x68] sm:$0xff]   ;;  %v9917_v55 = vld [vmem:[%s13346_s5 + $0x70] sm:$0xff]   ;;  %1497 = vmatpush1.bf16.msra.mxu0 %v9930_v7  ;;  %v10636_v13 = vmov 0  }
 0x375   :  { %9630 = vmatpush3.bf16.msra.mxu1 %v10963_v21  ;;  %9645 = vmatprep.mubr.bf16.mxu1 %v1047_v15  ;;  %v1809_v56 = vmax.f32 %v1805_v52, %v10966_v34  ;;  %v1822_v35 = vsel %vm10837_vm2, %v1818_v54, -inf  ;;  %v9914_v21 = vld [vmem:[%s13346_s5 + $0x58] sm:$0xff]   ;;  %v9915_v34 = vld [vmem:[%s13346_s5 + $0x60] sm:$0xff]  }
 0x376   :  { %9631 = vmatprep.subr.bf16.mxu1 %v9912_v33  ;;  %v1826_v57 = vmax.f32 %v1810_v48, %v1822_v35  ;;  %1498 = vmatprep.subr.bf16.mxu0 %v9935_v8  ;;  %v9994_v15 = vld [vmem:[%s13349_s8] sm:$0xff]   ;;  %v9947_v8 = vld [vmem:[#allocation8 + $0x64] ss:$8 sps:$4 sm:$0xff]  }
 0x377   :  { %v1825_v58 = vmax.f32 %v1809_v56, %v1815_v51  ;;  %1526 = vmatprep.mubr.bf16.mxu0 %v10636_v13  ;;  %v9942_v7 = vld [vmem:[#allocation8 + $0x50] ss:$8 sps:$4 sm:$0xff]  }
 0x378   :  { %1499 = vmatpush1.bf16.msra.mxu0 %v9933_v9  ;;  %v9945_v9 = vld [vmem:[#allocation8 + $0x60] ss:$8 sps:$4 sm:$0xff]   ;;  %v10035_v61 = vld [vmem:[%s13350_s9] ss:$12 sps:$4 sm:$0xff]   ;;  %v10041_v5 = vld [vmem:[%s13350_s9 + $0x1c] ss:$12 sps:$4 sm:$0xff]  }
 0x379   :  { %9632 = vmatpush3.bf16.msra.mxu1 %v9912_v33  ;;  %v11067_v44 = vpack.c.bf16 %v1826_v57, %v1825_v58  ;;  %1500 = vmatprep.subr.bf16.mxu0 %v9938_v10  ;;  %v9950_v10 = vld [vmem:[#allocation8 + $0x74] ss:$8 sps:$4 sm:$0xff]  }
 0x37a   :  { %9633 = vmatprep.subr.bf16.mxu1 %v9913_v43 }
 0x37c   :  { %1501 = vmatpush1.bf16.msra.mxu0 %v9936_v11  ;;  %v9948_v11 = vld [vmem:[#allocation8 + $0x70] ss:$8 sps:$4 sm:$0xff]  }
 0x37d   :  { %9634 = vmatpush3.bf16.msra.mxu1 %v9913_v43  ;;  %1593 = vmatprep.subr.bf16.mxu0 %v9941_v12  ;;  %v9953_v12 = vld [vmem:[#allocation8 + $0x84] ss:$8 sps:$4 sm:$0xff]  }
 0x37e   :  { %9635 = vmatprep.subr.bf16.mxu1 %v9914_v21 }
 0x381   :  { %9636 = vmatpush3.bf16.msra.mxu1 %v9914_v21 }
 0x382   :  { %9637 = vmatprep.subr.bf16.mxu1 %v9915_v34 }
 0x385   :  { %9638 = vmatpush3.bf16.msra.mxu1 %v9915_v34 }
 0x386   :  { %9639 = vmatprep.subr.bf16.mxu1 %v9916_v49 }
 0x389   :  { %9640 = vmatpush3.bf16.msra.mxu1 %v9916_v49 }
 0x38a   :  { %9641 = vmatprep.subr.bf16.mxu1 %v9917_v55 }
 0x38d   :  { %9642 = vmatpush3.bf16.msra.mxu1 %v9917_v55 }
 0x38e   :  { %9643 = vmatprep.subr.bf16.mxu1 %v9918_v59 }
 0x391   :  { %9644 = vmatpush3.bf16.msra.mxu1 %v9918_v59  ;;  %v9939_v59 = vld [vmem:[#allocation8 + $0x40] ss:$8 sps:$4 sm:$0xff]  }
 0x392   :  { %9649 = vmatprep.subr.bf16.mxu1 %v9919_v60 }
 0x394   :  { %9646 = vmatmul.mubr.bf16.vlgmr.msra.gmra.mrb[4].mxu1 %v1048_v16  ;;  %v9997_v16 = vld [vmem:[%s13349_s8 + $0x48] sm:$0xff]  }
 0x395   :  { %9650 = vmatpush3.bf16.msra.mxu1 %v9919_v60  ;;  %9665 = vmatprep.mubr.msk.bf16.mxu1 %vm11090_vm10, %v8201_v41 }
 0x396   :  { %9651 = vmatprep.subr.bf16.mxu1 %v9920_v62 }
 0x399   :  { %9652 = vmatpush3.bf16.msra.mxu1 %v9920_v62 }
 0x39a   :  { %9653 = vmatprep.subr.bf16.mxu1 %v9921_v63 }
 0x39d   :  { %9654 = vmatpush3.bf16.msra.mxu1 %v9921_v63  ;;  %v9944_v63 = vld [vmem:[#allocation8 + $0x54] ss:$8 sps:$4 sm:$0xff]  }
 0x39e   :  { %9655 = vmatprep.subr.bf16.mxu1 %v9922_v0 }
 0x3a1   :  { %9656 = vmatpush3.bf16.msra.mxu1 %v9922_v0 }
 0x3a2   :  { %9657 = vmatprep.subr.bf16.mxu1 %v9923_v1 }
 0x3a5   :  { %9658 = vmatpush3.bf16.msra.mxu1 %v9923_v1 }
 0x3a6   :  { %9659 = vmatprep.subr.bf16.mxu1 %v9924_v2 }
 0x3a9   :  { %9660 = vmatpush3.bf16.msra.mxu1 %v9924_v2 }
 0x3aa   :  { %9661 = vmatprep.subr.bf16.mxu1 %v9925_v3 }
 0x3ad   :  { %9662 = vmatpush3.bf16.msra.mxu1 %v9925_v3 }
 0x3ae   :  { %9663 = vmatprep.subr.bf16.mxu1 %v9926_v4 }
 0x3b1   :  { %9664 = vmatpush3.bf16.msra.mxu1 %v9926_v4 }
 0x3b2   :  { %8926 = vmatprep.subr.bf16.mxu1 %v9993_v14  ;;  %v9951_v14 = vld [vmem:[#allocation8 + $0x80] ss:$8 sps:$4 sm:$0xff]  }
 0x3b4   :  { %9666 = vmatmul.mubr.msk.bf16.vlgmr.msra.gmra.mrb[4].mxu1 %vm11120_vm11, %v8204_v46 }
 0x3b5   :  { %8927 = vmatpush3.bf16.msra.mxu1 %v9994_v15  ;;  %v9956_v15 = vld [vmem:[#allocation8 + $0x94] ss:$8 sps:$4 sm:$0xff]  }
 0x3b6   :  { %8928 = vmatprep.subr.bf16.mxu1 %v9997_v16  ;;  %v9954_v16 = vld [vmem:[#allocation8 + $0x90] ss:$8 sps:$4 sm:$0xff]  }
 0x3b9   :  { %8929 = vmatpush3.bf16.msra.mxu1 %v9998_v53  ;;  %v9959_v53 = vld [vmem:[#allocation8 + $0xa4] ss:$8 sps:$4 sm:$0xff]  }
 0x487   :  { %v9667_v18 = vpop.f32.mrb[4].mxu1 }
 0x488   :  { %v1407_v50 = vadd.f32 %v9667_v18, %v1029_v17  ;;  %v1386_v22 = vpop.f32.mrb[5].mxu1  ;;  %v9962_v18 = vld [vmem:[#allocation8 + $0xb4] ss:$8 sps:$4 sm:$0xff]  }
 0x489   :  { %v1405_v24 = vadd.f32 %v1386_v22, %v1029_v17  ;;  %v9668_v25 = vpop.f32.mrb[6].mxu1  ;;  %v9965_v22 = vld [vmem:[#allocation9 + $0x4] ss:$8 sps:$4 sm:$0xff]  }
 0x48a   :  { %v11139_v26 = vmax.f32 %v1407_v50, 0.0  ;;  %v1408_v27 = vadd.f32 %v9668_v25, %v1029_v17  ;;  %v1389_v29 = vpop.f32.mrb[7].mxu1  ;;  %v9960_v50 = vld [vmem:[#allocation8 + $0xb0] ss:$8 sps:$4 sm:$0xff]   ;;  %v9968_v25 = vld [vmem:[#allocation9 + $0x14] ss:$8 sps:$4 sm:$0xff]  }
 0x48b   :  { %v1409_v31 = vmax.f32 %v1405_v24, 0.0  ;;  %v1406_v32 = vadd.f32 %v1389_v29, %v1029_v17  ;;  %v9957_v17 = vld [vmem:[#allocation8 + $0xa0] ss:$8 sps:$4 sm:$0xff]  }
 0x48c   :  { %v1412_v33 = vmax.f32 %v1408_v27, 0.0  ;;  %v1428_v37 = vrot.slane %v11139_v26, 7  ;;  %v1648_v46 = vrot.slane %v11139_v26, 1  ;;  %v9963_v24 = vld [vmem:[#allocation9] ss:$8 sps:$4 sm:$0xff]  }
 0x48d   :  { %v1426_v38 = vrot.slane %v1409_v31, 7  ;;  %v1646_v40 = vrot.slane %v1409_v31, 1  ;;  %v1410_v41 = vmax.f32 %v1406_v32, 0.0  ;;  %v9971_v27 = vld [vmem:[#allocation9 + $0x24] ss:$8 sps:$4 sm:$0xff]  }
 0x48e   :  { %v1425_v47 = vpack.c.bf16 %v1412_v33, %v11139_v26  ;;  %v1429_v48 = vrot.slane %v1412_v33, 7  ;;  %v1649_v52 = vrot.slane %v1412_v33, 1  ;;  %v9966_v26 = vld [vmem:[#allocation9 + $0x10] ss:$8 sps:$4 sm:$0xff]   ;;  %v9969_v29 = vld [vmem:[#allocation9 + $0x20] ss:$8 sps:$4 sm:$0xff]  }
 0x48f   :  { %v1424_v51 = vpack.c.bf16 %v1410_v41, %v1409_v31  ;;  %v1427_v54 = vrot.slane %v1410_v41, 7  ;;  %v1647_v56 = vrot.slane %v1410_v41, 1  ;;  %v9974_v31 = vld [vmem:[#allocation9 + $0x34] ss:$8 sps:$4 sm:$0xff]   ;;  %v9972_v32 = vld [vmem:[#allocation9 + $0x30] ss:$8 sps:$4 sm:$0xff]  }
 0x490   :  { %v1433_v35 = vsel %vm318_vm0, %v1429_v48, %v1426_v38  ;;  %v1430_v43 = vsel %vm318_vm0, %v1428_v37, %v1429_v48  ;;  %v1650_v57 = vsel %vm508_vm1, %v1648_v46, %v1649_v52  ;;  %v1653_v58 = vsel %vm508_vm1, %v1649_v52, %v1646_v40  ;;  %v9977_v33 = vld [vmem:[#allocation9 + $0x44] ss:$8 sps:$4 sm:$0xff]   ;;  %v9984_v48 = vld [vmem:[#allocation9 + $0x70] ss:$8 sps:$4 sm:$0xff]  }
 0x491   :  { %v1434_v21 = vsel %vm10841_vm3, %v1433_v35, 0.0  ;;  %v1432_v34 = vsel %vm318_vm0, %v1426_v38, %v1427_v54  ;;  %v1651_v49 = vsel %vm508_vm1, %v1647_v56, %v1648_v46  ;;  %v1652_v55 = vsel %vm508_vm1, %v1646_v40, %v1647_v56  ;;  %v9980_v38 = vld [vmem:[#allocation9 + $0x54] ss:$8 sps:$4 sm:$0xff]   ;;  %v9978_v40 = vld [vmem:[#allocation9 + $0x50] ss:$8 sps:$4 sm:$0xff]   ;;  %v9991_v35 = vld [vmem:[%s13349_s8 + $0xd0] sm:$0xff]  }
 0x492   :  { %v1446_v60 = vpack.c.bf16 %v1432_v34, %v1434_v21  ;;  %v1655_v62 = vsel %vm10849_vm6, %v1651_v49, 0.0  ;;  %v1431_v0 = vsel %vm318_vm0, %v1427_v54, %v1428_v37  ;;  %v1657_v1 = vsel %vm10837_vm2, %v1653_v58, 0.0  ;;  %v9975_v37 = vld [vmem:[#allocation9 + $0x40] ss:$8 sps:$4 sm:$0xff]   ;;  %v9983_v41 = vld [vmem:[#allocation9 + $0x64] ss:$8 sps:$4 sm:$0xff]  }
 0x493   :  { %v1667_v2 = vpack.c.bf16 %v1655_v62, %v1652_v55  ;;  %v1436_v3 = vsel %vm10845_vm4, %v1431_v0, 0.0  ;;  %v1668_v4 = vpack.c.bf16 %v1657_v1, %v1650_v57  ;;  %v9981_v46 = vld [vmem:[#allocation9 + $0x60] ss:$8 sps:$4 sm:$0xff]   ;;  %v9987_v52 = vld [vmem:[%s13349_s8 + $0xc0] sm:$0xff]   ;;  %v9989_v54 = vld [vmem:[%s13349_s8 + $0xc8] sm:$0xff]  }
 0x494   :  { %8214 = vmatmul.mubr.msk.bf16.vlgmr.msra.gmra.mrb[8].mxu0 %vm369_vm5, %v1446_v60  ;;  %v1447_v6 = vpack.c.bf16 %v1430_v43, %v1436_v3  ;;  %v9990_v56 = vld [vmem:[%s13349_s8 + $0x88] sm:$0xff]   ;;  %v9992_v43 = vld [vmem:[%s13349_s8 + $0x90] sm:$0xff]   ;;  %v9996_v57 = vld [vmem:[%s13349_s8 + $0x98] sm:$0xff]  }
 0x495   :  { %1594 = vmatpush1.bf16.msra.mxu0 %v9939_v59  ;;  %1536 = vmatprep.mubr.bf16.mxu0 %v10636_v13  ;;  %v9999_v58 = vld [vmem:[%s13349_s8 + $0xe0] sm:$0xff]   ;;  %v10002_v34 = vld [vmem:[%s13349_s8 + $0x10] sm:$0xff]   ;;  %v10003_v49 = vld [vmem:[%s13349_s8 + $0xe8] sm:$0xff]  }
 0x496   :  { %1595 = vmatprep.subr.bf16.mxu0 %v9944_v63  ;;  %v10000_v21 = vld [vmem:[%s13349_s8 + $0xa0] sm:$0xff]   ;;  %v10004_v55 = vld [vmem:[%s13349_s8 + $0xa8] sm:$0xff]   ;;  %v10005_v59 = vld [vmem:[%s13349_s8 + $0x58] sm:$0xff]  }
 0x497   :  { %v10006_v60 = vld [vmem:[%s13349_s8 + $0x18] sm:$0xff]   ;;  %v10007_v62 = vld [vmem:[%s13349_s8 + $0xf0] sm:$0xff]   ;;  %v10009_v63 = vld [vmem:[%s13349_s8 + $0x60] sm:$0xff]  }
 0x498   :  { %v10008_v0 = vld [vmem:[%s13349_s8 + $0xb0] sm:$0xff]   ;;  %v10010_v1 = vld [vmem:[%s13349_s8 + $0x20] sm:$0xff]   ;;  %v10012_v3 = vld [vmem:[%s13349_s8 + $0xb8] sm:$0xff]  }
 0x499   :  { %1596 = vmatpush1.bf16.msra.mxu0 %v9942_v7  ;;  %v10015_v7 = vld [vmem:[%s13349_s8 + $0x70] sm:$0xff]  }
 0x49a   :  { %1597 = vmatprep.subr.bf16.mxu0 %v9947_v8  ;;  %v10016_v8 = vld [vmem:[%s13349_s8 + $0x30] sm:$0xff]  }
 0x49c   :  { %8215 = vmatmul.mubr.msk.bf16.gmra.mrb[12].mxu0 %vm369_vm5, %v1447_v6  ;;  %v10014_v6 = vld [vmem:[%s13349_s8 + $0x28] sm:$0xff]  }
 0x49d   :  { %1598 = vmatpush1.bf16.msra.mxu0 %v9945_v9  ;;  %1625 = vmatprep.mubr.bf16.mxu0 %v10636_v13  ;;  %v10017_v9 = vld [vmem:[%s13349_s8 + $0x78] sm:$0xff]  }
 0x49e   :  { %1599 = vmatprep.subr.bf16.mxu0 %v9950_v10  ;;  %v10018_v10 = vld [vmem:[%s13349_s8 + $0x38] sm:$0xff]  }
 0x4a1   :  { %1600 = vmatpush1.bf16.msra.mxu0 %v9948_v11  ;;  %v10019_v11 = vld [vmem:[%s13349_s8 + $0x140] sm:$0xff]  }
 0x4a2   :  { %1715 = vmatprep.subr.bf16.mxu0 %v9953_v12  ;;  %v1414_v12 = vld [vmem:[#allocation11 + $0x7] ss:$8 sm:$0x3] }
 0x4a4   :  { %8224 = vmatmul.mubr.msk.bf16.vlgmr.msra.gmra.mrb[8].mxu0 %vm369_vm5, %v1424_v51  ;;  %v9988_v51 = vld [vmem:[%s13349_s8 + $0x80] sm:$0xff]  }
 0x4a5   :  { %1716 = vmatpush1.bf16.msra.mxu0 %v9951_v14  ;;  %1635 = vmatprep.mubr.bf16.mxu0 %v10636_v13  ;;  %v11271_v14 = vsub.s32 0, %v10829_v20 }
 0x4a6   :  { %1717 = vmatprep.subr.bf16.mxu0 %v9956_v15  ;;  %v1846_v15 = vld [vmem:[#allocation11 + $0x20] ss:$8 sm:$0x3] }
 0x4a9   :  { %1718 = vmatpush1.bf16.msra.mxu0 %v9954_v16  ;;  %v11274_v16 = vsub.s32 1, %v10829_v20 }
 0x4aa   :  { %1719 = vmatprep.subr.bf16.mxu0 %v9959_v53  ;;  %v1780_v53 = vrot.slane %v1414_v12, %v11271_v14 }
 0x4ac   :  { %8225 = vmatmul.mubr.msk.bf16.gmra.mrb[12].mxu0 %vm369_vm5, %v1425_v47  ;;  %v9986_v47 = vld [vmem:[#allocation9 + $0x74] ss:$8 sps:$4 sm:$0xff]  }
 0x4ad   :  { %1720 = vmatpush1.bf16.msra.mxu0 %v9957_v17  ;;  %1747 = vmatprep.mubr.bf16.mxu0 %v10636_v13  ;;  %v1851_v17 = vrot.slane %v1846_v15, %v11271_v14 }
 0x4ae   :  { %1721 = vmatprep.subr.bf16.mxu0 %v9962_v18  ;;  %v1784_v18 = vrot.slane %v1414_v12, %v11274_v16 }
 0x4b1   :  { %1722 = vmatpush1.bf16.msra.mxu0 %v9960_v50  ;;  %v1855_v50 = vrot.slane %v1846_v15, %v11274_v16 }
 0x4b2   :  { %1938 = vmatprep.subr.bf16.mxu0 %v9965_v22  ;;  %v2000_v22 = vld [vmem:[#allocation11 + $0x21] ss:$8 sm:$0x3] }
 0x4b4   :  { %8234 = vmatmul.mubr.msk.bf16.vlgmr.msra.gmra.mrb[8].mxu0 %vm369_vm5, %v1667_v2  ;;  %v10011_v2 = vld [vmem:[%s13349_s8 + $0xf8] sm:$0xff]  }
 0x4b5   :  { %1939 = vmatpush1.bf16.msra.mxu0 %v9963_v24  ;;  %1757 = vmatprep.mubr.bf16.mxu0 %v10636_v13  ;;  %v9733_v24 = vadd.f32 %v1851_v17, %v1780_v53 }
 0x4b6   :  { %1940 = vmatprep.subr.bf16.mxu0 %v9968_v25  ;;  %v2021_v25 = vld [vmem:[#allocation11 + $0x22] ss:$8 sm:$0x3] }
 0x4b9   :  { %1941 = vmatpush1.bf16.msra.mxu0 %v9966_v26  ;;  %v9735_v26 = vadd.f32 %v1855_v50, %v1784_v18 }
 0x4ba   :  { %1942 = vmatprep.subr.bf16.mxu0 %v9971_v27  ;;  %v11281_v27 = vrot.slane %v2000_v22, %v11271_v14 }
 0x4bc   :  { %8235 = vmatmul.mubr.msk.bf16.gmra.mrb[12].mxu0 %vm369_vm5, %v1668_v4  ;;  %v10013_v4 = vld [vmem:[%s13349_s8 + $0x68] sm:$0xff]  }
 0x4bd   :  { %1943 = vmatpush1.bf16.msra.mxu0 %v9969_v29  ;;  %1970 = vmatprep.mubr.bf16.mxu0 %v10636_v13 }
 0x4be   :  { %1944 = vmatprep.subr.bf16.mxu0 %v9974_v31  ;;  %v11284_v31 = vrot.slane %v2000_v22, %v11274_v16 }
 0x4c1   :  { %1945 = vmatpush1.bf16.msra.mxu0 %v9972_v32 }
 0x4c2   :  { %1946 = vmatprep.subr.bf16.mxu0 %v9977_v33  ;;  %v11289_v33 = vrot.slane %v2021_v25, %v11271_v14 }
 0x4c5   :  { %1947 = vmatpush1.bf16.msra.mxu0 %v9975_v37 }
 0x4c6   :  { %1948 = vmatprep.subr.bf16.mxu0 %v9980_v38 }
 0x4c9   :  { %1949 = vmatpush1.bf16.msra.mxu0 %v9978_v40 }
 0x4ca   :  { %1950 = vmatprep.subr.bf16.mxu0 %v9983_v41  ;;  %v11294_v41 = vrot.slane %v2021_v25, %v11274_v16 }
 0x4cd   :  { %1951 = vmatpush1.bf16.msra.mxu0 %v9981_v46 }
 0x4ce   :  { %1952 = vmatprep.subr.bf16.mxu0 %v9986_v47 }
 0x4d1   :  { %1953 = vmatpush1.bf16.msra.mxu0 %v9984_v48 }
 0x4d2   :  { %8954 = vmatprep.subr.bf16.mxu0 %v9987_v52 }
 0x4d4   :  { %1971 = vmatmul.mubr.bf16.vlgmr.msra.gmra.mrb[8].mxu0 %v11041_v39  ;;  %v9995_v39 = vld [vmem:[%s13349_s8 + $0xd8] sm:$0xff]  }
 0x4d5   :  { %1980 = vmatprep.mubr.bf16.mxu0 %v10636_v13  ;;  %8955 = vmatpush3.bf16.msra.mxu0 %v9988_v51 }
 0x4d6   :  { %8956 = vmatprep.subr.bf16.mxu0 %v9989_v54 }
 0x4d9   :  { %8957 = vmatpush3.bf16.msra.mxu0 %v9990_v56 }
 0x4da   :  { %8958 = vmatprep.subr.bf16.mxu0 %v9991_v35 }
 0x4dc   :  { %1981 = vmatmul.mubr.bf16.gmra.mrb[12].mxu0 %v11067_v44  ;;  %v10001_v44 = vld [vmem:[%s13349_s8 + $0x50] sm:$0xff]  }
 0x4dd   :  { %8959 = vmatpush3.bf16.msra.mxu0 %v9992_v43  ;;  %8930 = vmatprep.subr.bf16.mxu1 %v10001_v44 }
 0x4de   :  { %8960 = vmatprep.subr.bf16.mxu0 %v9995_v39  ;;  %8931 = vmatpush3.bf16.msra.mxu1 %v10002_v34 }
 0x4df   :  { %8932 = vmatprep.subr.bf16.mxu1 %v10005_v59 }
 0x4e1   :  { %8961 = vmatpush3.bf16.msra.mxu0 %v9996_v57 }
 0x4e2   :  { %8962 = vmatprep.subr.bf16.mxu0 %v9999_v58  ;;  %8933 = vmatpush3.bf16.msra.mxu1 %v10006_v60 }
 0x4e3   :  { %8934 = vmatprep.subr.bf16.mxu1 %v10009_v63 }
 0x4e5   :  { %8963 = vmatpush3.bf16.msra.mxu0 %v10000_v21 }
 0x4e6   :  { %8964 = vmatprep.subr.bf16.mxu0 %v10003_v49  ;;  %8935 = vmatpush3.bf16.msra.mxu1 %v10010_v1 }
 0x4e7   :  { %8936 = vmatprep.subr.bf16.mxu1 %v10013_v4 }
 0x4e9   :  { %8965 = vmatpush3.bf16.msra.mxu0 %v10004_v55 }
 0x4ea   :  { %8966 = vmatprep.subr.bf16.mxu0 %v10007_v62  ;;  %8937 = vmatpush3.bf16.msra.mxu1 %v10014_v6 }
 0x4eb   :  { %8938 = vmatprep.subr.bf16.mxu1 %v10015_v7 }
 0x4ed   :  { %8967 = vmatpush3.bf16.msra.mxu0 %v10008_v0 }
 0x4ee   :  { %8968 = vmatprep.subr.bf16.mxu0 %v10011_v2  ;;  %8939 = vmatpush3.bf16.msra.mxu1 %v10016_v8 }
 0x4ef   :  { %8940 = vmatprep.subr.bf16.mxu1 %v10017_v9 }
 0x4f1   :  { %8969 = vmatpush3.bf16.msra.mxu0 %v10012_v3 }
 0x4f2   :  { %8941 = vmatpush3.bf16.msra.mxu1 %v10018_v10 }
 0x4f3   :  { %8982 = vmatprep.subr.bf16.mxu1 %v10019_v11 }
 0x5a7   :  { %v1972_v29 = vpop.f32.mrb[8].mxu0 }
 0x5a8   :  { %v11286_v32 = vadd.f32 %v9733_v24, %v1972_v29  ;;  %v1974_v37 = vpop.f32.mrb[9].mxu0 }
 0x5a9   :  { %v11291_v38 = vadd.f32 %v9735_v26, %v1974_v37  ;;  %v1976_v40 = vpop.f32.mrb[10].mxu0 }
 0x5aa   :  { %v2012_v46 = vmul.f32 %v11286_v32, %v11281_v27  ;;  %v3293_v47 = vrot.slane %v11286_v32, 7  ;;  %v13358_v48 = vrot.slane %v11286_v32, 1  ;;  %v11300_v52 = vadd.f32 %v9733_v24, %v1976_v40  ;;  %v1978_v51 = vpop.f32.mrb[11].mxu0 }
 0x5ab   :  { %v2013_v54 = vmul.f32 %v11291_v38, %v11284_v31  ;;  %v3294_v56 = vrot.slane %v11291_v38, 7  ;;  %v3326_v35 = vrot.slane %v11291_v38, 1  ;;  %v11306_v43 = vadd.f32 %v9735_v26, %v1978_v51 }
 0x5ac   :  { %v2033_v39 = vadd.f32 %v11289_v33, %v2012_v46  ;;  %v2014_v57 = vmul.f32 %v11300_v52, %v11281_v27  ;;  %v13359_v58 = vrot.slane %v11300_v52, 7  ;;  %v3327_v21 = vrot.slane %v11300_v52, 1 }
 0x5ad   :  { %v2015_v44 = vmul.f32 %v11306_v43, %v11284_v31  ;;  %v13361_v34 = vrot.slane %v11306_v43, 7  ;;  %v3328_v49 = vrot.slane %v11306_v43, 1  ;;  %v2034_v55 = vadd.f32 %v11294_v41, %v2013_v54 }
 0x5ae   :  { %v11318_v59 = vmax.f32 %v2033_v39, 0.0  ;;  %v2035_v60 = vadd.f32 %v11289_v33, %v2014_v57  ;;  %v11327_v62 = vsel %vm318_vm0, %v3293_v47, %v13359_v58  ;;  %v11335_v63 = vsel %vm508_vm1, %v13358_v48, %v3327_v21 }
 0x5af   :  { %v1982_v1 = vpop.f32.mrb[12].mxu0  ;;  %v2036_v2 = vadd.f32 %v11294_v41, %v2015_v44  ;;  %v11340_v3 = vmax.f32 %v2034_v55, 0.0  ;;  %v11348_v4 = vsel %vm318_vm0, %v3294_v56, %v13361_v34  ;;  %v3338_v23 = vsel %vm508_vm1, %v3326_v35, %v3328_v49 }
 0x5b0   :  { %v2087_v6 = vrot.slane %v11318_v59, 7  ;;  %v2437_v7 = vrot.slane %v11318_v59, 1  ;;  %v2043_v8 = vmax.f32 %v2035_v60, 0.0  ;;  %v11352_v9 = vadd.f32 %v9733_v24, %v1982_v1  ;;  %v1984_v10 = vpop.f32.mrb[13].mxu0 }
 0x5b1   :  { %v11354_v11 = vadd.f32 %v9735_v26, %v1984_v10  ;;  %v1986_v12 = vpop.f32.mrb[14].mxu0  ;;  %v2044_v15 = vmax.f32 %v2036_v2, 0.0  ;;  %v2088_v53 = vrot.slane %v11340_v3, 7  ;;  %v2438_v17 = vrot.slane %v11340_v3, 1 }
 0x5b2   :  { %v2089_v18 = vrot.slane %v2043_v8, 7  ;;  %v2439_v50 = vrot.slane %v2043_v8, 1  ;;  %v2016_v22 = vmul.f32 %v11352_v9, %v11281_v27  ;;  %v1988_v29 = vpop.f32.mrb[15].mxu0  ;;  %v3329_v37 = vrot.slane %v11352_v9, 1 }
 0x5b3   :  { %v2017_v40 = vmul.f32 %v11354_v11, %v11284_v31  ;;  %v3298_v46 = vrot.slane %v11354_v11, 7  ;;  %v3330_v51 = vrot.slane %v11354_v11, 1  ;;  %v11366_v54 = vadd.f32 %v9733_v24, %v1986_v12 }
 0x5b4   :  { %v11368_v39 = vadd.f32 %v9735_v26, %v1988_v29  ;;  %v2084_v57 = vpack.c.bf16 %v2044_v15, %v11340_v3  ;;  %v2083_v44 = vpack.c.bf16 %v2043_v8, %v11318_v59  ;;  %v2037_v60 = vadd.f32 %v11289_v33, %v2016_v22 }
 0x5b5   :  { %v2038_v55 = vadd.f32 %v11294_v41, %v2017_v40  ;;  %v2090_v1 = vrot.slane %v2044_v15, 7  ;;  %v2099_v2 = vsel %vm318_vm0, %v2087_v6, %v2089_v18  ;;  %v2018_v24 = vmul.f32 %v11366_v54, %v11281_v27 }
 0x5b6   :  { %v13360_v26 = vrot.slane %v11366_v54, 7  ;;  %v2019_v8 = vmul.f32 %v11368_v39, %v11284_v31  ;;  %2420 = vmatprep.mubr.bf16.mxu0 %v2084_v57  ;;  %v3300_v12 = vrot.slane %v11368_v39, 7  ;;  %v2045_v40 = vmax.f32 %v2037_v60, 0.0 }
 0x5b7   :  { %2421 = vmatmul.mubr.bf16.vlgmr.msra.gmra.mrb[16].mxu0 %v2083_v44  ;;  %v2046_v29 = vmax.f32 %v2038_v55, 0.0  ;;  %v2039_v48 = vadd.f32 %v11289_v33, %v2018_v24  ;;  %v2100_v31 = vsel %vm318_vm0, %v2088_v53, %v2090_v1  ;;  %v2440_v44 = vrot.slane %v2044_v15, 1 }
 0x5b8   :  { %v3307_v27 = vsel %vm318_vm0, %v13360_v26, %v3293_v47  ;;  %v2040_v19 = vadd.f32 %v11294_v41, %v2019_v8  ;;  %v2441_v57 = vrot.slane %v2045_v40, 1  ;;  %v2091_v58 = vrot.slane %v2045_v40, 7 }
 0x5b9   :  { %v2092_v10 = vrot.slane %v2046_v29, 7  ;;  %v2047_v60 = vmax.f32 %v2039_v48, 0.0  ;;  %v2442_v25 = vrot.slane %v2046_v29, 1  ;;  %v11400_v22 = vsel %vm508_vm1, %v2437_v7, %v2439_v50 }
 0x5ba   :  { %v2048_v55 = vmax.f32 %v2040_v19, 0.0  ;;  %v11404_v41 = vsel %vm508_vm1, %v2439_v50, %v2441_v57  ;;  %v11410_v47 = vsel %vm318_vm0, %v2089_v18, %v2091_v58  ;;  %v11416_v19 = vsel %vm508_vm1, %v2438_v17, %v2440_v44 }
 0x5bb   :  { %v2098_v33 = vsel %vm318_vm0, %v2090_v1, %v2092_v10  ;;  %v2085_v15 = vpack.c.bf16 %v2047_v60, %v2045_v40  ;;  %v2093_v24 = vrot.slane %v2047_v60, 7  ;;  %v11420_v50 = vsel %vm508_vm1, %v2440_v44, %v2442_v25 }
 0x5bc   :  { %v2086_v48 = vpack.c.bf16 %v2048_v55, %v2046_v29  ;;  %v2094_v8 = vrot.slane %v2048_v55, 7  ;;  %v2444_v26 = vrot.slane %v2048_v55, 1  ;;  %v2443_v18 = vrot.slane %v2047_v60, 1  ;;  %v10020_v55 = vld [vmem:[%s13349_s8 + $0x100] sm:$0xff]  }
 0x5bd   :  { %v2101_v29 = vsel %vm318_vm0, %v2093_v24, %v2087_v6  ;;  %v2095_v44 = vsel %vm318_vm0, %v2091_v58, %v2093_v24  ;;  %v10021_v6 = vld [vmem:[%s13349_s8 + $0x148] sm:$0xff]  }
 0x5be   :  { %2428 = vmatprep.mubr.bf16.mxu0 %v2086_v48  ;;  %v2102_v34 = vsel %vm318_vm0, %v2094_v8, %v2088_v53  ;;  %v2096_v40 = vsel %vm318_vm0, %v2092_v10, %v2094_v8  ;;  %v8304_v1 = vpack.c.bf16 %v2099_v2, %v2101_v29  ;;  %v8310_v53 = vpack.c.bf16 %v2095_v44, %v11410_v47 }
 0x5bf   :  { %2429 = vmatmul.mubr.bf16.gmra.mrb[20].mxu0 %v2085_v15  ;;  %v8301_v0 = vpack.c.bf16 %v2100_v31, %v2102_v34  ;;  %v8307_v60 = vpack.c.bf16 %v2096_v40, %v2098_v33  ;;  %v8377_v10 = vpack.c.bf16 %v11420_v50, %v11416_v19  ;;  %v11445_v58 = vsel %vm508_vm1, %v2442_v25, %v2444_v26  ;;  %v10023_v33 = vld [vmem:[%s13349_s8 + $0x150] sm:$0xff]  }
 0x5c0   :  { %v11451_v34 = vsel %vm508_vm1, %v2444_v26, %v2438_v17  ;;  %v11455_v2 = vsel %vm508_vm1, %v2441_v57, %v2443_v18  ;;  %2808 = vmatprep.mubr.bf16.mxu0 %v10636_v13  ;;  %v11466_v3 = vsel %vm508_vm1, %v2443_v18, %v2437_v7  ;;  %v3308_v17 = vsel %vm318_vm0, %v3300_v12, %v3294_v56  ;;  %v10022_v56 = vld [vmem:[%s13349_s8 + $0x108] sm:$0xff]  }
 0x5c1   :  { %8302 = vmatprep.mubr.msk.bf16.mxu1 %vm11012_vm8, %v8301_v0  ;;  %v8383_v31 = vpack.c.bf16 %v11451_v34, %v11445_v58  ;;  %v3320_v25 = vmax.f32 %v11348_v4, %v11306_v43  ;;  %v8386_v59 = vpack.c.bf16 %v11466_v3, %v11455_v2  ;;  %v3310_v0 = vsel %vm10841_vm3, %v3308_v17, -inf  ;;  %v10042_v58 = vld [vmem:[%s13350_s9 + $0x20] ss:$12 sps:$4 sm:$0xff]   ;;  %v10043_v2 = vld [vmem:[%s13350_s9 + $0x30] ss:$12 sps:$4 sm:$0xff]  }
 0x5c2   :  { %8305 = vmatmul.mubr.msk.bf16.vlgmr.msra.gmra.mrb[8].mxu1 %vm11012_vm8, %v8304_v1  ;;  %v3336_v7 = vsel %vm508_vm1, %v3328_v49, %v3330_v51  ;;  %v3318_v4 = vmax.f32 %v3310_v0, %v11291_v38  ;;  %v3309_v57 = vsel %vm10841_vm3, %v3307_v27, -inf  ;;  %v3335_v49 = vsel %vm508_vm1, %v3327_v21, %v3329_v37  ;;  %v10045_v34 = vld [vmem:[%s13350_s9 + $0x34] ss:$12 sps:$4 sm:$0xff]   ;;  %v10049_v3 = vld [vmem:[%s13350_s9 + $0x4c] ss:$12 sps:$4 sm:$0xff]  }
 0x5c3   :  { %8983 = vmatpush3.bf16.msra.mxu1 %v10020_v55  ;;  %8308 = vmatprep.mubr.msk.bf16.mxu1 %vm11022_vm9, %v8307_v60  ;;  %v3344_v26 = vsel %vm10849_vm6, %v3336_v7, -inf  ;;  %v3317_v19 = vmax.f32 %v3309_v57, %v11286_v32  ;;  %v3343_v48 = vsel %vm10849_vm6, %v3335_v49, -inf  ;;  %v3302_v27 = vsel %vm318_vm0, %v3298_v46, %v3300_v12 }
 0x5c4   :  { %8984 = vmatprep.subr.bf16.mxu1 %v10021_v6  ;;  %v3352_v47 = vmax.f32 %v3320_v25, %v3344_v26  ;;  %v3350_v15 = vmax.f32 %v3318_v4, %v3338_v23  ;;  %v13378_v21 = vmax.f32 %v11327_v62, %v11300_v52  ;;  %v13379_v8 = vrot.slane %v11306_v43, 7 }
 0x5c5   :  { %v3324_v1 = vmax.f32 %v3302_v27, %v11368_v39  ;;  %v3349_v18 = vmax.f32 %v3317_v19, %v11335_v63  ;;  %v13380_v12 = vrot.slane %v11368_v39, 1  ;;  %v10024_v63 = vld [vmem:[%s13349_s8 + $0x110] sm:$0xff]   ;;  %v13383_v38 = vrot.slane %v11352_v9, 7  ;;  %v10030_v19 = vld [vmem:[%s13349_s8 + $0x128] sm:$0xff]  }
 0x5c6   :  { %v3351_v24 = vmax.f32 %v13378_v21, %v3343_v48  ;;  %v3304_v50 = vsel %vm318_vm0, %v13379_v8, %v3298_v46  ;;  %v11550_v40 = vpack.c.bf16 %v3352_v47, %v3350_v15  ;;  %v13385_v17 = vrot.slane %v11300_v52, 7  ;;  %v10029_v47 = vld [vmem:[%s13349_s8 + $0x168] sm:$0xff]   ;;  %v10031_v48 = vld [vmem:[%s13349_s8 + $0x170] sm:$0xff]   ;;  %v10033_v15 = vld [vmem:[%s13349_s8 + $0x178] sm:$0xff]  }
 0x5c7   :  { %v3314_v29 = vsel %vm10845_vm4, %v3304_v50, -inf  ;;  %v3334_v62 = vsel %vm508_vm1, %v3330_v51, %v13380_v12  ;;  %v13381_v43 = vmov %v13380_v12  ;;  %8985 = vmatpush3.bf16.msra.mxu1 %v10022_v56  ;;  %v13382_v51 = vrot.slane %v11366_v54, 7  ;;  %v10032_v27 = vld [vmem:[%s13349_s8 + $0x130] sm:$0xff]   ;;  %v10034_v21 = vld [vmem:[%s13349_s8 + $0x138] sm:$0xff]  }
 0x5c8   :  { %v3340_v46 = vsel %vm508_vm1, %v13381_v43, %v3326_v35  ;;  %v3322_v44 = vmax.f32 %v3314_v29, %v11354_v11  ;;  %8986 = vmatprep.subr.bf16.mxu1 %v10023_v33  ;;  %v10025_v35 = vld [vmem:[%s13349_s8 + $0x158] sm:$0xff]   ;;  %v11564_v60 = vpack.c.bf16 %v3351_v24, %v3349_v18  ;;  %v13384_v11 = vmov %v13383_v38  ;;  %v10037_v8 = vld [vmem:[%s13350_s9 + $0x4] ss:$12 sps:$4 sm:$0xff]   ;;  %v10047_v50 = vld [vmem:[%s13350_s9 + $0x48] ss:$12 sps:$4 sm:$0xff]  }
 0x5c9   :  { %v3348_v55 = vsel %vm10837_vm2, %v3340_v46, -inf  ;;  %v3301_v39 = vsel %vm318_vm0, %v13383_v38, %v13382_v51  ;;  %v3303_v25 = vsel %vm318_vm0, %v13385_v17, %v13384_v11  ;;  %v13386_v56 = vrot.slane %v11366_v54, 1  ;;  %2776 = vmatprep.subr.bf16.mxu0 %v10037_v8  ;;  %v11682_v18 = vld [vmem:[%s13350_s9 + $0x68] ss:$12 sps:$4 sm:$0xff]  }
 0x5ca   :  { %v3356_v6 = vmax.f32 %v3324_v1, %v3348_v55  ;;  %v3323_v0 = vmax.f32 %v3301_v39, %v11366_v54  ;;  %v3354_v7 = vmax.f32 %v3322_v44, %v3334_v62  ;;  %v3313_v23 = vsel %vm10845_vm4, %v3303_v25, -inf  ;;  %8311 = vmatmul.mubr.msk.bf16.gmra.mrb[12].mxu1 %vm11022_vm9, %v8310_v53  ;;  %2777 = vmatpush1.bf16.msra.mxu0 %v10035_v61  ;;  %v10053_v1 = vld [vmem:[%s13350_s9 + $0x64] ss:$12 sps:$4 sm:$0xff]  }
 0x5cb   :  { %v3333_v4 = vsel %vm508_vm1, %v3329_v37, %v13386_v56  ;;  %v13387_v26 = vrot.slane %v11286_v32, 1  ;;  %v13388_v52 = vmov %v13386_v56  ;;  %v3321_v49 = vmax.f32 %v3313_v23, %v11352_v9  ;;  %8987 = vmatpush3.bf16.msra.mxu1 %v10024_v63  ;;  %8378 = vmatprep.mubr.msk.bf16.mxu1 %vm11090_vm10, %v8377_v10  ;;  %v10026_v32 = vld [vmem:[%s13349_s8 + $0x118] sm:$0xff]   ;;  %v10028_v10 = vld [vmem:[%s13349_s8 + $0x120] sm:$0xff]  }
 0x5cc   :  { %v11597_v37 = vpack.c.bf16 %v3356_v6, %v3354_v7  ;;  %8988 = vmatprep.subr.bf16.mxu1 %v10025_v35  ;;  %v13389_v24 = vpack.c.bf16 %v11404_v41, %v11400_v22  ;;  %v10038_v22 = vld [vmem:[%s13350_s9 + $0x8] ss:$12 sps:$4 sm:$0xff]   ;;  %v10039_v41 = vld [vmem:[%s13350_s9 + $0x18] ss:$12 sps:$4 sm:$0xff]   ;;  %2778 = vmatprep.subr.bf16.mxu0 %v10041_v5 }
 0x5cd   :  { %v3339_v57 = vsel %vm508_vm1, %v13388_v52, %v13387_v26  ;;  %v3353_v9 = vmax.f32 %v3321_v49, %v3333_v4 }
 0x5ce   :  { %v3347_v33 = vsel %vm10837_vm2, %v3339_v57, -inf  ;;  %2779 = vmatpush1.bf16.msra.mxu0 %v10039_v41 }
 0x5cf   :  { %v3355_v54 = vmax.f32 %v3323_v0, %v3347_v33  ;;  %8989 = vmatpush3.bf16.msra.mxu1 %v10026_v32  ;;  %2780 = vmatprep.subr.bf16.mxu0 %v10045_v34 }
 0x5d0   :  { %8990 = vmatprep.subr.bf16.mxu1 %v10027_v28 }
 0x5d1   :  { %v11602_v53 = vpack.c.bf16 %v3355_v54, %v3353_v9 }
 0x5d2   :  { %2781 = vmatpush1.bf16.msra.mxu0 %v10043_v2 }
 0x5d3   :  { %8991 = vmatpush3.bf16.msra.mxu1 %v10028_v10  ;;  %2782 = vmatprep.subr.bf16.mxu0 %v10049_v3 }
 0x5d4   :  { %8992 = vmatprep.subr.bf16.mxu1 %v10029_v47 }
 0x5d6   :  { %2783 = vmatpush1.bf16.msra.mxu0 %v10047_v50 }
 0x5d7   :  { %8993 = vmatpush3.bf16.msra.mxu1 %v10030_v19  ;;  %2948 = vmatprep.subr.bf16.mxu0 %v10053_v1  ;;  %v2049_v19 = vld [vmem:[#allocation11 + $0x23] ss:$0 sm:$0xff] }
 0x5d8   :  { %8994 = vmatprep.subr.bf16.mxu1 %v10031_v48 }
 0x5db   :  { %8995 = vmatpush3.bf16.msra.mxu1 %v10032_v27 }
 0x5dc   :  { %8996 = vmatprep.subr.bf16.mxu1 %v10033_v15 }
 0x5df   :  { %8997 = vmatpush3.bf16.msra.mxu1 %v10034_v21 }
 0x5e0   :  { %9669 = vmatprep.subr.bf16.mxu1 %v10038_v22 }
 0x5e2   :  { %8381 = vmatmul.mubr.msk.bf16.vlgmr.msra.gmra.mrb[16].mxu1 %vm11090_vm10, %v13389_v24 }
 0x5e3   :  { %8384 = vmatprep.mubr.msk.bf16.mxu1 %vm11120_vm11, %v8383_v31  ;;  %9670 = vmatpush3.bf16.msra.mxu1 %v10038_v22  ;;  %v10046_v31 = vld [vmem:[%s13350_s9 + $0x38] ss:$12 sps:$4 sm:$0xff]  }
 0x5e4   :  { %9671 = vmatprep.subr.bf16.mxu1 %v10042_v58 }
 0x5e7   :  { %9672 = vmatpush3.bf16.msra.mxu1 %v10042_v58 }
 0x5e8   :  { %9673 = vmatprep.subr.bf16.mxu1 %v10046_v31 }
 0x5ea   :  { %8387 = vmatmul.mubr.msk.bf16.gmra.mrb[20].mxu1 %vm11120_vm11, %v8386_v59  ;;  %v10050_v59 = vld [vmem:[%s13350_s9 + $0x50] ss:$12 sps:$4 sm:$0xff]  }
 0x5eb   :  { %9674 = vmatpush3.bf16.msra.mxu1 %v10046_v31 }
 0x5ec   :  { %9675 = vmatprep.subr.bf16.mxu1 %v10050_v59 }
 0x5ef   :  { %9676 = vmatpush3.bf16.msra.mxu1 %v10050_v59 }
 0x5f0   :  { %9681 = vmatprep.subr.bf16.mxu1 %v11682_v18 }
 0x68a   :  { %v8970_v29 = vpop.f32.mrb[16].mxu0 }
 0x68b   :  { %v8971_v12 = vpop.f32.mrb[17].mxu0 }
 0x68c   :  { %v8972_v62 = vadd.f32 %v8971_v12, %v8970_v29  ;;  %v8973_v43 = vpop.f32.mrb[18].mxu0 }
 0x68d   :  { %v8974_v46 = vpop.f32.mrb[19].mxu0 }
 0x68e   :  { %v8975_v63 = vadd.f32 %v8974_v46, %v8973_v43 }
 0x692   :  { %v8976_v44 = vpop.f32.mrb[20].mxu0 }
 0x693   :  { %v8977_v55 = vpop.f32.mrb[21].mxu0 }
 0x694   :  { %v8978_v51 = vadd.f32 %v8977_v55, %v8976_v44  ;;  %v8979_v38 = vpop.f32.mrb[22].mxu0 }
 0x695   :  { %v8942_v39 = vpop.f32.mrb[8].mxu1  ;;  %v8980_v35 = vpop.f32.mrb[23].mxu0 }
 0x696   :  { %v8981_v6 = vadd.f32 %v8980_v35, %v8979_v38  ;;  %v8943_v11 = vpop.f32.mrb[9].mxu1 }
 0x697   :  { %v8944_v17 = vadd.f32 %v8943_v11, %v8942_v39  ;;  %v8945_v25 = vpop.f32.mrb[10].mxu1 }
 0x698   :  { %v8946_v0 = vpop.f32.mrb[11].mxu1 }
 0x699   :  { %v2423_v7 = vadd.f32 %v8972_v62, %v8944_v17  ;;  %v8947_v23 = vadd.f32 %v8946_v0, %v8945_v25 }
 0x69b   :  { %v2426_v56 = vadd.f32 %v8975_v63, %v8947_v23 }
 0x69d   :  { %v8948_v4 = vpop.f32.mrb[12].mxu1 }
 0x69e   :  { %v8949_v26 = vpop.f32.mrb[13].mxu1 }
 0x69f   :  { %v8950_v52 = vadd.f32 %v8949_v26, %v8948_v4  ;;  %v8951_v57 = vpop.f32.mrb[14].mxu1 }
 0x6a0   :  { %v8952_v49 = vpop.f32.mrb[15].mxu1 }
 0x6a1   :  { %v2431_v33 = vadd.f32 %v8978_v51, %v8950_v52  ;;  %v8953_v32 = vadd.f32 %v8952_v49, %v8951_v57  ;;  %v10051_v52 = vld [vmem:[%s13350_s9 + $0x60] ss:$12 sps:$4 sm:$0xff]  }
 0x6a3   :  { %v2434_v54 = vadd.f32 %v8981_v6, %v8953_v32  ;;  %v10057_v32 = vld [vmem:[%s13350_s9 + $0x7c] ss:$12 sps:$4 sm:$0xff]  }
 0x6b5   :  { %v8998_v28 = vpop.f32.mrb[16].mxu1 }
 0x6b6   :  { %v8999_v9 = vpop.f32.mrb[17].mxu1 }
 0x6b7   :  { %v9000_v10 = vadd.f32 %v8999_v9, %v8998_v28  ;;  %v9001_v47 = vpop.f32.mrb[18].mxu1  ;;  %v10061_v28 = vld [vmem:[%s13350_s9 + $0x94] ss:$12 sps:$4 sm:$0xff]   ;;  %v10062_v9 = vld [vmem:[%s13350_s9 + $0x98] ss:$12 sps:$4 sm:$0xff]  }
 0x6b8   :  { %v9002_v48 = vpop.f32.mrb[19].mxu1 }
 0x6b9   :  { %v2643_v27 = vadd.f32 %v9000_v10, %v2423_v7  ;;  %v9003_v15 = vadd.f32 %v9002_v48, %v9001_v47  ;;  %v10065_v10 = vld [vmem:[%s13350_s9 + $0xac] ss:$12 sps:$4 sm:$0xff]   ;;  %v10066_v47 = vld [vmem:[%s13350_s9 + $0xb0] ss:$12 sps:$4 sm:$0xff]  }
 0x6ba   :  { %v10069_v48 = vld [vmem:[%s13350_s9 + $0xc4] ss:$12 sps:$4 sm:$0xff]  }
 0x6bb   :  { %v2647_v21 = vadd.f32 %v2643_v27, %v2049_v19  ;;  %v2644_v24 = vadd.f32 %v9003_v15, %v2426_v56  ;;  %v10070_v27 = vld [vmem:[%s13350_s9 + $0xc8] ss:$12 sps:$4 sm:$0xff]   ;;  %v10067_v15 = vld [vmem:[%s13350_s9 + $0xc0] ss:$12 sps:$4 sm:$0xff]  }
 0x6bd   :  { %v2651_v8 = vmax.f32 %v2647_v21, 0.0  ;;  %v2648_v61 = vadd.f32 %v2644_v24, %v2049_v19  ;;  %v9004_v22 = vpop.f32.mrb[20].mxu1  ;;  %v10073_v21 = vld [vmem:[%s13350_s9 + $0xdc] ss:$12 sps:$4 sm:$0xff]   ;;  %v10074_v24 = vld [vmem:[%s13350_s9 + $0xe0] ss:$12 sps:$4 sm:$0xff]  }
 0x6be   :  { %v9005_v5 = vpop.f32.mrb[21].mxu1 }
 0x6bf   :  { %v2652_v41 = vmax.f32 %v2648_v61, 0.0  ;;  %v9006_v58 = vadd.f32 %v9005_v5, %v9004_v22  ;;  %v9007_v34 = vpop.f32.mrb[22].mxu1  ;;  %v2676_v2 = vrot.slane %v2651_v8, 7  ;;  %v3050_v31 = vrot.slane %v2651_v8, 1  ;;  %v10077_v61 = vld [vmem:[%s13350_s9 + $0xf4] ss:$12 sps:$4 sm:$0xff]  }
 0x6c0   :  { %v9008_v3 = vpop.f32.mrb[23].mxu1  ;;  %v10078_v22 = vld [vmem:[%s13350_s9 + $0xf8] ss:$12 sps:$4 sm:$0xff]   ;;  %v10075_v5 = vld [vmem:[%s13350_s9 + $0xf0] ss:$12 sps:$4 sm:$0xff]  }
 0x6c1   :  { %v2677_v59 = vrot.slane %v2652_v41, 7  ;;  %v3051_v50 = vrot.slane %v2652_v41, 1  ;;  %v2645_v1 = vadd.f32 %v9006_v58, %v2431_v33  ;;  %v9009_v29 = vadd.f32 %v9008_v3, %v9007_v34  ;;  %v10082_v58 = vld [vmem:[%s13350_s9 + $0x110] ss:$12 sps:$4 sm:$0xff]   ;;  %v10079_v34 = vld [vmem:[%s13350_s9 + $0x108] ss:$12 sps:$4 sm:$0xff]  }
 0x6c2   :  { %v11685_v12 = vpack.c.bf16 %v2652_v41, %v2651_v8  ;;  %v10071_v8 = vld [vmem:[%s13350_s9 + $0xd8] ss:$12 sps:$4 sm:$0xff]   ;;  %v10083_v3 = vld [vmem:[%s13351_s10] ss:$12 sps:$4 sm:$0xff]  }
 0x6c3   :  { %v2682_v62 = vsel %vm318_vm0, %v2676_v2, %v2677_v59  ;;  %v2649_v43 = vadd.f32 %v2645_v1, %v2049_v19  ;;  %v2646_v46 = vadd.f32 %v9009_v29, %v2434_v54  ;;  %v3056_v63 = vsel %vm508_vm1, %v3050_v31, %v3051_v50  ;;  %v10081_v41 = vld [vmem:[%s13350_s9 + $0x10c] ss:$12 sps:$4 sm:$0xff]  }
 0x6c4   :  { %v10091_v1 = vld [vmem:[%s13351_s10 + $0xe0] ss:$12 sps:$4 sm:$0xff]   ;;  %v10088_v29 = vld [vmem:[%s13351_s10 + $0x18] ss:$12 sps:$4 sm:$0xff]  }
 0x6c5   :  { %v2653_v44 = vmax.f32 %v2649_v43, 0.0  ;;  %v2650_v55 = vadd.f32 %v2646_v46, %v2049_v19  ;;  %v10063_v19 = vld [vmem:[%s13350_s9 + $0xa8] ss:$12 sps:$4 sm:$0xff]   ;;  %v10096_v43 = vld [vmem:[%s13351_s10 + $0xf8] ss:$12 sps:$4 sm:$0xff]  }
 0x6c6   :  { %v10093_v46 = vld [vmem:[%s13351_s10 + $0x30] ss:$12 sps:$4 sm:$0xff]  }
 0x6c7   :  { %v2678_v51 = vrot.slane %v2653_v44, 7  ;;  %v3052_v38 = vrot.slane %v2653_v44, 1  ;;  %v2654_v39 = vmax.f32 %v2650_v55, 0.0  ;;  %v10098_v55 = vld [vmem:[%s13351_s10 + $0x48] ss:$12 sps:$4 sm:$0xff]  }
 0x6c9   :  { %v2681_v35 = vsel %vm318_vm0, %v2677_v59, %v2678_v51  ;;  %v11693_v6 = vpack.c.bf16 %v2654_v39, %v2653_v44  ;;  %v2679_v11 = vrot.slane %v2654_v39, 7  ;;  %v3053_v17 = vrot.slane %v2654_v39, 1  ;;  %v10087_v59 = vld [vmem:[%s13351_s10 + $0x8] ss:$12 sps:$4 sm:$0xff]   ;;  %v10100_v44 = vld [vmem:[%s13351_s10 + $0x4c] ss:$12 sps:$4 sm:$0xff]  }
 0x6ca   :  { %v2686_v25 = vsel %vm10845_vm4, %v2681_v35, 0.0  ;;  %v3055_v0 = vsel %vm508_vm1, %v3051_v50, %v3052_v38  ;;  %v10090_v50 = vld [vmem:[%s13351_s10 + $0x1c] ss:$12 sps:$4 sm:$0xff]  }
 0x6cb   :  { %v2680_v7 = vsel %vm318_vm0, %v2678_v51, %v2679_v11  ;;  %v2683_v23 = vsel %vm318_vm0, %v2679_v11, %v2676_v2  ;;  %v3059_v56 = vsel %vm10849_vm6, %v3055_v0, 0.0  ;;  %v3054_v4 = vsel %vm508_vm1, %v3052_v38, %v3053_v17  ;;  %v10085_v2 = vld [vmem:[%s13351_s10 + $0x4] ss:$12 sps:$4 sm:$0xff]   ;;  %v10106_v39 = vld [vmem:[%s13351_s10 + $0x128] ss:$12 sps:$4 sm:$0xff]  }
 0x6cc   :  { %v2684_v26 = vsel %vm10841_vm3, %v2683_v23, 0.0  ;;  %v2705_v42 = vpack.c.bf16 %v2680_v7, %v2686_v25  ;;  %v11712_v57 = vpack.c.bf16 %v3059_v56, %v3056_v63  ;;  %v3057_v49 = vsel %vm508_vm1, %v3053_v17, %v3050_v31  ;;  %v10086_v31 = vld [vmem:[%s13351_s10 + $0xc8] ss:$12 sps:$4 sm:$0xff]   ;;  %v10097_v63 = vld [vmem:[%s13351_s10 + $0x38] ss:$12 sps:$4 sm:$0xff]  }
 0x6cd   :  { %v2704_v33 = vpack.c.bf16 %v2682_v62, %v2684_v26  ;;  %v3061_v45 = vsel %vm10837_vm2, %v3057_v49, 0.0  ;;  %v10095_v62 = vld [vmem:[%s13351_s10 + $0x34] ss:$12 sps:$4 sm:$0xff]   ;;  %v10102_v51 = vld [vmem:[%s13351_s10 + $0x50] ss:$12 sps:$4 sm:$0xff]   ;;  %vm10640_vm0 = vmmov 0  }
 0x6ce   :  { %v11724_v54 = vpack.c.bf16 %v3061_v45, %v3054_v4  ;;  %v10105_v38 = vld [vmem:[%s13351_s10 + $0x64] ss:$12 sps:$4 sm:$0xff]   ;;  %v10107_v35 = vld [vmem:[%s13351_s10 + $0x68] ss:$12 sps:$4 sm:$0xff]   ;;  %v10111_v11 = vld [vmem:[%s13351_s10 + $0x140] ss:$12 sps:$4 sm:$0xff]  }
 0x6cf   :  { %8416 = vmatmul.mubr.msk.bf16.vlgmr.msra.gmra.mrb[24].mxu0 %vm369_vm5, %v2704_v33  ;;  %9677 = vmatprep.mubr.msk.bf16.mxu1 %vm369_vm5, %v2704_v33  ;;  %v10108_v17 = vld [vmem:[%s13351_s10 + $0x78] ss:$12 sps:$4 sm:$0xff]   ;;  %v10112_v25 = vld [vmem:[%s13351_s10 + $0x80] ss:$12 sps:$4 sm:$0xff]   ;;  %v10113_v23 = vld [vmem:[%s13351_s10 + $0x90] ss:$12 sps:$4 sm:$0xff]  }
 0x6d0   :  { %2949 = vmatpush1.bf16.msra.mxu0 %v10051_v52  ;;  %9678 = vmatmul.mubr.msk.bf16.vlgmr.msra.gmra.mrb[24].mxu1 %vm369_vm5, %v2705_v42  ;;  %v10115_v0 = vld [vmem:[%s13351_s10 + $0x94] ss:$12 sps:$4 sm:$0xff]   ;;  %v10116_v7 = vld [vmem:[%s13351_s10 + $0x158] ss:$12 sps:$4 sm:$0xff]   ;;  %v10121_v26 = vld [vmem:[%s13351_s10 + $0x170] ss:$12 sps:$4 sm:$0xff]  }
 0x6d1   :  { %9682 = vmatpush3.bf16.msra.mxu1 %v11682_v18  ;;  %9689 = vmatprep.mubr.msk.bf16.mxu1 %vm369_vm5, %v11685_v12  ;;  %v10059_v18 = vld [vmem:[%s13350_s9 + $0x90] ss:$12 sps:$4 sm:$0xff]   ;;  %v10117_v56 = vld [vmem:[%s13351_s10 + $0x98] ss:$12 sps:$4 sm:$0xff]   ;;  %v10123_v49 = vld [vmem:[%s13351_s10 + $0xc0] ss:$12 sps:$4 sm:$0xff]  }
 0x6d2   :  { %2950 = vmatprep.subr.bf16.mxu0 %v10057_v32  ;;  %9683 = vmatprep.subr.bf16.mxu1 %v10058_v36  ;;  %v10120_v4 = vld [vmem:[%s13351_s10 + $0xac] ss:$12 sps:$4 sm:$0xff]   ;;  %v10122_v52 = vld [vmem:[%s13351_s10 + $0xb0] ss:$12 sps:$4 sm:$0xff]   ;;  %v10131_v32 = vld [vmem:[%s13351_s10 + $0xf4] ss:$12 sps:$4 sm:$0xff]  }
 0x6d3   :  { %2818 = vmatprep.mubr.bf16.mxu0 %v10636_v13  ;;  %v10128_v33 = vld [vmem:[%s13351_s10 + $0xdc] ss:$12 sps:$4 sm:$0xff]   ;;  %v10126_v45 = vld [vmem:[%s13351_s10 + $0xd8] ss:$12 sps:$4 sm:$0xff]   ;;  %vm8069_vm1 = vcmask 41984  }
 0x6d4   :  { %2951 = vmatpush1.bf16.msra.mxu0 %v10055_v30  ;;  %v10132_v30 = vld [vmem:[%s13351_s10 + $0x108] ss:$12 sps:$4 sm:$0xff]  }
 0x6d5   :  { %9684 = vmatpush3.bf16.msra.mxu1 %v10058_v36  ;;  %2952 = vmatprep.subr.bf16.mxu0 %v10061_v28  ;;  %v10129_v36 = vld [vmem:[%s13351_s10 + $0xf0] ss:$12 sps:$4 sm:$0xff]  }
 0x6d6   :  { %9685 = vmatprep.subr.bf16.mxu1 %v10062_v9  ;;  %v10137_v28 = vld [vmem:[%s13351_s10 + $0x124] ss:$12 sps:$4 sm:$0xff]  }
 0x6d7   :  { %8417 = vmatmul.mubr.msk.bf16.gmra.mrb[28].mxu0 %vm369_vm5, %v2705_v42  ;;  %v10118_v42 = vld [vmem:[%s13351_s10 + $0xa8] ss:$12 sps:$4 sm:$0xff]  }
 0x6d8   :  { %2953 = vmatpush1.bf16.msra.mxu0 %v10059_v18  ;;  %2980 = vmatprep.mubr.bf16.mxu0 %v10636_v13  ;;  %v10140_v18 = vld [vmem:[%s13351_s10 + $0x13c] ss:$12 sps:$4 sm:$0xff]  }
 0x6d9   :  { %9686 = vmatpush3.bf16.msra.mxu1 %v10062_v9  ;;  %2954 = vmatprep.subr.bf16.mxu0 %v10065_v10  ;;  %v10135_v9 = vld [vmem:[%s13351_s10 + $0x120] ss:$12 sps:$4 sm:$0xff]   ;;  %v10138_v10 = vld [vmem:[%s13351_s10 + $0x138] ss:$12 sps:$4 sm:$0xff]  }
 0x6da   :  { %9687 = vmatprep.subr.bf16.mxu1 %v10066_v47 }
 0x6dc   :  { %2955 = vmatpush1.bf16.msra.mxu0 %v10063_v19  ;;  %v10141_v19 = vld [vmem:[%s13351_s10 + $0x150] ss:$12 sps:$4 sm:$0xff]  }
 0x6dd   :  { %9688 = vmatpush3.bf16.msra.mxu1 %v10066_v47  ;;  %3151 = vmatprep.subr.bf16.mxu0 %v10069_v48  ;;  %v10143_v47 = vld [vmem:[%s13351_s10 + $0x154] ss:$12 sps:$4 sm:$0xff]   ;;  %v10146_v48 = vld [vmem:[%s13351_s10 + $0x16c] ss:$12 sps:$4 sm:$0xff]  }
 0x6de   :  { %9693 = vmatprep.subr.bf16.mxu1 %v10070_v27 }
 0x6df   :  { %8432 = vmatmul.mubr.msk.bf16.vlgmr.msra.gmra.mrb[24].mxu0 %vm369_vm5, %v11685_v12  ;;  %v10092_v12 = vld [vmem:[%s13351_s10 + $0x20] ss:$12 sps:$4 sm:$0xff]  }
 0x6e0   :  { %9690 = vmatmul.mubr.msk.bf16.vlgmr.msra.gmra.mrb[24].mxu1 %vm369_vm5, %v11693_v6  ;;  %3152 = vmatpush1.bf16.msra.mxu0 %v10067_v15  ;;  %v10147_v15 = vld [vmem:[%s13352_s11 + $0x40] sm:$0xff]  }
 0x6e1   :  { %9694 = vmatpush3.bf16.msra.mxu1 %v10070_v27  ;;  %9701 = vmatprep.mubr.msk.bf16.mxu1 %vm369_vm5, %v11712_v57  ;;  %v10144_v27 = vld [vmem:[%s13351_s10 + $0x168] ss:$12 sps:$4 sm:$0xff]  }
 0x6e2   :  { %3153 = vmatprep.subr.bf16.mxu0 %v10073_v21  ;;  %9695 = vmatprep.subr.bf16.mxu1 %v10074_v24  ;;  %v10148_v21 = vld [vmem:[%s13352_s11] sm:$0xff]  }
 0x6e3   :  { %2990 = vmatprep.mubr.bf16.mxu0 %v10636_v13 }
 0x6e4   :  { %3154 = vmatpush1.bf16.msra.mxu0 %v10071_v8  ;;  %v10152_v8 = vld [vmem:[%s13352_s11 + $0x8] sm:$0xff]  }
 0x6e5   :  { %9696 = vmatpush3.bf16.msra.mxu1 %v10074_v24  ;;  %3155 = vmatprep.subr.bf16.mxu0 %v10077_v61  ;;  %v10149_v24 = vld [vmem:[%s13352_s11 + $0xc0] sm:$0xff]  }
 0x6e6   :  { %9697 = vmatprep.subr.bf16.mxu1 %v10078_v22 }
 0x6e7   :  { %8433 = vmatmul.mubr.msk.bf16.gmra.mrb[28].mxu0 %vm369_vm5, %v11693_v6  ;;  %v10110_v6 = vld [vmem:[%s13351_s10 + $0x7c] ss:$12 sps:$4 sm:$0xff]  }
 0x6e8   :  { %3156 = vmatpush1.bf16.msra.mxu0 %v10075_v5  ;;  %3183 = vmatprep.mubr.bf16.mxu0 %v10636_v13 }
 0x6e9   :  { %9698 = vmatpush3.bf16.msra.mxu1 %v10078_v22  ;;  %3157 = vmatprep.subr.bf16.mxu0 %v10081_v41 }
 0x6ea   :  { %9699 = vmatprep.subr.bf16.mxu1 %v10082_v58 }
 0x6ec   :  { %3158 = vmatpush1.bf16.msra.mxu0 %v10079_v34  ;;  %v2656_v34 = vld [vmem:[#allocation11 + $0x24] ss:$8 sm:$0x7] }
 0x6ed   :  { %9700 = vmatpush3.bf16.msra.mxu1 %v10082_v58  ;;  %3699 = vmatprep.subr.bf16.mxu0 %v10085_v2  ;;  %v3276_v58 = vsub.s32 2, %v10829_v20  ;;  %v3426_v2 = vld [vmem:[#allocation11 + $0x25] ss:$8 sm:$0x7] }
 0x6ee   :  { %9028 = vmatprep.subr.bf16.mxu1 %v10086_v31 }
 0x6ef   :  { %8464 = vmatmul.mubr.msk.bf16.vlgmr.msra.gmra.mrb[24].mxu0 %vm369_vm5, %v11712_v57  ;;  %v10125_v57 = vld [vmem:[%s13351_s10 + $0xc4] ss:$12 sps:$4 sm:$0xff]   ;;  %v3277_v31 = vrot.slane %v2656_v34, %v3276_v58 }
 0x6f0   :  { %9702 = vmatmul.mubr.msk.bf16.vlgmr.msra.gmra.mrb[24].mxu1 %vm369_vm5, %v11724_v54  ;;  %3700 = vmatpush1.bf16.msra.mxu0 %v10083_v3 }
 0x6f1   :  { %9029 = vmatpush3.bf16.msra.mxu1 %v10087_v59  ;;  %3784 = vmatprep.mubr.bf16.mxu1 %v11550_v40  ;;  %v3439_v59 = vrot.slane %v3426_v2, %v3276_v58 }
 0x6f2   :  { %3701 = vmatprep.subr.bf16.mxu0 %v10090_v50  ;;  %9030 = vmatprep.subr.bf16.mxu1 %v10091_v1 }
 0x6f3   :  { %3193 = vmatprep.mubr.bf16.mxu0 %v10636_v13  ;;  %v10101_v13 = vld [vmem:[%s13351_s10 + $0x110] ss:$12 sps:$4 sm:$0xff]  }
 0x6f4   :  { %3702 = vmatpush1.bf16.msra.mxu0 %v10088_v29 }
 0x6f5   :  { %9031 = vmatpush3.bf16.msra.mxu1 %v10092_v12  ;;  %3703 = vmatprep.subr.bf16.mxu0 %v10095_v62 }
 0x6f6   :  { %9032 = vmatprep.subr.bf16.mxu1 %v10096_v43 }
 0x6f7   :  { %8465 = vmatmul.mubr.msk.bf16.gmra.mrb[28].mxu0 %vm369_vm5, %v11724_v54  ;;  %v10134_v54 = vld [vmem:[%s13351_s10 + $0x10c] ss:$12 sps:$4 sm:$0xff]  }
 0x6f8   :  { %3704 = vmatpush1.bf16.msra.mxu0 %v10093_v46  ;;  %3731 = vmatprep.mubr.bf16.mxu0 %v11550_v40  ;;  %v10103_v40 = vld [vmem:[%s13351_s10 + $0x60] ss:$12 sps:$4 sm:$0xff]  }
 0x6f9   :  { %9033 = vmatpush3.bf16.msra.mxu1 %v10097_v63  ;;  %3705 = vmatprep.subr.bf16.mxu0 %v10100_v44 }
 0x6fa   :  { %9034 = vmatprep.subr.bf16.mxu1 %v10101_v13 }
 0x6fc   :  { %3706 = vmatpush1.bf16.msra.mxu0 %v10098_v55 }
 0x6fd   :  { %9035 = vmatpush3.bf16.msra.mxu1 %v10102_v51  ;;  %3707 = vmatprep.subr.bf16.mxu0 %v10105_v38 }
 0x6fe   :  { %9036 = vmatprep.subr.bf16.mxu1 %v10106_v39 }
 0x700   :  { %3708 = vmatpush1.bf16.msra.mxu0 %v10103_v40 }
 0x701   :  { %9037 = vmatpush3.bf16.msra.mxu1 %v10107_v35  ;;  %3709 = vmatprep.subr.bf16.mxu0 %v10110_v6 }
 0x702   :  { %9038 = vmatprep.subr.bf16.mxu1 %v10111_v11 }
 0x704   :  { %3710 = vmatpush1.bf16.msra.mxu0 %v10108_v17 }
 0x705   :  { %9039 = vmatpush3.bf16.msra.mxu1 %v10112_v25  ;;  %3711 = vmatprep.subr.bf16.mxu0 %v10115_v0 }
 0x706   :  { %9040 = vmatprep.subr.bf16.mxu1 %v10116_v7 }
 0x708   :  { %3712 = vmatpush1.bf16.msra.mxu0 %v10113_v23  ;;  %v3814_v23 = vld [vmem:[#allocation11 + $0x26] ss:$8 sm:$0x7] }
 0x709   :  { %9041 = vmatpush3.bf16.msra.mxu1 %v10117_v56  ;;  %3713 = vmatprep.subr.bf16.mxu0 %v10120_v4  ;;  %v3827_v4 = vrot.slane %v3814_v23, %v3276_v58 }
 0x70a   :  { %9042 = vmatprep.subr.bf16.mxu1 %v10121_v26  ;;  %v3844_v26 = vld [vmem:[#allocation11 + $0x27] ss:$8 sm:$0x7] }
 0x70c   :  { %3714 = vmatpush1.bf16.msra.mxu0 %v10118_v42 }
 0x70d   :  { %9043 = vmatpush3.bf16.msra.mxu1 %v10122_v52  ;;  %3715 = vmatprep.subr.bf16.mxu0 %v10125_v57  ;;  %v3857_v52 = vrot.slane %v3844_v26, %v3276_v58 }
 0x70e   :  { %9056 = vmatprep.subr.bf16.mxu1 %v10147_v15 }
 0x710   :  { %3716 = vmatpush1.bf16.msra.mxu0 %v10123_v49  ;;  %3785 = vmatmul.mubr.bf16.vlgmr.msra.gmra.mrb[28].mxu1 %v11564_v60  ;;  %v3269_v49 = vrot.slane %v2656_v34, %v11271_v14 }
 0x711   :  { %3792 = vmatprep.mubr.bf16.mxu1 %v11597_v37  ;;  %3717 = vmatprep.subr.bf16.mxu0 %v10128_v33  ;;  %v3431_v33 = vrot.slane %v3426_v2, %v11271_v14 }
 0x712   :  { %9057 = vmatpush3.bf16.msra.mxu1 %v10148_v21 }
 0x714   :  { %3718 = vmatpush1.bf16.msra.mxu0 %v10126_v45  ;;  %v3273_v45 = vrot.slane %v2656_v34, %v11274_v16 }
 0x715   :  { %3719 = vmatprep.subr.bf16.mxu0 %v10131_v32  ;;  %v3435_v32 = vrot.slane %v3426_v2, %v11274_v16 }
 0x718   :  { %3720 = vmatpush1.bf16.msra.mxu0 %v10129_v36  ;;  %3793 = vmatmul.mubr.bf16.gmra.mrb[32].mxu1 %v11602_v53  ;;  %v10637_v36 = vmov 1966171168  }
 0x719   :  { %3721 = vmatprep.subr.bf16.mxu0 %v10134_v54  ;;  %v3890_v54 = vunpack.c.l.s4 %v10637_v36  ;;  %v10157_v36 = vld [vmem:[%s13352_s11 + $0xd0] sm:$0xff]  }
 0x71c   :  { %3722 = vmatpush1.bf16.msra.mxu0 %v10132_v30 }
 0x71d   :  { %3723 = vmatprep.subr.bf16.mxu0 %v10137_v28 }
 0x720   :  { %3724 = vmatpush1.bf16.msra.mxu0 %v10135_v9  ;;  %v9749_v9 = vadd.f32 %v3431_v33, %v3269_v49 }
 0x721   :  { %3725 = vmatprep.subr.bf16.mxu0 %v10140_v18 }
 0x724   :  { %3726 = vmatpush1.bf16.msra.mxu0 %v10138_v10  ;;  %v11987_v10 = vadd.f32 %v3435_v32, %v3273_v45  ;;  %v10156_v32 = vld [vmem:[%s13352_s11 + $0x10] sm:$0xff]  }
 0x725   :  { %3727 = vmatprep.subr.bf16.mxu0 %v10143_v47  ;;  %v3891_v47 = vunpack.c.0.s8 %v3890_v54  ;;  %v10158_v54 = vld [vmem:[%s13352_s11 + $0x90] sm:$0xff]  }
 0x728   :  { %3728 = vmatpush1.bf16.msra.mxu0 %v10141_v19  ;;  %v11990_v19 = vrot.slane %v3814_v23, %v11271_v14 }
 0x729   :  { %3729 = vmatprep.subr.bf16.mxu0 %v10146_v48 }
 0x72c   :  { %3730 = vmatpush1.bf16.msra.mxu0 %v10144_v27  ;;  %v11993_v27 = vrot.slane %v3814_v23, %v11274_v16 }
 0x72d   :  { %9078 = vmatprep.subr.bf16.mxu0 %v10149_v24  ;;  %v11996_v24 = vrot.slane %v3844_v26, %v11271_v14 }
 0x72f   :  { %3732 = vmatmul.mubr.bf16.vlgmr.msra.gmra.mrb[24].mxu0 %v11564_v60  ;;  %v10150_v60 = vld [vmem:[%s13352_s11 + $0x80] sm:$0xff]  }
 0x730   :  { %3741 = vmatprep.mubr.bf16.mxu0 %v11597_v37  ;;  %v10151_v37 = vld [vmem:[%s13352_s11 + $0x48] sm:$0xff]   ;;  %9079 = vmatpush3.bf16.msra.mxu0 %v10150_v60 }
 0x731   :  { %9058 = vmatprep.subr.bf16.mxu1 %v10151_v37 }
 0x732   :  { %9059 = vmatpush3.bf16.msra.mxu1 %v10152_v8 }
 0x737   :  { %3742 = vmatmul.mubr.bf16.gmra.mrb[28].mxu0 %v11602_v53  ;;  %v10153_v53 = vld [vmem:[%s13352_s11 + $0xc8] sm:$0xff]  }
 0x738   :  { %9080 = vmatprep.subr.bf16.mxu0 %v10153_v53 }
 0x7c3   :  { %v9703_v61 = vpop.f32.mrb[24].mxu1 }
 0x7c4   :  { %v3238_v22 = vpop.f32.mrb[25].mxu1  ;;  %v3289_v6 = vadd.f32 %v9703_v61, %v3277_v31  ;;  %v12000_v61 = vrot.slane %v3844_v26, %v11274_v16 }
 0x7c5   :  { %v9704_v5 = vpop.f32.mrb[26].mxu1  ;;  %v3283_v62 = vadd.f32 %v3277_v31, %v3238_v22 }
 0x7c6   :  { %v3241_v41 = vpop.f32.mrb[27].mxu1  ;;  %v3292_v25 = vadd.f32 %v9704_v5, %v3277_v31  ;;  %v12003_v5 = vsub.s32 %v3891_v47, %v10829_v20  ;;  %v10159_v47 = vld [vmem:[%s13352_s11 + $0x58] sm:$0xff]  }
 0x7c7   :  { %v3286_v63 = vadd.f32 %v3277_v31, %v3241_v41 }
 0x7e3   :  { %v9044_v3 = vpop.f32.mrb[28].mxu1 }
 0x7e4   :  { %v9045_v50 = vpop.f32.mrb[29].mxu1 }
 0x7e5   :  { %v9046_v1 = vadd.f32 %v9045_v50, %v9044_v3  ;;  %v9047_v29 = vpop.f32.mrb[30].mxu1 }
 0x7e6   :  { %v9048_v12 = vpop.f32.mrb[31].mxu1 }
 0x7e7   :  { %v3787_v43 = vadd.f32 %v9046_v1, %v3439_v59  ;;  %v9049_v46 = vadd.f32 %v9048_v12, %v9047_v29 }
 0x7e9   :  { %v3803_v44 = vadd.f32 %v3787_v43, %v3283_v62  ;;  %v3790_v13 = vadd.f32 %v9049_v46, %v3439_v59 }
 0x7eb   :  { %v3806_v55 = vadd.f32 %v3790_v13, %v3286_v63  ;;  %v9050_v51 = vpop.f32.mrb[32].mxu1  ;;  %v3833_v42 = vmul.f32 %v3827_v4, %v3803_v44 }
 0x7ec   :  { %v9051_v38 = vpop.f32.mrb[33].mxu1 }
 0x7ed   :  { %v9052_v39 = vadd.f32 %v9051_v38, %v9050_v51  ;;  %v9053_v40 = vpop.f32.mrb[34].mxu1  ;;  %v3836_v57 = vmul.f32 %v3827_v4, %v3806_v55  ;;  %v3863_v30 = vadd.f32 %v3857_v52, %v3833_v42 }
 0x7ee   :  { %v9054_v35 = vpop.f32.mrb[35].mxu1 }
 0x7ef   :  { %v3795_v11 = vadd.f32 %v9052_v39, %v3439_v59  ;;  %v9055_v17 = vadd.f32 %v9054_v35, %v9053_v40  ;;  %v3866_v18 = vadd.f32 %v3857_v52, %v3836_v57  ;;  %v3875_v15 = vmax.f32 %v3863_v30, 0.0 }
 0x7f0   :  { %v13390_v39 = vlaneseq }
 0x7f1   :  { %v3809_v0 = vadd.f32 %v3795_v11, %v3289_v6  ;;  %v3798_v7 = vadd.f32 %v9055_v17, %v3439_v59  ;;  %v3878_v53 = vmax.f32 %v3866_v18, 0.0  ;;  %v3948_v3 = vcombine.high %v3875_v15, %v3875_v15 }
 0x7f2   :  { %v12016_v46 = vrot.slane %v3875_v15, %v12003_v5  ;;  %vm12026_vm12 = vcmp.lt.s32.totalorder %v13390_v39, 320  ;;  %vm3930_vm13 = vcmp.ge.s32.totalorder %v13390_v39, 64  ;;  %vm3931_vm14 = vcmp.lt.s32.totalorder %v13390_v39, 384 }
 0x7f3   :  { %v3812_v56 = vadd.f32 %v3798_v7, %v3292_v25  ;;  %v3839_v28 = vmul.f32 %v3827_v4, %v3809_v0  ;;  %v4058_v1 = vcombine.high %v3878_v53, %v3878_v53  ;;  %v12020_v51 = vrot.slane %v3948_v3, %v12003_v5  ;;  %v10154_v0 = vld [vmem:[%s13352_s11 + $0x88] sm:$0xff]   ;;  %v10155_v7 = vld [vmem:[%s13352_s11 + $0x50] sm:$0xff]   ;;  %vm12258_vm15 = vmand %vm3930_vm13, %vm3931_vm14 }
 0x7f4   :  { %v12023_v38 = vrot.slane %v3878_v53, %v12003_v5  ;;  %9081 = vmatpush3.bf16.msra.mxu0 %v10154_v0  ;;  %9060 = vmatprep.subr.bf16.mxu1 %v10155_v7 }
 0x7f5   :  { %v3869_v37 = vadd.f32 %v3857_v52, %v3839_v28  ;;  %v3842_v41 = vmul.f32 %v3827_v4, %v3812_v56  ;;  %v12035_v25 = vrot.slane %v4058_v1, %v12003_v5  ;;  %9061 = vmatpush3.bf16.msra.mxu1 %v10156_v32  ;;  %9082 = vmatprep.subr.bf16.mxu0 %v10157_v36 }
 0x7f6   :  { %9062 = vmatprep.subr.bf16.mxu1 %v10159_v47 }
 0x7f7   :  { %v12010_v16 = vmax.f32 %v3869_v37, 0.0  ;;  %v3872_v63 = vadd.f32 %v3857_v52, %v3842_v41 }
 0x7f8   :  { %9083 = vmatpush3.bf16.msra.mxu0 %v10158_v54 }
 0x7f9   :  { %v12032_v17 = vrot.slane %v12010_v16, %v12003_v5  ;;  %v4168_v33 = vcombine.high %v12010_v16, %v12010_v16  ;;  %v12047_v45 = vmax.f32 %v3872_v63, 0.0 }
 0x802   :  { %v3733_v48 = vpop.f32.mrb[24].mxu0 }
 0x803   :  { %v9750_v21 = vadd.f32 %v9749_v9, %v3733_v48  ;;  %v3735_v60 = vpop.f32.mrb[25].mxu0  ;;  %v10161_v48 = vld [vmem:[%s13352_s11 + $0xd8] sm:$0xff]  }
 0x804   :  { %v9752_v8 = vadd.f32 %v11987_v10, %v3735_v60  ;;  %v3737_v22 = vpop.f32.mrb[26].mxu0  ;;  %9084 = vmatprep.subr.bf16.mxu0 %v10161_v48 }
 0x805   :  { %v3831_v58 = vmul.f32 %v9750_v21, %v11990_v19  ;;  %v9754_v34 = vadd.f32 %v9749_v9, %v3737_v22  ;;  %v3739_v2 = vpop.f32.mrb[27].mxu0 }
 0x806   :  { %v3832_v14 = vmul.f32 %v9752_v8, %v11993_v27  ;;  %v9756_v31 = vadd.f32 %v11987_v10, %v3739_v2 }
 0x807   :  { %v3861_v59 = vadd.f32 %v11996_v24, %v3831_v58  ;;  %v3834_v50 = vmul.f32 %v9754_v34, %v11990_v19 }
 0x808   :  { %v3862_v29 = vadd.f32 %v12000_v61, %v3832_v14  ;;  %v3835_v12 = vmul.f32 %v9756_v31, %v11993_v27 }
 0x809   :  { %v3873_v62 = vmax.f32 %v3861_v59, 0.0  ;;  %v3864_v43 = vadd.f32 %v11996_v24, %v3834_v50  ;;  %v10163_v59 = vld [vmem:[%s13352_s11 + $0x60] sm:$0xff]  }
 0x80a   :  { %v3874_v44 = vmax.f32 %v3862_v29, 0.0  ;;  %v3865_v13 = vadd.f32 %v12000_v61, %v3835_v12  ;;  %v3743_v55 = vpop.f32.mrb[28].mxu0 }
 0x80b   :  { %v3876_v35 = vmax.f32 %v3864_v43, 0.0  ;;  %v9758_v6 = vadd.f32 %v9749_v9, %v3743_v55  ;;  %v3745_v11 = vpop.f32.mrb[29].mxu0 }
 0x80c   :  { %v3888_v23 = vcombine.low %v3873_v62, %v3874_v44  ;;  %v3947_v56 = vcombine.high %v3873_v62, %v3874_v44  ;;  %v3877_v4 = vmax.f32 %v3865_v13, 0.0  ;;  %v9760_v26 = vadd.f32 %v11987_v10, %v3745_v11  ;;  %v3747_v42 = vpop.f32.mrb[30].mxu0 }
 0x80d   :  { %v3837_v52 = vmul.f32 %v9758_v6, %v11990_v19  ;;  %v9762_v57 = vadd.f32 %v9749_v9, %v3747_v42  ;;  %v3749_v49 = vpop.f32.mrb[31].mxu0  ;;  %v12107_v13 = vrot.slane %v4168_v33, %v12003_v5  ;;  %v12127_v42 = vrot.slane %v12047_v45, %v12003_v5 }
 0x80e   :  { %v4004_v30 = vcombine.low %v3876_v35, %v3877_v4  ;;  %v4057_v28 = vcombine.high %v3876_v35, %v3877_v4  ;;  %v3838_v9 = vmul.f32 %v9760_v26, %v11993_v27  ;;  %v9764_v18 = vadd.f32 %v11987_v10, %v3749_v49  ;;  %v10160_v10 = vld [vmem:[%s13352_s11 + $0x18] sm:$0xff]   ;;  %v10165_v35 = vld [vmem:[%s13352_s11 + $0xe0] sm:$0xff]  }
 0x80f   :  { %v3867_v15 = vadd.f32 %v11996_v24, %v3837_v52  ;;  %v3840_v21 = vmul.f32 %v9762_v57, %v11990_v19  ;;  %v3895_v60 = vrot.slane %v3888_v23, %v12003_v5  ;;  %v12070_v37 = vrot.slane %v3947_v56, %v12003_v5  ;;  %9063 = vmatpush3.bf16.msra.mxu1 %v10160_v10  ;;  %v10166_v23 = vld [vmem:[%s13352_s11 + $0xa0] sm:$0xff]   ;;  %v10167_v52 = vld [vmem:[%s13352_s11 + $0x68] sm:$0xff]   ;;  %v10171_v10 = vld [vmem:[%s13352_s11 + $0x70] sm:$0xff]  }
 0x810   :  { %v3868_v53 = vadd.f32 %v12000_v61, %v3838_v9  ;;  %v3841_v8 = vmul.f32 %v9764_v18, %v11993_v27  ;;  %v12078_v22 = vrot.slane %v4004_v30, %v12003_v5  ;;  %v12081_v41 = vrot.slane %v4057_v28, %v12003_v5  ;;  %9064 = vmatprep.subr.bf16.mxu1 %v10163_v59  ;;  %v10168_v28 = vld [vmem:[%s13352_s11 + $0x28] sm:$0xff]  }
 0x811   :  { %v3879_v19 = vmax.f32 %v3867_v15, 0.0  ;;  %v3870_v58 = vadd.f32 %v11996_v24, %v3840_v21  ;;  %v3917_v34 = vcombine.high %v3895_v60, %v12016_v46  ;;  %v3903_v2 = vcombine.low %v3895_v60, %v12016_v46  ;;  %v10162_v24 = vld [vmem:[%s13352_s11 + $0x98] sm:$0xff]   ;;  %v10164_v46 = vld [vmem:[%s13352_s11 + $0x20] sm:$0xff]   ;;  %v10170_v60 = vld [vmem:[%s13352_s11 + $0xa8] sm:$0xff]  }
 0x812   :  { %v3880_v14 = vmax.f32 %v3868_v53, 0.0  ;;  %v3871_v31 = vadd.f32 %v12000_v61, %v3841_v8  ;;  %v3963_v27 = vcombine.low %v12070_v37, %v12020_v51  ;;  %v3974_v3 = vcombine.high %v12070_v37, %v12020_v51  ;;  %9085 = vmatpush3.bf16.msra.mxu0 %v10162_v24  ;;  %v10174_v51 = vld [vmem:[%s13352_s11 + $0xb0] sm:$0xff]  }
 0x813   :  { %v3882_v50 = vmax.f32 %v3870_v58, 0.0  ;;  %v3924_v16 = vrot.slane %v3917_v34, %v12003_v5  ;;  %v3910_v61 = vrot.slane %v3903_v2, %v12003_v5  ;;  %v4019_v1 = vcombine.low %v12078_v22, %v12023_v38  ;;  %9065 = vmatpush3.bf16.msra.mxu1 %v10164_v46  ;;  %9086 = vmatprep.subr.bf16.mxu0 %v10165_v35  ;;  %v10173_v58 = vld [vmem:[%s13352_s11 + $0xf0] sm:$0xff]  }
 0x814   :  { %v4114_v29 = vcombine.low %v3879_v19, %v3880_v14  ;;  %v4167_v12 = vcombine.high %v3879_v19, %v3880_v14  ;;  %v3883_v62 = vmax.f32 %v3871_v31, 0.0  ;;  %v3970_v43 = vrot.slane %v3963_v27, %v12003_v5  ;;  %9066 = vmatprep.subr.bf16.mxu1 %v10167_v52  ;;  %v10172_v31 = vld [vmem:[%s13352_s11 + $0x30] sm:$0xff]  }
 0x815   :  { %3925 = vrot.lane.b32.xlu0 %v3924_v16, %s10625_s23  ;;  %v3935_v63 = vcombine.high %v3910_v61, %v3910_v61  ;;  %v3939_v44 = vcombine.high %v3924_v16, %v3924_v16  ;;  %v4026_v55 = vrot.slane %v4019_v1, %v12003_v5  ;;  %3916 = vst.msk [vmem:[#allocation2] ss:$2 sm:$0x7] %vm12026_vm12, %v3910_v61  ;;  %v10177_v61 = vld [vmem:[%s13352_s11 + $0xf8] sm:$0xff]  }
 0x816   :  { %v4224_v6 = vcombine.low %v3882_v50, %v3883_v62  ;;  %v4277_v11 = vcombine.high %v3882_v50, %v3883_v62  ;;  %v4121_v0 = vrot.slane %v4114_v29, %v12003_v5  ;;  %v3989_v7 = vcombine.high %v3970_v43, %v3970_v43  ;;  %3973 = vst.msk [vmem:[#allocation2 + $0x14] ss:$2 sm:$0x7] %vm12026_vm12, %v3970_v43  ;;  %v10175_v50 = vld [vmem:[%s13352_s11 + $0x78] sm:$0xff]   ;;  %v10179_v62 = vld [vmem:[%s13352_s11 + $0x140] sm:$0xff]  }
 0x817   :  { %3940 = vrot.lane.b32.xlu1 %v3939_v44, %s10625_s23  ;;  %v4175_v56 = vrot.slane %v4167_v12, %v12003_v5  ;;  %v4030_v4 = vcombine.high %v12078_v22, %v12023_v38  ;;  %v4045_v26 = vcombine.high %v4026_v55, %v4026_v55  ;;  %3938 = vst.msk [vmem:[#allocation2 + $0xa] ss:$2 sm:$0x7] %vm12026_vm12, %v3935_v63  ;;  %4029 = vst.msk [vmem:[#allocation2 + $0x28] ss:$2 sm:$0x7] %vm12026_vm12, %v4026_v55 }
 0x818   :  { %v4140_v57 = vcombine.high %v4121_v0, %v12032_v17  ;;  %v4129_v49 = vcombine.low %v4121_v0, %v12032_v17  ;;  %v12139_v33 = vrot.slane %v4224_v6, %v12003_v5  ;;  %v4073_v32 = vcombine.low %v12081_v41, %v12035_v25  ;;  %3992 = vst.msk [vmem:[#allocation2 + $0x1e] ss:$2 sm:$0x7] %vm12026_vm12, %v3989_v7  ;;  %v10176_v1 = vld [vmem:[%s13352_s11 + $0x38] sm:$0xff]   ;;  %v10181_v44 = vld [vmem:[%s13352_s11 + $0x1c0] sm:$0xff]  }
 0x819   :  { %v4183_v36 = vcombine.low %v4175_v56, %v12107_v13  ;;  %v4194_v54 = vcombine.high %v4175_v56, %v12107_v13  ;;  %v4084_v30 = vcombine.high %v12081_v41, %v12035_v25  ;;  %v4278_v17 = vcombine.high %v12047_v45, %v12047_v45  ;;  %4048 = vst.msk [vmem:[#allocation2 + $0x32] ss:$2 sm:$0x7] %vm12026_vm12, %v4045_v26  ;;  %v10169_v45 = vld [vmem:[%s13352_s11 + $0xe8] sm:$0xff]   ;;  %v10178_v43 = vld [vmem:[%s13352_s11 + $0xb8] sm:$0xff]  }
 0x81a   :  { %v4147_v9 = vrot.slane %v4140_v57, %v12003_v5  ;;  %v4136_v18 = vrot.slane %v4129_v49, %v12003_v5  ;;  %v4250_v47 = vcombine.high %v12139_v33, %v12127_v42  ;;  %v4239_v48 = vcombine.low %v12139_v33, %v12127_v42  ;;  %9087 = vmatpush3.bf16.msra.mxu0 %v10166_v23  ;;  %v10200_v25 = vld [vmem:[%s13352_s11 + $0x168] sm:$0xff]  }
 0x81b   :  { %v4190_v15 = vrot.slane %v4183_v36, %v12003_v5  ;;  %v4080_v21 = vrot.slane %v4073_v32, %v12003_v5  ;;  %v4292_v14 = vrot.slane %v4278_v17, %v12003_v5  ;;  %9067 = vmatpush3.bf16.msra.mxu1 %v10168_v28  ;;  %v3981_v27 = vrot.slane %v3974_v3, %v12003_v5 }
 0x81c   :  { %4148 = vrot.lane.b32.xlu0 %v4147_v9, %s10625_s23  ;;  %v4155_v53 = vcombine.high %v4136_v18, %v4136_v18  ;;  %v4159_v8 = vcombine.high %v4147_v9, %v4147_v9  ;;  %v4246_v19 = vrot.slane %v4239_v48, %v12003_v5  ;;  %4139 = vst.msk [vmem:[#allocation2 + $0x1] ss:$2 sm:$0x7] %vm12026_vm12, %v4136_v18 }
 0x81d   :  { %v4209_v34 = vcombine.high %v4190_v15, %v4190_v15  ;;  %v4099_v2 = vcombine.high %v4080_v21, %v4080_v21  ;;  %4083 = vst.msk [vmem:[#allocation2 + $0x3c] ss:$2 sm:$0x7] %vm12026_vm12, %v4080_v21  ;;  %4193 = vst.msk [vmem:[#allocation2 + $0x15] ss:$2 sm:$0x7] %vm12026_vm12, %v4190_v15  ;;  %v4285_v59 = vrot.slane %v4277_v11, %v12003_v5  ;;  %9088 = vmatprep.subr.bf16.mxu0 %v10169_v45 }
 0x81e   :  { %4160 = vrot.lane.b32.xlu1 %v4159_v8, %s10625_s23  ;;  %v4265_v24 = vcombine.high %v4246_v19, %v4246_v19  ;;  %4158 = vst.msk [vmem:[#allocation2 + $0xb] ss:$2 sm:$0x7] %vm12026_vm12, %v4155_v53  ;;  %4249 = vst.msk [vmem:[#allocation2 + $0x29] ss:$2 sm:$0x7] %vm12026_vm12, %v4246_v19  ;;  %9089 = vmatpush3.bf16.msra.mxu0 %v10170_v60  ;;  %v4201_v37 = vrot.slane %v4194_v54, %v12003_v5 }
 0x81f   :  { %4102 = vst.msk [vmem:[#allocation2 + $0x46] ss:$2 sm:$0x7] %vm12026_vm12, %v4099_v2  ;;  %4212 = vst.msk [vmem:[#allocation2 + $0x1f] ss:$2 sm:$0x7] %vm12026_vm12, %v4209_v34  ;;  %9068 = vmatprep.subr.bf16.mxu1 %v10171_v10  ;;  %v4293_v3 = vcombine.low %v4285_v59, %v4292_v14  ;;  %v4304_v16 = vcombine.high %v4285_v59, %v4292_v14  ;;  %9090 = vmatprep.subr.bf16.mxu0 %v10173_v58 }
 0x820   :  { %3982 = vrot.lane.b32.xlu0 %v3981_v27, %s10625_s23  ;;  %4268 = vst.msk [vmem:[#allocation2 + $0x33] ss:$2 sm:$0x7] %vm12026_vm12, %v4265_v24  ;;  %9069 = vmatpush3.bf16.msra.mxu1 %v10172_v31  ;;  %v3993_v29 = vcombine.high %v3981_v27, %v3981_v27  ;;  %v4213_v46 = vcombine.high %v4201_v37, %v4201_v37 }
 0x821   :  { %v4300_v12 = vrot.slane %v4293_v3, %v12003_v5  ;;  %9070 = vmatprep.subr.bf16.mxu1 %v10175_v50  ;;  %v4037_v13 = vrot.slane %v4030_v4, %v12003_v5  ;;  %v4257_v55 = vrot.slane %v4250_v47, %v12003_v5  ;;  %v4091_v40 = vrot.slane %v4084_v30, %v12003_v5 }
 0x822   :  { %4202 = vrot.lane.b32.xlu1 %v4201_v37, %s10625_s23  ;;  %9091 = vmatpush3.bf16.msra.mxu0 %v10174_v51  ;;  %v4311_v22 = vrot.slane %v4304_v16, %v12003_v5  ;;  %v10638_v4 = vmov 1983009808   ;;  %v10180_v37 = vld [vmem:[%s13352_s11 + $0x100] sm:$0xff]  }
 0x823   :  { %v4319_v63 = vcombine.high %v4300_v12, %v4300_v12  ;;  %4303 = vst.msk [vmem:[#allocation2 + $0x3d] ss:$2 sm:$0x7] %vm12026_vm12, %v4300_v12  ;;  %9092 = vmatprep.subr.bf16.mxu0 %v10177_v61  ;;  %v4049_v35 = vcombine.high %v4037_v13, %v4037_v13  ;;  %v4269_v38 = vcombine.high %v4257_v55, %v4257_v55  ;;  %v4993_v39 = vunpack.c.l.s4 %v10638_v4 }
 0x824   :  { %3994 = vrot.lane.b32.xlu0 %v3993_v29, %s10625_s23  ;;  %9071 = vmatpush3.bf16.msra.mxu1 %v10176_v1  ;;  %v4103_v6 = vcombine.high %v4091_v40, %v4091_v40  ;;  %v4323_v11 = vcombine.high %v4311_v22, %v4311_v22 }
 0x825   :  { %4322 = vst.msk [vmem:[#allocation2 + $0x47] ss:$2 sm:$0x7] %vm12026_vm12, %v4319_v63  ;;  %9100 = vmatprep.subr.bf16.mxu1 %v10179_v62  ;;  %v4994_v33 = vunpack.c.0.s8 %v4993_v39  ;;  %v10182_v63 = vld [vmem:[%s13352_s11 + $0x180] sm:$0xff]   ;;  %v10190_v39 = vld [vmem:[%s13352_s11 + $0x1d0] sm:$0xff]  }
 0x826   :  { %4214 = vrot.lane.b32.xlu1 %v4213_v46, %s10625_s23  ;;  %9093 = vmatpush3.bf16.msra.mxu0 %v10178_v43 }
 0x827   :  { %9122 = vmatprep.subr.bf16.mxu0 %v10181_v44  ;;  %v12276_v9 = vsub.s32 %v4994_v33, %v10829_v20  ;;  %v10183_v44 = vld [vmem:[%s13352_s11 + $0x148] sm:$0xff]  }
 0x828   :  { %4038 = vrot.lane.b32.xlu0 %v4037_v13, %s10625_s23 }
 0x82a   :  { %4258 = vrot.lane.b32.xlu1 %v4257_v55, %s10625_s23 }
 0x82c   :  { %4050 = vrot.lane.b32.xlu0 %v4049_v35, %s10625_s23 }
 0x82e   :  { %4270 = vrot.lane.b32.xlu1 %v4269_v38, %s10625_s23 }
 0x830   :  { %4092 = vrot.lane.b32.xlu0 %v4091_v40, %s10625_s23  ;;  %v10186_v40 = vld [vmem:[%s13352_s11 + $0x1c8] sm:$0xff]  }
 0x832   :  { %4312 = vrot.lane.b32.xlu1 %v4311_v22, %s10625_s23 }
 0x834   :  { %4104 = vrot.lane.b32.xlu0 %v4103_v6, %s10625_s23  ;;  %v10185_v6 = vld [vmem:[%s13352_s11 + $0x108] sm:$0xff]  }
 0x836   :  { %4324 = vrot.lane.b32.xlu1 %v4323_v11, %s10625_s23 }
 0x887   :  { %v3926_v0 = vpop.permute.xlu0 %3925 }
 0x888   :  { %v3927_v41 = vrot.slane %v3926_v0, 7 }
 0x889   :  { %v3941_v7 = vpop.permute.xlu1 %3940 }
 0x88a   :  { %v3928_v5 = vsel %vm369_vm5, %v3927_v41, %v3926_v0  ;;  %v3942_v23 = vrot.slane %v3941_v7, 7 }
 0x88b   :  { %3934 = vst.msk [vmem:[#allocation2 + $0x4] ss:$2 sm:$0x7] %vm12258_vm15, %v3928_v5 }
 0x88c   :  { %v3943_v56 = vsel %vm369_vm5, %v3942_v23, %v3941_v7  ;;  %v10188_v7 = vld [vmem:[%s13352_s11 + $0x150] sm:$0xff]   ;;  %v10187_v23 = vld [vmem:[%s13352_s11 + $0x188] sm:$0xff]  }
 0x88d   :  { %3946 = vst.msk [vmem:[#allocation2 + $0xe] ss:$2 sm:$0x7] %vm12258_vm15, %v3943_v56 }
 0x88e   :  { %v4149_v26 = vpop.permute.xlu0 %4148 }
 0x88f   :  { %v4150_v42 = vrot.slane %v4149_v26, 7 }
 0x890   :  { %v4161_v52 = vpop.permute.xlu1 %4160 }
 0x891   :  { %v4151_v57 = vsel %vm369_vm5, %v4150_v42, %v4149_v26  ;;  %v4162_v49 = vrot.slane %v4161_v52, 7  ;;  %v10189_v42 = vld [vmem:[%s13352_s11 + $0x110] sm:$0xff]  }
 0x892   :  { %4154 = vst.msk [vmem:[#allocation2 + $0x5] ss:$2 sm:$0x7] %vm12258_vm15, %v4151_v57  ;;  %v3983_v32 = vpop.permute.xlu0 %3982 }
 0x893   :  { %v4163_v36 = vsel %vm369_vm5, %v4162_v49, %v4161_v52  ;;  %v3984_v54 = vrot.slane %v3983_v32, 7  ;;  %v10192_v49 = vld [vmem:[%s13352_s11 + $0x158] sm:$0xff]  }
 0x894   :  { %4166 = vst.msk [vmem:[#allocation2 + $0xf] ss:$2 sm:$0x7] %vm12258_vm15, %v4163_v36  ;;  %v4203_v30 = vpop.permute.xlu1 %4202 }
 0x895   :  { %v3985_v17 = vsel %vm369_vm5, %v3984_v54, %v3983_v32  ;;  %v4204_v28 = vrot.slane %v4203_v30, 7  ;;  %v10191_v32 = vld [vmem:[%s13352_s11 + $0x190] sm:$0xff]  }
 0x896   :  { %3988 = vst.msk [vmem:[#allocation2 + $0x18] ss:$2 sm:$0x7] %vm12258_vm15, %v3985_v17  ;;  %v3995_v18 = vpop.permute.xlu0 %3994  ;;  %v10193_v17 = vld [vmem:[%s13352_s11 + $0x118] sm:$0xff]  }
 0x897   :  { %v4205_v47 = vsel %vm369_vm5, %v4204_v28, %v4203_v30  ;;  %v3996_v48 = vrot.slane %v3995_v18, 7  ;;  %v10194_v30 = vld [vmem:[%s13352_s11 + $0x1d8] sm:$0xff]  }
 0x898   :  { %4208 = vst.msk [vmem:[#allocation2 + $0x19] ss:$2 sm:$0x7] %vm12258_vm15, %v4205_v47  ;;  %v4215_v45 = vpop.permute.xlu1 %4214  ;;  %v10195_v47 = vld [vmem:[%s13352_s11 + $0x198] sm:$0xff]  }
 0x899   :  { %v3997_v15 = vsel %vm369_vm5, %v3996_v48, %v3995_v18  ;;  %v4216_v21 = vrot.slane %v4215_v45, 7  ;;  %v4331_v60 = vld [vmem:[#allocation2] sm:$0xff] }
 0x89a   :  { %4000 = vst.msk [vmem:[#allocation2 + $0x22] ss:$2 sm:$0x7] %vm12258_vm15, %v3997_v15  ;;  %v4039_v20 = vpop.permute.xlu0 %4038  ;;  %v4998_v10 = vrot.slane %v4331_v60, %v12276_v9  ;;  %v4991_v53 = vcombine.high %v4331_v60, %v4331_v60  ;;  %v10196_v18 = vld [vmem:[%s13352_s11 + $0x160] sm:$0xff]   ;;  %v10201_v60 = vld [vmem:[%s13352_s11 + $0x128] sm:$0xff]  }
 0x89b   :  { %v4217_v8 = vsel %vm369_vm5, %v4216_v21, %v4215_v45  ;;  %v4040_v19 = vrot.slane %v4039_v20, 7  ;;  %v4332_v58 = vld [vmem:[#allocation2 + $0x8] sm:$0xff]  ;;  %v10198_v48 = vld [vmem:[%s13352_s11 + $0x1e0] sm:$0xff]  }
 0x89c   :  { %4220 = vst.msk [vmem:[#allocation2 + $0x23] ss:$2 sm:$0x7] %vm12258_vm15, %v4217_v8  ;;  %v4259_v34 = vpop.permute.xlu1 %4258  ;;  %v5006_v2 = vcombine.high %v4998_v10, %v4998_v10  ;;  %v5005_v14 = vrot.slane %v4991_v53, %v12276_v9  ;;  %v12292_v31 = vrot.slane %v4332_v58, %v12276_v9  ;;  %v5008_v59 = vcombine.high %v4332_v58, %v4332_v58  ;;  %v10197_v45 = vld [vmem:[%s13352_s11 + $0x120] sm:$0xff]   ;;  %v10202_v21 = vld [vmem:[%s13352_s11 + $0x1e8] sm:$0xff]   ;;  %v10206_v8 = vld [vmem:[%s13352_s11 + $0x1f0] sm:$0xff]  }
 0x89d   :  { %v4041_v27 = vsel %vm369_vm5, %v4040_v19, %v4039_v20  ;;  %v4260_v24 = vrot.slane %v4259_v34, 7  ;;  %v5201_v29 = vpack.c.bf16 %v4998_v10, %v4998_v10  ;;  %v10199_v15 = vld [vmem:[%s13352_s11 + $0x1a0] sm:$0xff]   ;;  %v10204_v20 = vld [vmem:[%s13352_s11 + $0x170] sm:$0xff]   ;;  %v10203_v53 = vld [vmem:[%s13352_s11 + $0x1a8] sm:$0xff]  }
 0x89e   :  { %4044 = vst.msk [vmem:[#allocation2 + $0x2c] ss:$2 sm:$0x7] %vm12258_vm15, %v4041_v27  ;;  %v4051_v50 = vpop.permute.xlu0 %4050  ;;  %v5202_v51 = vpack.c.bf16 %v5006_v2, %v5006_v2  ;;  %v5007_v3 = vcombine.high %v5005_v14, %v5005_v14  ;;  %v5023_v16 = vcombine.high %v12292_v31, %v12292_v31  ;;  %v12304_v12 = vrot.slane %v5008_v59, %v12276_v9  ;;  %v4333_v10 = vld [vmem:[#allocation2 + $0x10] sm:$0xff]  ;;  %v10210_v27 = vld [vmem:[%s13352_s11 + $0x1f8] sm:$0xff]  }
 0x89f   :  { %v4261_v61 = vsel %vm369_vm5, %v4260_v24, %v4259_v34  ;;  %v4052_v1 = vrot.slane %v4051_v50, 7  ;;  %v5203_v35 = vpack.c.bf16 %v5005_v14, %v5005_v14  ;;  %v10205_v19 = vld [vmem:[%s13352_s11 + $0x130] sm:$0xff]   ;;  %v5025_v58 = vcombine.high %v4333_v10, %v4333_v10  ;;  %v10208_v34 = vld [vmem:[%s13352_s11 + $0x178] sm:$0xff]  }
 0x8a0   :  { %4264 = vst.msk [vmem:[#allocation2 + $0x2d] ss:$2 sm:$0x7] %vm12258_vm15, %v4261_v61  ;;  %7194 = vmatprep.mubr.bf16.mxu1 %v5202_v51  ;;  %v4271_v62 = vpop.permute.xlu1 %4270  ;;  %v5204_v43 = vpack.c.bf16 %v5007_v3, %v5007_v3  ;;  %v5206_v46 = vpack.c.bf16 %v5023_v16, %v5023_v16  ;;  %v5024_v38 = vcombine.high %v12304_v12, %v12304_v12  ;;  %v10207_v2 = vld [vmem:[%s13352_s11 + $0x1b0] sm:$0xff]   ;;  %v10209_v24 = vld [vmem:[%s13352_s11 + $0x138] sm:$0xff]   ;;  %v10214_v3 = vld [vmem:[%s13352_s11 + $0x2c0] sm:$0xff]  }
 0x8a1   :  { %v4053_v13 = vsel %vm369_vm5, %v4052_v1, %v4051_v50  ;;  %v4272_v55 = vrot.slane %v4271_v62, 7  ;;  %7195 = vmatmul.mubr.bf16.vlgmr.msra.gmra.mrb[36].mxu1 %v5201_v29  ;;  %v12407_v14 = vrot.slane %v4333_v10, %v12276_v9  ;;  %v12416_v59 = vrot.slane %v5025_v58, %v12276_v9  ;;  %v10212_v50 = vld [vmem:[%s13352_s11 + $0x240] sm:$0xff]   ;;  %v10211_v51 = vld [vmem:[%s13352_s11 + $0x1b8] sm:$0xff]   ;;  %v10217_v29 = vld [vmem:[%s13352_s11 + $0x248] sm:$0xff]  }
 0x8a2   :  { %4056 = vst.msk [vmem:[#allocation2 + $0x36] ss:$2 sm:$0x7] %vm12258_vm15, %v4053_v13  ;;  %9101 = vmatpush3.bf16.msra.mxu1 %v10180_v37  ;;  %v4093_v22 = vpop.permute.xlu0 %4092  ;;  %7234 = vmatprep.mubr.bf16.mxu0 %v5204_v43  ;;  %v5208_v41 = vpack.c.bf16 %v5024_v38, %v5024_v38  ;;  %v10213_v16 = vld [vmem:[%s13352_s11 + $0x200] sm:$0xff]   ;;  %v5205_v1 = vpack.c.bf16 %v12292_v31, %v12292_v31  ;;  %v10219_v31 = vld [vmem:[%s13352_s11 + $0x2c8] sm:$0xff]   ;;  %v10221_v13 = vld [vmem:[%s13352_s11 + $0x250] sm:$0xff]  }
 0x8a3   :  { %v4273_v11 = vsel %vm369_vm5, %v4272_v55, %v4271_v62  ;;  %v4094_v0 = vrot.slane %v4093_v22, 7  ;;  %7274 = vmatprep.mubr.bf16.mxu1 %v5206_v46  ;;  %7235 = vmatmul.mubr.bf16.vlgmr.msra.gmra.mrb[32].mxu0 %v5203_v35  ;;  %v5040_v37 = vcombine.high %v12407_v14, %v12407_v14  ;;  %v5041_v61 = vcombine.high %v12416_v59, %v12416_v59  ;;  %v10215_v43 = vld [vmem:[%s13352_s11 + $0x280] sm:$0xff]   ;;  %v10223_v55 = vld [vmem:[%s13352_s11 + $0x2d0] sm:$0xff]   ;;  %v10225_v38 = vld [vmem:[%s13352_s11 + $0x258] sm:$0xff]  }
 0x8a4   :  { %4276 = vst.msk [vmem:[#allocation2 + $0x37] ss:$2 sm:$0x7] %vm12258_vm15, %v4273_v11  ;;  %9123 = vmatpush3.bf16.msra.mxu0 %v10182_v63  ;;  %9102 = vmatprep.subr.bf16.mxu1 %v10183_v44  ;;  %v4313_v5 = vpop.permute.xlu1 %4312  ;;  %v5207_v46 = vpack.c.bf16 %v12304_v12, %v12304_v12  ;;  %v10218_v44 = vld [vmem:[%s13352_s11 + $0x208] sm:$0xff]   ;;  %v10222_v35 = vld [vmem:[%s13352_s11 + $0x210] sm:$0xff]   ;;  %v10229_v11 = vld [vmem:[%s13352_s11 + $0x260] sm:$0xff]   ;;  %v5211_v10 = vpack.c.bf16 %v12416_v59, %v12416_v59 }
 0x8a5   :  { %v4095_v56 = vsel %vm369_vm5, %v4094_v0, %v4093_v22  ;;  %7314 = vmatprep.mubr.bf16.mxu0 %v5208_v41  ;;  %v4314_v4 = vrot.slane %v4313_v5, 7  ;;  %9124 = vmatprep.subr.bf16.mxu0 %v10186_v40  ;;  %v5210_v62 = vpack.c.bf16 %v5040_v37, %v5040_v37  ;;  %v5212_v63 = vpack.c.bf16 %v5041_v61, %v5041_v61  ;;  %v10220_v12 = vld [vmem:[%s13352_s11 + $0x288] sm:$0xff]   ;;  %v10224_v40 = vld [vmem:[%s13352_s11 + $0x290] sm:$0xff]   ;;  %v10227_v22 = vld [vmem:[%s13352_s11 + $0x2d8] sm:$0xff]  }
 0x8a6   :  { %4098 = vst.msk [vmem:[#allocation2 + $0x40] ss:$2 sm:$0x7] %vm12258_vm15, %v4095_v56  ;;  %9103 = vmatpush3.bf16.msra.mxu1 %v10185_v6  ;;  %v4105_v26 = vpop.permute.xlu0 %4104  ;;  %v10226_v6 = vld [vmem:[%s13352_s11 + $0x218] sm:$0xff]   ;;  %v10231_v41 = vld [vmem:[%s13352_s11 + $0x2e0] sm:$0xff]   ;;  %v10235_v56 = vld [vmem:[%s13352_s11 + $0x2e8] sm:$0xff]  }
 0x8a7   :  { %v4315_v52 = vsel %vm369_vm5, %v4314_v4, %v4313_v5  ;;  %v4106_v57 = vrot.slane %v4105_v26, 7  ;;  %9104 = vmatprep.subr.bf16.mxu1 %v10188_v7  ;;  %v10228_v0 = vld [vmem:[%s13352_s11 + $0x298] sm:$0xff]   ;;  %v10230_v7 = vld [vmem:[%s13352_s11 + $0x220] sm:$0xff]   ;;  %v10233_v5 = vld [vmem:[%s13352_s11 + $0x268] sm:$0xff]  }
 0x8a8   :  { %4318 = vst.msk [vmem:[#allocation2 + $0x41] ss:$2 sm:$0x7] %vm12258_vm15, %v4315_v52  ;;  %9125 = vmatpush3.bf16.msra.mxu0 %v10187_v23  ;;  %v4325_v33 = vpop.permute.xlu1 %4324  ;;  %v10232_v23 = vld [vmem:[%s13352_s11 + $0x2a0] sm:$0xff]   ;;  %v10234_v4 = vld [vmem:[%s13352_s11 + $0x228] sm:$0xff]   ;;  %v10239_v52 = vld [vmem:[%s13352_s11 + $0x2f0] sm:$0xff]  }
 0x8a9   :  { %v4107_v36 = vsel %vm369_vm5, %v4106_v57, %v4105_v26  ;;  %v4326_v54 = vrot.slane %v4325_v33, 7  ;;  %9126 = vmatprep.subr.bf16.mxu0 %v10190_v39  ;;  %v10237_v39 = vld [vmem:[%s13352_s11 + $0x270] sm:$0xff]   ;;  %v4334_v26 = vld [vmem:[#allocation2 + $0x18] sm:$0xff]  ;;  %v10266_v61 = vld [vmem:[%s13352_s11 + $0x368] sm:$0xff]  }
 0x8aa   :  { %4110 = vst.msk [vmem:[#allocation2 + $0x4a] ss:$2 sm:$0x7] %vm12258_vm15, %v4107_v36  ;;  %9105 = vmatpush3.bf16.msra.mxu1 %v10189_v42  ;;  %v10236_v42 = vld [vmem:[%s13352_s11 + $0x2a8] sm:$0xff]   ;;  %v10238_v57 = vld [vmem:[%s13352_s11 + $0x230] sm:$0xff]   ;;  %v12517_v36 = vrot.slane %v4334_v26, %v12276_v9  ;;  %v10260_v59 = vld [vmem:[%s13352_s11 + $0x3d8] sm:$0xff]  }
 0x8ab   :  { %v4327_v28 = vsel %vm369_vm5, %v4326_v54, %v4325_v33  ;;  %9106 = vmatprep.subr.bf16.mxu1 %v10192_v49  ;;  %v5042_v49 = vcombine.high %v4334_v26, %v4334_v26  ;;  %v10241_v33 = vld [vmem:[%s13352_s11 + $0x278] sm:$0xff]   ;;  %v10254_v58 = vld [vmem:[%s13352_s11 + $0x350] sm:$0xff]  }
 0x8ac   :  { %4330 = vst.msk [vmem:[#allocation2 + $0x4b] ss:$2 sm:$0x7] %vm12258_vm15, %v4327_v28  ;;  %9127 = vmatpush3.bf16.msra.mxu0 %v10191_v32  ;;  %v10240_v32 = vld [vmem:[%s13352_s11 + $0x2b0] sm:$0xff]   ;;  %v10243_v54 = vld [vmem:[%s13352_s11 + $0x2f8] sm:$0xff]   ;;  %v10245_v28 = vld [vmem:[%s13352_s11 + $0x340] sm:$0xff]  }
 0x8ad   :  { %9128 = vmatprep.subr.bf16.mxu0 %v10194_v30  ;;  %v10242_v30 = vld [vmem:[%s13352_s11 + $0x238] sm:$0xff]  }
 0x8ae   :  { %9107 = vmatpush3.bf16.msra.mxu1 %v10193_v17  ;;  %v12526_v17 = vrot.slane %v5042_v49, %v12276_v9  ;;  %v10261_v37 = vld [vmem:[%s13352_s11 + $0x398] sm:$0xff]   ;;  %v10287_v49 = vld [vmem:[%s13352_s11 + $0x450] sm:$0xff]  }
 0x8af   :  { %9108 = vmatprep.subr.bf16.mxu1 %v10196_v18  ;;  %v10244_v18 = vld [vmem:[%s13352_s11 + $0x2b8] sm:$0xff]  }
 0x8b0   :  { %9129 = vmatpush3.bf16.msra.mxu0 %v10195_v47  ;;  %v5057_v47 = vcombine.high %v12517_v36, %v12517_v36  ;;  %v5215_v26 = vpack.c.bf16 %v12526_v17, %v12526_v17 }
 0x8b1   :  { %9130 = vmatprep.subr.bf16.mxu0 %v10198_v48  ;;  %v10247_v48 = vld [vmem:[%s13352_s11 + $0x3c0] sm:$0xff]  }
 0x8b2   :  { %9109 = vmatpush3.bf16.msra.mxu1 %v10197_v45  ;;  %v10246_v45 = vld [vmem:[%s13352_s11 + $0x300] sm:$0xff]  }
 0x8b3   :  { %9110 = vmatprep.subr.bf16.mxu1 %v10200_v25  ;;  %v5058_v25 = vcombine.high %v12526_v17, %v12526_v17  ;;  %v10293_v17 = vld [vmem:[%s13352_s11 + $0x4d8] sm:$0xff]  }
 0x8b4   :  { %9131 = vmatpush3.bf16.msra.mxu0 %v10199_v15  ;;  %v5209_v15 = vpack.c.bf16 %v12407_v14, %v12407_v14  ;;  %v10255_v14 = vld [vmem:[%s13352_s11 + $0x310] sm:$0xff]  }
 0x8b5   :  { %9132 = vmatprep.subr.bf16.mxu0 %v10202_v21  ;;  %v10250_v21 = vld [vmem:[%s13352_s11 + $0x348] sm:$0xff]  }
 0x8b6   :  { %9111 = vmatpush3.bf16.msra.mxu1 %v10201_v60  ;;  %v5214_v60 = vpack.c.bf16 %v5057_v47, %v5057_v47  ;;  %v10294_v47 = vld [vmem:[%s13352_s11 + $0x498] sm:$0xff]  }
 0x8b7   :  { %9112 = vmatprep.subr.bf16.mxu1 %v10204_v20  ;;  %v10248_v20 = vld [vmem:[%s13352_s11 + $0x380] sm:$0xff]  }
 0x8b8   :  { %9133 = vmatpush3.bf16.msra.mxu0 %v10203_v53  ;;  %v10252_v53 = vld [vmem:[%s13352_s11 + $0x3c8] sm:$0xff]  }
 0x8b9   :  { %9134 = vmatprep.subr.bf16.mxu0 %v10206_v8  ;;  %v5216_v8 = vpack.c.bf16 %v5058_v25, %v5058_v25  ;;  %v10299_v25 = vld [vmem:[%s13352_s11 + $0x468] sm:$0xff]  }
 0x8ba   :  { %9113 = vmatpush3.bf16.msra.mxu1 %v10205_v19  ;;  %v10251_v19 = vld [vmem:[%s13352_s11 + $0x308] sm:$0xff]  }
 0x8bb   :  { %9114 = vmatprep.subr.bf16.mxu1 %v10208_v34  ;;  %v10253_v34 = vld [vmem:[%s13352_s11 + $0x388] sm:$0xff]  }
 0x8bc   :  { %9135 = vmatpush3.bf16.msra.mxu0 %v10207_v2  ;;  %v10256_v2 = vld [vmem:[%s13352_s11 + $0x3d0] sm:$0xff]  }
 0x8bd   :  { %9136 = vmatprep.subr.bf16.mxu0 %v10210_v27  ;;  %v10258_v27 = vld [vmem:[%s13352_s11 + $0x358] sm:$0xff]  }
 0x8be   :  { %9115 = vmatpush3.bf16.msra.mxu1 %v10209_v24  ;;  %v10257_v24 = vld [vmem:[%s13352_s11 + $0x390] sm:$0xff]  }
 0x8bf   :  { %9144 = vmatprep.subr.bf16.mxu1 %v10212_v50  ;;  %v10259_v50 = vld [vmem:[%s13352_s11 + $0x318] sm:$0xff]  }
 0x8c0   :  { %9137 = vmatpush3.bf16.msra.mxu0 %v10211_v51  ;;  %v10262_v51 = vld [vmem:[%s13352_s11 + $0x360] sm:$0xff]  }
 0x8c1   :  { %7275 = vmatmul.mubr.bf16.vlgmr.msra.gmra.mrb[40].mxu1 %v5205_v1  ;;  %9166 = vmatprep.subr.bf16.mxu0 %v10214_v3  ;;  %v10264_v3 = vld [vmem:[%s13352_s11 + $0x3e0] sm:$0xff]  }
 0x8c2   :  { %9145 = vmatpush3.bf16.msra.mxu1 %v10213_v16  ;;  %7354 = vmatprep.mubr.bf16.mxu1 %v5210_v62  ;;  %v10263_v16 = vld [vmem:[%s13352_s11 + $0x320] sm:$0xff]   ;;  %v10267_v62 = vld [vmem:[%s13352_s11 + $0x328] sm:$0xff]  }
 0x8c3   :  { %7315 = vmatmul.mubr.bf16.vlgmr.msra.gmra.mrb[36].mxu0 %v5207_v46  ;;  %9146 = vmatprep.subr.bf16.mxu1 %v10217_v29  ;;  %v10265_v1 = vld [vmem:[%s13352_s11 + $0x3a0] sm:$0xff]   ;;  %v10268_v29 = vld [vmem:[%s13352_s11 + $0x3e8] sm:$0xff]  }
 0x8c4   :  { %9167 = vmatpush3.bf16.msra.mxu0 %v10215_v43  ;;  %7394 = vmatprep.mubr.bf16.mxu0 %v5212_v63  ;;  %v10270_v43 = vld [vmem:[%s13352_s11 + $0x370] sm:$0xff]   ;;  %v4335_v46 = vld [vmem:[#allocation2 + $0x20] sm:$0xff] }
 0x8c5   :  { %9168 = vmatprep.subr.bf16.mxu0 %v10219_v31  ;;  %v10269_v31 = vld [vmem:[%s13352_s11 + $0x3a8] sm:$0xff]   ;;  %v10272_v63 = vld [vmem:[%s13352_s11 + $0x3f0] sm:$0xff]  }
 0x8c6   :  { %9147 = vmatpush3.bf16.msra.mxu1 %v10218_v44  ;;  %v10271_v44 = vld [vmem:[%s13352_s11 + $0x330] sm:$0xff]  }
 0x8c7   :  { %9148 = vmatprep.subr.bf16.mxu1 %v10221_v13  ;;  %v5059_v13 = vcombine.high %v4335_v46, %v4335_v46 }
 0x8c8   :  { %9169 = vmatpush3.bf16.msra.mxu0 %v10220_v12  ;;  %v10274_v12 = vld [vmem:[%s13352_s11 + $0x378] sm:$0xff]  }
 0x8c9   :  { %9170 = vmatprep.subr.bf16.mxu0 %v10223_v55  ;;  %v10273_v55 = vld [vmem:[%s13352_s11 + $0x3b0] sm:$0xff]  }
 0x8ca   :  { %9149 = vmatpush3.bf16.msra.mxu1 %v10222_v35  ;;  %v12627_v35 = vrot.slane %v4335_v46, %v12276_v9 }
 0x8cb   :  { %9150 = vmatprep.subr.bf16.mxu1 %v10225_v38  ;;  %v10276_v38 = vld [vmem:[%s13352_s11 + $0x3f8] sm:$0xff]  }
 0x8cc   :  { %9171 = vmatpush3.bf16.msra.mxu0 %v10224_v40  ;;  %v10275_v40 = vld [vmem:[%s13352_s11 + $0x338] sm:$0xff]  }
 0x8cd   :  { %9172 = vmatprep.subr.bf16.mxu0 %v10227_v22  ;;  %v12636_v22 = vrot.slane %v5059_v13, %v12276_v9  ;;  %v10320_v13 = vld [vmem:[%s13352_s11 + $0x550] sm:$0xff]  }
 0x8ce   :  { %9151 = vmatpush3.bf16.msra.mxu1 %v10226_v6  ;;  %v10278_v6 = vld [vmem:[%s13352_s11 + $0x440] sm:$0xff]  }
 0x8cf   :  { %9152 = vmatprep.subr.bf16.mxu1 %v10229_v11  ;;  %v10277_v11 = vld [vmem:[%s13352_s11 + $0x3b8] sm:$0xff]   ;;  %v5219_v46 = vpack.c.bf16 %v12636_v22, %v12636_v22 }
 0x8d0   :  { %9173 = vmatpush3.bf16.msra.mxu0 %v10228_v0  ;;  %v5074_v0 = vcombine.high %v12627_v35, %v12627_v35 }
 0x8d1   :  { %9174 = vmatprep.subr.bf16.mxu0 %v10231_v41  ;;  %v10280_v41 = vld [vmem:[%s13352_s11 + $0x4c0] sm:$0xff]  }
 0x8d2   :  { %9153 = vmatpush3.bf16.msra.mxu1 %v10230_v7  ;;  %v10279_v7 = vld [vmem:[%s13352_s11 + $0x400] sm:$0xff]  }
 0x8d3   :  { %9154 = vmatprep.subr.bf16.mxu1 %v10233_v5  ;;  %v5075_v5 = vcombine.high %v12636_v22, %v12636_v22  ;;  %v10326_v22 = vld [vmem:[%s13352_s11 + $0x5d8] sm:$0xff]  }
 0x8d4   :  { %9175 = vmatpush3.bf16.msra.mxu0 %v10232_v23  ;;  %v5213_v23 = vpack.c.bf16 %v12517_v36, %v12517_v36  ;;  %v10288_v36 = vld [vmem:[%s13352_s11 + $0x410] sm:$0xff]  }
 0x8d5   :  { %9176 = vmatprep.subr.bf16.mxu0 %v10235_v56  ;;  %v10283_v56 = vld [vmem:[%s13352_s11 + $0x448] sm:$0xff]  }
 0x8d6   :  { %9155 = vmatpush3.bf16.msra.mxu1 %v10234_v4  ;;  %v5218_v4 = vpack.c.bf16 %v5074_v0, %v5074_v0  ;;  %v10327_v0 = vld [vmem:[%s13352_s11 + $0x598] sm:$0xff]  }
 0x8d7   :  { %9156 = vmatprep.subr.bf16.mxu1 %v10237_v39  ;;  %v10281_v39 = vld [vmem:[%s13352_s11 + $0x480] sm:$0xff]  }
 0x8d8   :  { %9177 = vmatpush3.bf16.msra.mxu0 %v10236_v42  ;;  %v10285_v42 = vld [vmem:[%s13352_s11 + $0x4c8] sm:$0xff]  }
 0x8d9   :  { %9178 = vmatprep.subr.bf16.mxu0 %v10239_v52  ;;  %v5220_v52 = vpack.c.bf16 %v5075_v5, %v5075_v5  ;;  %v10332_v5 = vld [vmem:[%s13352_s11 + $0x568] sm:$0xff]  }
 0x8da   :  { %9157 = vmatpush3.bf16.msra.mxu1 %v10238_v57  ;;  %v10284_v57 = vld [vmem:[%s13352_s11 + $0x408] sm:$0xff]  }
 0x8db   :  { %9158 = vmatprep.subr.bf16.mxu1 %v10241_v33  ;;  %v10286_v33 = vld [vmem:[%s13352_s11 + $0x488] sm:$0xff]  }
 0x8dc   :  { %9179 = vmatpush3.bf16.msra.mxu0 %v10240_v32  ;;  %v10289_v32 = vld [vmem:[%s13352_s11 + $0x4d0] sm:$0xff]  }
 0x8dd   :  { %9180 = vmatprep.subr.bf16.mxu0 %v10243_v54  ;;  %v10291_v54 = vld [vmem:[%s13352_s11 + $0x458] sm:$0xff]  }
 0x8de   :  { %9159 = vmatpush3.bf16.msra.mxu1 %v10242_v30  ;;  %v10290_v30 = vld [vmem:[%s13352_s11 + $0x490] sm:$0xff]  }
 0x8df   :  { %9188 = vmatprep.subr.bf16.mxu1 %v10245_v28  ;;  %v10292_v28 = vld [vmem:[%s13352_s11 + $0x418] sm:$0xff]  }
 0x8e0   :  { %9181 = vmatpush3.bf16.msra.mxu0 %v10244_v18  ;;  %v10295_v18 = vld [vmem:[%s13352_s11 + $0x460] sm:$0xff]  }
 0x8e1   :  { %7355 = vmatmul.mubr.bf16.vlgmr.msra.gmra.mrb[44].mxu1 %v5209_v15  ;;  %9210 = vmatprep.subr.bf16.mxu0 %v10247_v48  ;;  %v10297_v48 = vld [vmem:[%s13352_s11 + $0x4e0] sm:$0xff]  }
 0x8e2   :  { %9189 = vmatpush3.bf16.msra.mxu1 %v10246_v45  ;;  %7434 = vmatprep.mubr.bf16.mxu1 %v5214_v60  ;;  %v10296_v45 = vld [vmem:[%s13352_s11 + $0x420] sm:$0xff]   ;;  %v10300_v60 = vld [vmem:[%s13352_s11 + $0x428] sm:$0xff]  }
 0x8e3   :  { %7395 = vmatmul.mubr.bf16.vlgmr.msra.gmra.mrb[40].mxu0 %v5211_v10  ;;  %9190 = vmatprep.subr.bf16.mxu1 %v10250_v21  ;;  %v10298_v15 = vld [vmem:[%s13352_s11 + $0x4a0] sm:$0xff]   ;;  %v10301_v21 = vld [vmem:[%s13352_s11 + $0x4e8] sm:$0xff]  }
 0x8e4   :  { %9211 = vmatpush3.bf16.msra.mxu0 %v10248_v20  ;;  %7474 = vmatprep.mubr.bf16.mxu0 %v5216_v8  ;;  %v10303_v20 = vld [vmem:[%s13352_s11 + $0x470] sm:$0xff]   ;;  %v4336_v10 = vld [vmem:[#allocation2 + $0x28] sm:$0xff] }
 0x8e5   :  { %9212 = vmatprep.subr.bf16.mxu0 %v10252_v53  ;;  %v10302_v53 = vld [vmem:[%s13352_s11 + $0x4a8] sm:$0xff]   ;;  %v10305_v8 = vld [vmem:[%s13352_s11 + $0x4f0] sm:$0xff]  }
 0x8e6   :  { %9191 = vmatpush3.bf16.msra.mxu1 %v10251_v19  ;;  %v10304_v19 = vld [vmem:[%s13352_s11 + $0x430] sm:$0xff]  }
 0x8e7   :  { %9192 = vmatprep.subr.bf16.mxu1 %v10254_v58  ;;  %v5076_v58 = vcombine.high %v4336_v10, %v4336_v10 }
 0x8e8   :  { %9213 = vmatpush3.bf16.msra.mxu0 %v10253_v34  ;;  %v10307_v34 = vld [vmem:[%s13352_s11 + $0x478] sm:$0xff]  }
 0x8e9   :  { %9214 = vmatprep.subr.bf16.mxu0 %v10256_v2  ;;  %v10306_v2 = vld [vmem:[%s13352_s11 + $0x4b0] sm:$0xff]  }
 0x8ea   :  { %9193 = vmatpush3.bf16.msra.mxu1 %v10255_v14  ;;  %v12737_v14 = vrot.slane %v4336_v10, %v12276_v9 }
 0x8eb   :  { %9194 = vmatprep.subr.bf16.mxu1 %v10258_v27  ;;  %v10309_v27 = vld [vmem:[%s13352_s11 + $0x4f8] sm:$0xff]  }
 0x8ec   :  { %9215 = vmatpush3.bf16.msra.mxu0 %v10257_v24  ;;  %v10308_v24 = vld [vmem:[%s13352_s11 + $0x438] sm:$0xff]  }
 0x8ed   :  { %9216 = vmatprep.subr.bf16.mxu0 %v10260_v59  ;;  %v12746_v59 = vrot.slane %v5076_v58, %v12276_v9  ;;  %v10353_v58 = vld [vmem:[%s13352_s11 + $0x650] sm:$0xff]  }
 0x8ee   :  { %9195 = vmatpush3.bf16.msra.mxu1 %v10259_v50  ;;  %v10311_v50 = vld [vmem:[%s13352_s11 + $0x540] sm:$0xff]  }
 0x8ef   :  { %9196 = vmatprep.subr.bf16.mxu1 %v10262_v51  ;;  %v10310_v51 = vld [vmem:[%s13352_s11 + $0x4b8] sm:$0xff]   ;;  %v5223_v10 = vpack.c.bf16 %v12746_v59, %v12746_v59 }
 0x8f0   :  { %9217 = vmatpush3.bf16.msra.mxu0 %v10261_v37  ;;  %v5091_v37 = vcombine.high %v12737_v14, %v12737_v14 }
 0x8f1   :  { %9218 = vmatprep.subr.bf16.mxu0 %v10264_v3  ;;  %v10313_v3 = vld [vmem:[%s13352_s11 + $0x5c0] sm:$0xff]  }
 0x8f2   :  { %9197 = vmatpush3.bf16.msra.mxu1 %v10263_v16  ;;  %v10312_v16 = vld [vmem:[%s13352_s11 + $0x500] sm:$0xff]  }
 0x8f3   :  { %9198 = vmatprep.subr.bf16.mxu1 %v10266_v61  ;;  %v5092_v61 = vcombine.high %v12746_v59, %v12746_v59  ;;  %v10359_v59 = vld [vmem:[%s13352_s11 + $0x6d8] sm:$0xff]  }
 0x8f4   :  { %9219 = vmatpush3.bf16.msra.mxu0 %v10265_v1  ;;  %v5217_v1 = vpack.c.bf16 %v12627_v35, %v12627_v35  ;;  %v10321_v35 = vld [vmem:[%s13352_s11 + $0x510] sm:$0xff]  }
 0x8f5   :  { %9220 = vmatprep.subr.bf16.mxu0 %v10268_v29  ;;  %v10316_v29 = vld [vmem:[%s13352_s11 + $0x548] sm:$0xff]  }
 0x8f6   :  { %9199 = vmatpush3.bf16.msra.mxu1 %v10267_v62  ;;  %v5222_v62 = vpack.c.bf16 %v5091_v37, %v5091_v37  ;;  %v10360_v37 = vld [vmem:[%s13352_s11 + $0x698] sm:$0xff]  }
 0x8f7   :  { %9200 = vmatprep.subr.bf16.mxu1 %v10270_v43  ;;  %v10314_v43 = vld [vmem:[%s13352_s11 + $0x580] sm:$0xff]  }
 0x8f8   :  { %9221 = vmatpush3.bf16.msra.mxu0 %v10269_v31  ;;  %v10318_v31 = vld [vmem:[%s13352_s11 + $0x5c8] sm:$0xff]  }
 0x8f9   :  { %9222 = vmatprep.subr.bf16.mxu0 %v10272_v63  ;;  %v5224_v63 = vpack.c.bf16 %v5092_v61, %v5092_v61  ;;  %v10365_v61 = vld [vmem:[%s13352_s11 + $0x668] sm:$0xff]  }
 0x8fa   :  { %9201 = vmatpush3.bf16.msra.mxu1 %v10271_v44  ;;  %v10317_v44 = vld [vmem:[%s13352_s11 + $0x508] sm:$0xff]  }
 0x8fb   :  { %9202 = vmatprep.subr.bf16.mxu1 %v10274_v12  ;;  %v10319_v12 = vld [vmem:[%s13352_s11 + $0x588] sm:$0xff]  }
 0x8fc   :  { %9223 = vmatpush3.bf16.msra.mxu0 %v10273_v55  ;;  %v10322_v55 = vld [vmem:[%s13352_s11 + $0x5d0] sm:$0xff]  }
 0x8fd   :  { %9224 = vmatprep.subr.bf16.mxu0 %v10276_v38  ;;  %v10324_v38 = vld [vmem:[%s13352_s11 + $0x558] sm:$0xff]  }
 0x8fe   :  { %9203 = vmatpush3.bf16.msra.mxu1 %v10275_v40  ;;  %v10323_v40 = vld [vmem:[%s13352_s11 + $0x590] sm:$0xff]  }
 0x8ff   :  { %9232 = vmatprep.subr.bf16.mxu1 %v10278_v6  ;;  %v10325_v6 = vld [vmem:[%s13352_s11 + $0x518] sm:$0xff]  }
 0x900   :  { %9225 = vmatpush3.bf16.msra.mxu0 %v10277_v11  ;;  %v10328_v11 = vld [vmem:[%s13352_s11 + $0x560] sm:$0xff]  }
 0x901   :  { %7435 = vmatmul.mubr.bf16.vlgmr.msra.gmra.mrb[48].mxu1 %v5213_v23  ;;  %9254 = vmatprep.subr.bf16.mxu0 %v10280_v41  ;;  %v10330_v41 = vld [vmem:[%s13352_s11 + $0x5e0] sm:$0xff]  }
 0x902   :  { %9233 = vmatpush3.bf16.msra.mxu1 %v10279_v7  ;;  %7514 = vmatprep.mubr.bf16.mxu1 %v5218_v4  ;;  %v10329_v7 = vld [vmem:[%s13352_s11 + $0x520] sm:$0xff]   ;;  %v10333_v4 = vld [vmem:[%s13352_s11 + $0x528] sm:$0xff]  }
 0x903   :  { %7475 = vmatmul.mubr.bf16.vlgmr.msra.gmra.mrb[44].mxu0 %v5215_v26  ;;  %9234 = vmatprep.subr.bf16.mxu1 %v10283_v56  ;;  %v10331_v23 = vld [vmem:[%s13352_s11 + $0x5a0] sm:$0xff]   ;;  %v10334_v56 = vld [vmem:[%s13352_s11 + $0x5e8] sm:$0xff]   ;;  %v4337_v26 = vld [vmem:[#allocation2 + $0x30] sm:$0xff] }
 0x904   :  { %9255 = vmatpush3.bf16.msra.mxu0 %v10281_v39  ;;  %7554 = vmatprep.mubr.bf16.mxu0 %v5220_v52  ;;  %v10336_v39 = vld [vmem:[%s13352_s11 + $0x570] sm:$0xff]  }
 0x905   :  { %9256 = vmatprep.subr.bf16.mxu0 %v10285_v42  ;;  %v10335_v42 = vld [vmem:[%s13352_s11 + $0x5a8] sm:$0xff]   ;;  %v10338_v52 = vld [vmem:[%s13352_s11 + $0x5f0] sm:$0xff]  }
 0x906   :  { %9235 = vmatpush3.bf16.msra.mxu1 %v10284_v57  ;;  %v10337_v57 = vld [vmem:[%s13352_s11 + $0x530] sm:$0xff]  }
 0x907   :  { %9236 = vmatprep.subr.bf16.mxu1 %v10287_v49  ;;  %v5093_v49 = vcombine.high %v4337_v26, %v4337_v26 }
 0x908   :  { %9257 = vmatpush3.bf16.msra.mxu0 %v10286_v33  ;;  %v10340_v33 = vld [vmem:[%s13352_s11 + $0x578] sm:$0xff]  }
 0x909   :  { %9258 = vmatprep.subr.bf16.mxu0 %v10289_v32  ;;  %v10339_v32 = vld [vmem:[%s13352_s11 + $0x5b0] sm:$0xff]  }
 0x90a   :  { %9237 = vmatpush3.bf16.msra.mxu1 %v10288_v36  ;;  %v12847_v36 = vrot.slane %v4337_v26, %v12276_v9 }
 0x90b   :  { %9238 = vmatprep.subr.bf16.mxu1 %v10291_v54  ;;  %v10342_v54 = vld [vmem:[%s13352_s11 + $0x5f8] sm:$0xff]  }
 0x90c   :  { %9259 = vmatpush3.bf16.msra.mxu0 %v10290_v30  ;;  %v10341_v30 = vld [vmem:[%s13352_s11 + $0x538] sm:$0xff]  }
 0x90d   :  { %9260 = vmatprep.subr.bf16.mxu0 %v10293_v17  ;;  %v12856_v17 = vrot.slane %v5093_v49, %v12276_v9  ;;  %v10386_v49 = vld [vmem:[%s13352_s11 + $0x750] sm:$0xff]  }
 0x90e   :  { %9239 = vmatpush3.bf16.msra.mxu1 %v10292_v28  ;;  %v10344_v28 = vld [vmem:[%s13352_s11 + $0x640] sm:$0xff]  }
 0x90f   :  { %9240 = vmatprep.subr.bf16.mxu1 %v10295_v18  ;;  %v10343_v18 = vld [vmem:[%s13352_s11 + $0x5b8] sm:$0xff]   ;;  %v5227_v26 = vpack.c.bf16 %v12856_v17, %v12856_v17 }
 0x910   :  { %9261 = vmatpush3.bf16.msra.mxu0 %v10294_v47  ;;  %v5108_v47 = vcombine.high %v12847_v36, %v12847_v36 }
 0x911   :  { %9262 = vmatprep.subr.bf16.mxu0 %v10297_v48  ;;  %v10346_v48 = vld [vmem:[%s13352_s11 + $0x6c0] sm:$0xff]  }
 0x912   :  { %9241 = vmatpush3.bf16.msra.mxu1 %v10296_v45  ;;  %v10345_v45 = vld [vmem:[%s13352_s11 + $0x600] sm:$0xff]  }
 0x913   :  { %9242 = vmatprep.subr.bf16.mxu1 %v10299_v25  ;;  %v5109_v25 = vcombine.high %v12856_v17, %v12856_v17  ;;  %v10392_v17 = vld [vmem:[%s13352_s11 + $0x7d8] sm:$0xff]  }
 0x914   :  { %9263 = vmatpush3.bf16.msra.mxu0 %v10298_v15  ;;  %v5221_v15 = vpack.c.bf16 %v12737_v14, %v12737_v14  ;;  %v10354_v14 = vld [vmem:[%s13352_s11 + $0x610] sm:$0xff]  }
 0x915   :  { %9264 = vmatprep.subr.bf16.mxu0 %v10301_v21  ;;  %v10349_v21 = vld [vmem:[%s13352_s11 + $0x648] sm:$0xff]  }
 0x916   :  { %9243 = vmatpush3.bf16.msra.mxu1 %v10300_v60  ;;  %v5226_v60 = vpack.c.bf16 %v5108_v47, %v5108_v47  ;;  %v10393_v47 = vld [vmem:[%s13352_s11 + $0x798] sm:$0xff]  }
 0x917   :  { %9244 = vmatprep.subr.bf16.mxu1 %v10303_v20  ;;  %v10347_v20 = vld [vmem:[%s13352_s11 + $0x680] sm:$0xff]  }
 0x918   :  { %9265 = vmatpush3.bf16.msra.mxu0 %v10302_v53  ;;  %v10351_v53 = vld [vmem:[%s13352_s11 + $0x6c8] sm:$0xff]  }
 0x919   :  { %9266 = vmatprep.subr.bf16.mxu0 %v10305_v8  ;;  %v5228_v8 = vpack.c.bf16 %v5109_v25, %v5109_v25  ;;  %v10398_v25 = vld [vmem:[%s13352_s11 + $0x768] sm:$0xff]  }
 0x91a   :  { %9245 = vmatpush3.bf16.msra.mxu1 %v10304_v19  ;;  %v10350_v19 = vld [vmem:[%s13352_s11 + $0x608] sm:$0xff]  }
 0x91b   :  { %9246 = vmatprep.subr.bf16.mxu1 %v10307_v34  ;;  %v10352_v34 = vld [vmem:[%s13352_s11 + $0x688] sm:$0xff]  }
 0x91c   :  { %9267 = vmatpush3.bf16.msra.mxu0 %v10306_v2  ;;  %v10355_v2 = vld [vmem:[%s13352_s11 + $0x6d0] sm:$0xff]  }
 0x91d   :  { %9268 = vmatprep.subr.bf16.mxu0 %v10309_v27  ;;  %v10357_v27 = vld [vmem:[%s13352_s11 + $0x658] sm:$0xff]  }
 0x91e   :  { %9247 = vmatpush3.bf16.msra.mxu1 %v10308_v24  ;;  %v10356_v24 = vld [vmem:[%s13352_s11 + $0x690] sm:$0xff]  }
 0x91f   :  { %9276 = vmatprep.subr.bf16.mxu1 %v10311_v50  ;;  %v10358_v50 = vld [vmem:[%s13352_s11 + $0x618] sm:$0xff]  }
 0x920   :  { %9269 = vmatpush3.bf16.msra.mxu0 %v10310_v51  ;;  %v10361_v51 = vld [vmem:[%s13352_s11 + $0x660] sm:$0xff]  }
 0x921   :  { %7515 = vmatmul.mubr.bf16.vlgmr.msra.gmra.mrb[52].mxu1 %v5217_v1  ;;  %9298 = vmatprep.subr.bf16.mxu0 %v10313_v3  ;;  %v10363_v3 = vld [vmem:[%s13352_s11 + $0x6e0] sm:$0xff]  }
 0x922   :  { %9277 = vmatpush3.bf16.msra.mxu1 %v10312_v16  ;;  %7594 = vmatprep.mubr.bf16.mxu1 %v5222_v62  ;;  %v10362_v16 = vld [vmem:[%s13352_s11 + $0x620] sm:$0xff]   ;;  %v10366_v62 = vld [vmem:[%s13352_s11 + $0x628] sm:$0xff]  }
 0x923   :  { %7555 = vmatmul.mubr.bf16.vlgmr.msra.gmra.mrb[48].mxu0 %v5219_v46  ;;  %9278 = vmatprep.subr.bf16.mxu1 %v10316_v29  ;;  %v10364_v1 = vld [vmem:[%s13352_s11 + $0x6a0] sm:$0xff]   ;;  %v10367_v29 = vld [vmem:[%s13352_s11 + $0x6e8] sm:$0xff]   ;;  %v4338_v46 = vld [vmem:[#allocation2 + $0x38] sm:$0xff] }
 0x924   :  { %9299 = vmatpush3.bf16.msra.mxu0 %v10314_v43  ;;  %7634 = vmatprep.mubr.bf16.mxu0 %v5224_v63  ;;  %v10369_v43 = vld [vmem:[%s13352_s11 + $0x670] sm:$0xff]  }
 0x925   :  { %9300 = vmatprep.subr.bf16.mxu0 %v10318_v31  ;;  %v10368_v31 = vld [vmem:[%s13352_s11 + $0x6a8] sm:$0xff]   ;;  %v10371_v63 = vld [vmem:[%s13352_s11 + $0x6f0] sm:$0xff]  }
 0x926   :  { %9279 = vmatpush3.bf16.msra.mxu1 %v10317_v44  ;;  %v10370_v44 = vld [vmem:[%s13352_s11 + $0x630] sm:$0xff]  }
 0x927   :  { %9280 = vmatprep.subr.bf16.mxu1 %v10320_v13  ;;  %v5110_v13 = vcombine.high %v4338_v46, %v4338_v46 }
 0x928   :  { %9301 = vmatpush3.bf16.msra.mxu0 %v10319_v12  ;;  %v10373_v12 = vld [vmem:[%s13352_s11 + $0x678] sm:$0xff]  }
 0x929   :  { %9302 = vmatprep.subr.bf16.mxu0 %v10322_v55  ;;  %v10372_v55 = vld [vmem:[%s13352_s11 + $0x6b0] sm:$0xff]  }
 0x92a   :  { %9281 = vmatpush3.bf16.msra.mxu1 %v10321_v35  ;;  %v12957_v35 = vrot.slane %v4338_v46, %v12276_v9 }
 0x92b   :  { %9282 = vmatprep.subr.bf16.mxu1 %v10324_v38  ;;  %v10375_v38 = vld [vmem:[%s13352_s11 + $0x6f8] sm:$0xff]  }
 0x92c   :  { %9303 = vmatpush3.bf16.msra.mxu0 %v10323_v40  ;;  %v10374_v40 = vld [vmem:[%s13352_s11 + $0x638] sm:$0xff]  }
 0x92d   :  { %9304 = vmatprep.subr.bf16.mxu0 %v10326_v22  ;;  %v12966_v22 = vrot.slane %v5110_v13, %v12276_v9  ;;  %v10409_v13 = vld [vmem:[%s13352_s11 + $0x7b8] sm:$0xff]  }
 0x92e   :  { %9283 = vmatpush3.bf16.msra.mxu1 %v10325_v6  ;;  %v10377_v6 = vld [vmem:[%s13352_s11 + $0x740] sm:$0xff]  }
 0x92f   :  { %9284 = vmatprep.subr.bf16.mxu1 %v10328_v11  ;;  %v10376_v11 = vld [vmem:[%s13352_s11 + $0x6b8] sm:$0xff]  }
 0x930   :  { %9305 = vmatpush3.bf16.msra.mxu0 %v10327_v0  ;;  %v5125_v0 = vcombine.high %v12957_v35, %v12957_v35 }
 0x931   :  { %9306 = vmatprep.subr.bf16.mxu0 %v10330_v41  ;;  %v10379_v41 = vld [vmem:[%s13352_s11 + $0x7c0] sm:$0xff]  }
 0x932   :  { %9285 = vmatpush3.bf16.msra.mxu1 %v10329_v7  ;;  %v10378_v7 = vld [vmem:[%s13352_s11 + $0x700] sm:$0xff]  }
 0x933   :  { %9286 = vmatprep.subr.bf16.mxu1 %v10332_v5  ;;  %v5126_v5 = vcombine.high %v12966_v22, %v12966_v22 }
 0x934   :  { %9307 = vmatpush3.bf16.msra.mxu0 %v10331_v23  ;;  %v5225_v23 = vpack.c.bf16 %v12847_v36, %v12847_v36  ;;  %v10387_v36 = vld [vmem:[%s13352_s11 + $0x710] sm:$0xff]  }
 0x935   :  { %9308 = vmatprep.subr.bf16.mxu0 %v10334_v56  ;;  %v10382_v56 = vld [vmem:[%s13352_s11 + $0x748] sm:$0xff]  }
 0x936   :  { %9287 = vmatpush3.bf16.msra.mxu1 %v10333_v4  ;;  %v5230_v4 = vpack.c.bf16 %v5125_v0, %v5125_v0 }
 0x937   :  { %9288 = vmatprep.subr.bf16.mxu1 %v10336_v39  ;;  %v10380_v39 = vld [vmem:[%s13352_s11 + $0x780] sm:$0xff]  }
 0x938   :  { %9309 = vmatpush3.bf16.msra.mxu0 %v10335_v42  ;;  %v10384_v42 = vld [vmem:[%s13352_s11 + $0x7c8] sm:$0xff]  }
 0x939   :  { %9310 = vmatprep.subr.bf16.mxu0 %v10338_v52  ;;  %v5232_v52 = vpack.c.bf16 %v5126_v5, %v5126_v5 }
 0x93a   :  { %9289 = vmatpush3.bf16.msra.mxu1 %v10337_v57  ;;  %v10383_v57 = vld [vmem:[%s13352_s11 + $0x708] sm:$0xff]  }
 0x93b   :  { %9290 = vmatprep.subr.bf16.mxu1 %v10340_v33  ;;  %v10385_v33 = vld [vmem:[%s13352_s11 + $0x788] sm:$0xff]  }
 0x93c   :  { %9311 = vmatpush3.bf16.msra.mxu0 %v10339_v32  ;;  %v10388_v32 = vld [vmem:[%s13352_s11 + $0x7d0] sm:$0xff]  }
 0x93d   :  { %9312 = vmatprep.subr.bf16.mxu0 %v10342_v54  ;;  %v10390_v54 = vld [vmem:[%s13352_s11 + $0x758] sm:$0xff]  }
 0x93e   :  { %9291 = vmatpush3.bf16.msra.mxu1 %v10341_v30  ;;  %v10389_v30 = vld [vmem:[%s13352_s11 + $0x790] sm:$0xff]  }
 0x93f   :  { %9320 = vmatprep.subr.bf16.mxu1 %v10344_v28  ;;  %v10391_v28 = vld [vmem:[%s13352_s11 + $0x718] sm:$0xff]  }
 0x940   :  { %9313 = vmatpush3.bf16.msra.mxu0 %v10343_v18  ;;  %v10394_v18 = vld [vmem:[%s13352_s11 + $0x760] sm:$0xff]  }
 0x941   :  { %7595 = vmatmul.mubr.bf16.vlgmr.msra.gmra.mrb[56].mxu1 %v5221_v15  ;;  %9342 = vmatprep.subr.bf16.mxu0 %v10346_v48  ;;  %v10396_v48 = vld [vmem:[%s13352_s11 + $0x7e0] sm:$0xff]  }
 0x942   :  { %9321 = vmatpush3.bf16.msra.mxu1 %v10345_v45  ;;  %7674 = vmatprep.mubr.bf16.mxu1 %v5226_v60  ;;  %v10395_v45 = vld [vmem:[%s13352_s11 + $0x720] sm:$0xff]   ;;  %v10399_v60 = vld [vmem:[%s13352_s11 + $0x728] sm:$0xff]  }
 0x943   :  { %7635 = vmatmul.mubr.bf16.vlgmr.msra.gmra.mrb[52].mxu0 %v5223_v10  ;;  %9322 = vmatprep.subr.bf16.mxu1 %v10349_v21  ;;  %v10397_v15 = vld [vmem:[%s13352_s11 + $0x7a0] sm:$0xff]   ;;  %v10400_v21 = vld [vmem:[%s13352_s11 + $0x7e8] sm:$0xff]  }
 0x944   :  { %9343 = vmatpush3.bf16.msra.mxu0 %v10347_v20  ;;  %7714 = vmatprep.mubr.bf16.mxu0 %v5228_v8  ;;  %v10402_v20 = vld [vmem:[%s13352_s11 + $0x770] sm:$0xff]   ;;  %v4339_v10 = vld [vmem:[#allocation2 + $0x40] sm:$0xff]  ;;  %v10401_v8 = vld [vmem:[%s13352_s11 + $0x7a8] sm:$0xff]  }
 0x945   :  { %9344 = vmatprep.subr.bf16.mxu0 %v10351_v53 }
 0x946   :  { %9323 = vmatpush3.bf16.msra.mxu1 %v10350_v19  ;;  %v5241_v19 = vld [vmem:[#allocation11 + $0x40] ss:$0 sm:$0xff] }
 0x947   :  { %9324 = vmatprep.subr.bf16.mxu1 %v10353_v58 }
 0x948   :  { %9345 = vmatpush3.bf16.msra.mxu0 %v10352_v34  ;;  %v10404_v34 = vld [vmem:[%s13352_s11 + $0x7f0] sm:$0xff]  }
 0x949   :  { %9346 = vmatprep.subr.bf16.mxu0 %v10355_v2 }
 0x94a   :  { %9325 = vmatpush3.bf16.msra.mxu1 %v10354_v14 }
 0x94b   :  { %9326 = vmatprep.subr.bf16.mxu1 %v10357_v27 }
 0x94c   :  { %9347 = vmatpush3.bf16.msra.mxu0 %v10356_v24  ;;  %v10403_v24 = vld [vmem:[%s13352_s11 + $0x730] sm:$0xff]  }
 0x94d   :  { %9348 = vmatprep.subr.bf16.mxu0 %v10359_v59  ;;  %v5127_v59 = vcombine.high %v4339_v10, %v4339_v10 }
 0x94e   :  { %9327 = vmatpush3.bf16.msra.mxu1 %v10358_v50 }
 0x94f   :  { %9328 = vmatprep.subr.bf16.mxu1 %v10361_v51 }
 0x950   :  { %9349 = vmatpush3.bf16.msra.mxu0 %v10360_v37  ;;  %v10406_v37 = vld [vmem:[%s13352_s11 + $0x778] sm:$0xff]  }
 0x951   :  { %9350 = vmatprep.subr.bf16.mxu0 %v10363_v3 }
 0x952   :  { %9329 = vmatpush3.bf16.msra.mxu1 %v10362_v16 }
 0x953   :  { %9330 = vmatprep.subr.bf16.mxu1 %v10365_v61 }
 0x954   :  { %9351 = vmatpush3.bf16.msra.mxu0 %v10364_v1  ;;  %v10405_v1 = vld [vmem:[%s13352_s11 + $0x7b0] sm:$0xff]  }
 0x955   :  { %9352 = vmatprep.subr.bf16.mxu0 %v10367_v29  ;;  %v13067_v29 = vrot.slane %v4339_v10, %v12276_v9  ;;  %v10436_v10 = vld [vmem:[%s13352_s11 + $0x830] sm:$0xff]  }
 0x956   :  { %9331 = vmatpush3.bf16.msra.mxu1 %v10366_v62 }
 0x957   :  { %9332 = vmatprep.subr.bf16.mxu1 %v10369_v43  ;;  %v10408_v43 = vld [vmem:[%s13352_s11 + $0x7f8] sm:$0xff]  }
 0x958   :  { %9353 = vmatpush3.bf16.msra.mxu0 %v10368_v31  ;;  %v10407_v31 = vld [vmem:[%s13352_s11 + $0x738] sm:$0xff]  }
 0x959   :  { %9354 = vmatprep.subr.bf16.mxu0 %v10371_v63  ;;  %v13078_v63 = vrot.slane %v5127_v59, %v12276_v9 }
 0x95a   :  { %9333 = vmatpush3.bf16.msra.mxu1 %v10370_v44  ;;  %v10410_v44 = vld [vmem:[%s13352_s11 + $0x840] sm:$0xff]  }
 0x95b   :  { %9334 = vmatprep.subr.bf16.mxu1 %v10373_v12  ;;  %v5142_v12 = vcombine.high %v13067_v29, %v13067_v29 }
 0x95c   :  { %9355 = vmatpush3.bf16.msra.mxu0 %v10372_v55  ;;  %v10412_v55 = vld [vmem:[%s13352_s11 + $0x8c0] sm:$0xff]  }
 0x95d   :  { %9356 = vmatprep.subr.bf16.mxu0 %v10375_v38  ;;  %v10411_v38 = vld [vmem:[%s13352_s11 + $0x800] sm:$0xff]   ;;  %v5234_v0 = vpack.c.bf16 %v5142_v12, %v5142_v12  ;;  %v5235_v12 = vpack.c.bf16 %v13078_v63, %v13078_v63 }
 0x95e   :  { %9335 = vmatpush3.bf16.msra.mxu1 %v10374_v40  ;;  %v5143_v40 = vcombine.high %v13078_v63, %v13078_v63  ;;  %v10451_v63 = vld [vmem:[%s13352_s11 + $0x988] sm:$0xff]  }
 0x95f   :  { %9364 = vmatprep.subr.bf16.mxu1 %v10377_v6  ;;  %v5229_v6 = vpack.c.bf16 %v12957_v35, %v12957_v35  ;;  %v10417_v35 = vld [vmem:[%s13352_s11 + $0x8c8] sm:$0xff]  }
 0x960   :  { %9357 = vmatpush3.bf16.msra.mxu0 %v10376_v11  ;;  %v10415_v11 = vld [vmem:[%s13352_s11 + $0x848] sm:$0xff]   ;;  %v5236_v5 = vpack.c.bf16 %v5143_v40, %v5143_v40  ;;  %v10452_v40 = vld [vmem:[%s13352_s11 + $0x950] sm:$0xff]  }
 0x961   :  { %7675 = vmatmul.mubr.bf16.vlgmr.msra.gmra.mrb[60].mxu1 %v5225_v23  ;;  %9386 = vmatprep.subr.bf16.mxu0 %v10379_v41  ;;  %v10413_v41 = vld [vmem:[%s13352_s11 + $0x880] sm:$0xff]   ;;  %v10416_v23 = vld [vmem:[%s13352_s11 + $0x808] sm:$0xff]  }
 0x962   :  { %9365 = vmatpush3.bf16.msra.mxu1 %v10378_v7  ;;  %7754 = vmatprep.mubr.bf16.mxu1 %v5230_v4  ;;  %v5231_v7 = vpack.c.bf16 %v12966_v22, %v12966_v22  ;;  %v10418_v22 = vld [vmem:[%s13352_s11 + $0x888] sm:$0xff]   ;;  %v10421_v4 = vld [vmem:[%s13352_s11 + $0x8d0] sm:$0xff]  }
 0x963   :  { %7715 = vmatmul.mubr.bf16.vlgmr.msra.gmra.mrb[56].mxu0 %v5227_v26  ;;  %9366 = vmatprep.subr.bf16.mxu1 %v10382_v56  ;;  %v10419_v56 = vld [vmem:[%s13352_s11 + $0x850] sm:$0xff]   ;;  %v10423_v26 = vld [vmem:[%s13352_s11 + $0x858] sm:$0xff]  }
 0x964   :  { %9387 = vmatpush3.bf16.msra.mxu0 %v10380_v39  ;;  %7794 = vmatprep.mubr.bf16.mxu0 %v5232_v52  ;;  %v10420_v39 = vld [vmem:[%s13352_s11 + $0x810] sm:$0xff]   ;;  %v10425_v52 = vld [vmem:[%s13352_s11 + $0x8d8] sm:$0xff]  }
 0x965   :  { %9388 = vmatprep.subr.bf16.mxu0 %v10384_v42  ;;  %v10422_v42 = vld [vmem:[%s13352_s11 + $0x890] sm:$0xff]  }
 0x966   :  { %9367 = vmatpush3.bf16.msra.mxu1 %v10383_v57  ;;  %v10424_v57 = vld [vmem:[%s13352_s11 + $0x818] sm:$0xff]  }
 0x967   :  { %9368 = vmatprep.subr.bf16.mxu1 %v10386_v49  ;;  %v10427_v49 = vld [vmem:[%s13352_s11 + $0x860] sm:$0xff]  }
 0x968   :  { %9389 = vmatpush3.bf16.msra.mxu0 %v10385_v33  ;;  %v10426_v33 = vld [vmem:[%s13352_s11 + $0x898] sm:$0xff]  }
 0x969   :  { %9390 = vmatprep.subr.bf16.mxu0 %v10388_v32  ;;  %v10429_v32 = vld [vmem:[%s13352_s11 + $0x8e0] sm:$0xff]  }
 0x96a   :  { %9369 = vmatpush3.bf16.msra.mxu1 %v10387_v36  ;;  %v10428_v36 = vld [vmem:[%s13352_s11 + $0x820] sm:$0xff]  }
 0x96b   :  { %9370 = vmatprep.subr.bf16.mxu1 %v10390_v54  ;;  %v10431_v54 = vld [vmem:[%s13352_s11 + $0x868] sm:$0xff]  }
 0x96c   :  { %9391 = vmatpush3.bf16.msra.mxu0 %v10389_v30  ;;  %v10430_v30 = vld [vmem:[%s13352_s11 + $0x8a0] sm:$0xff]  }
 0x96d   :  { %9392 = vmatprep.subr.bf16.mxu0 %v10392_v17  ;;  %v10433_v17 = vld [vmem:[%s13352_s11 + $0x8e8] sm:$0xff]  }
 0x96e   :  { %9371 = vmatpush3.bf16.msra.mxu1 %v10391_v28  ;;  %v10432_v28 = vld [vmem:[%s13352_s11 + $0x828] sm:$0xff]  }
 0x96f   :  { %9372 = vmatprep.subr.bf16.mxu1 %v10394_v18  ;;  %v10435_v18 = vld [vmem:[%s13352_s11 + $0x870] sm:$0xff]  }
 0x970   :  { %9393 = vmatpush3.bf16.msra.mxu0 %v10393_v47  ;;  %v4340_v47 = vld [vmem:[#allocation2 + $0x48] sm:$0xff] }
 0x971   :  { %9394 = vmatprep.subr.bf16.mxu0 %v10396_v48 }
 0x972   :  { %9373 = vmatpush3.bf16.msra.mxu1 %v10395_v45  ;;  %v10434_v45 = vld [vmem:[%s13352_s11 + $0x8a8] sm:$0xff]  }
 0x973   :  { %9374 = vmatprep.subr.bf16.mxu1 %v10398_v25 }
 0x974   :  { %9395 = vmatpush3.bf16.msra.mxu0 %v10397_v15  ;;  %v9072_v53 = vpop.f32.mrb[36].mxu1  ;;  %v10437_v15 = vld [vmem:[%s13352_s11 + $0x8f0] sm:$0xff]  }
 0x975   :  { %v9073_v58 = vpop.f32.mrb[37].mxu1  ;;  %9396 = vmatprep.subr.bf16.mxu0 %v10400_v21 }
 0x976   :  { %v9074_v2 = vadd.f32 %v9073_v58, %v9072_v53  ;;  %9375 = vmatpush3.bf16.msra.mxu1 %v10399_v60  ;;  %v9075_v14 = vpop.f32.mrb[38].mxu1  ;;  %v9094_v27 = vpop.f32.mrb[32].mxu0  ;;  %v5144_v53 = vcombine.high %v4340_v47, %v4340_v47  ;;  %v10439_v58 = vld [vmem:[%s13352_s11 + $0x878] sm:$0xff]  }
 0x977   :  { %v9076_v50 = vpop.f32.mrb[39].mxu1  ;;  %v9095_v51 = vpop.f32.mrb[33].mxu0  ;;  %9376 = vmatprep.subr.bf16.mxu1 %v10402_v20 }
 0x978   :  { %v7197_v3 = vadd.f32 %v9074_v2, %v5241_v19  ;;  %v9096_v16 = vadd.f32 %v9095_v51, %v9094_v27  ;;  %9397 = vmatpush3.bf16.msra.mxu0 %v10401_v8  ;;  %v9097_v61 = vpop.f32.mrb[34].mxu0  ;;  %v10438_v27 = vld [vmem:[%s13352_s11 + $0x8b0] sm:$0xff]   ;;  %v10441_v50 = vld [vmem:[%s13352_s11 + $0x8f8] sm:$0xff]  }
 0x979   :  { %v9098_v62 = vpop.f32.mrb[35].mxu0  ;;  %9398 = vmatprep.subr.bf16.mxu0 %v10404_v34  ;;  %v10442_v61 = vld [vmem:[%s13352_s11 + $0x8b8] sm:$0xff]  }
 0x97a   :  { %v13072_v46 = vadd.f32 %v9096_v16, %v7197_v3  ;;  %9377 = vmatpush3.bf16.msra.mxu1 %v10403_v24  ;;  %v13180_v24 = vrot.slane %v4340_v47, %v12276_v9  ;;  %v13191_v3 = vrot.slane %v5144_v53, %v12276_v9  ;;  %v10443_v16 = vld [vmem:[%s13352_s11 + $0x940] sm:$0xff]   ;;  %v10472_v47 = vld [vmem:[%s13352_s11 + $0x978] sm:$0xff]  }
 0x97b   :  { %9378 = vmatprep.subr.bf16.mxu1 %v10406_v37  ;;  %v10440_v37 = vld [vmem:[%s13352_s11 + $0x838] sm:$0xff]   ;;  %v10445_v62 = vld [vmem:[%s13352_s11 + $0x9c0] sm:$0xff]  }
 0x97c   :  { %9399 = vmatpush3.bf16.msra.mxu0 %v10405_v1  ;;  %v5159_v1 = vcombine.high %v13180_v24, %v13180_v24  ;;  %v10444_v9 = vld [vmem:[%s13352_s11 + $0x900] sm:$0xff]   ;;  %v10475_v53 = vld [vmem:[%s13352_s11 + $0x9b8] sm:$0xff]  }
 0x97d   :  { %9400 = vmatprep.subr.bf16.mxu0 %v10408_v43  ;;  %v5160_v43 = vcombine.high %v13191_v3, %v13191_v3 }
 0x97e   :  { %9379 = vmatpush3.bf16.msra.mxu1 %v10407_v31  ;;  %v10448_v31 = vld [vmem:[%s13352_s11 + $0x948] sm:$0xff]  }
 0x97f   :  { %9408 = vmatprep.subr.bf16.mxu1 %v10410_v44  ;;  %v5238_v44 = vpack.c.bf16 %v5159_v1, %v5159_v1 }
 0x980   :  { %9401 = vmatpush3.bf16.msra.mxu0 %v10409_v13  ;;  %v10446_v13 = vld [vmem:[%s13352_s11 + $0x980] sm:$0xff]  }
 0x981   :  { %7755 = vmatmul.mubr.bf16.vlgmr.msra.gmra.mrb[64].mxu1 %v5229_v6  ;;  %9430 = vmatprep.subr.bf16.mxu0 %v10412_v55  ;;  %v5240_v55 = vpack.c.bf16 %v5160_v43, %v5160_v43  ;;  %v10454_v6 = vld [vmem:[%s13352_s11 + $0x9d0] sm:$0xff]  }
 0x982   :  { %9409 = vmatpush3.bf16.msra.mxu1 %v10411_v38  ;;  %7834 = vmatprep.mubr.bf16.mxu1 %v5234_v0  ;;  %v10449_v38 = vld [vmem:[%s13352_s11 + $0x908] sm:$0xff]   ;;  %v10456_v0 = vld [vmem:[%s13352_s11 + $0x958] sm:$0xff]  }
 0x983   :  { %7795 = vmatmul.mubr.bf16.vlgmr.msra.gmra.mrb[60].mxu0 %v5231_v7  ;;  %9410 = vmatprep.subr.bf16.mxu1 %v10415_v11  ;;  %v10453_v11 = vld [vmem:[%s13352_s11 + $0x910] sm:$0xff]   ;;  %v10458_v7 = vld [vmem:[%s13352_s11 + $0x9d8] sm:$0xff]  }
 0x984   :  { %9431 = vmatpush3.bf16.msra.mxu0 %v10413_v41  ;;  %7874 = vmatprep.mubr.bf16.mxu0 %v5236_v5  ;;  %v10455_v41 = vld [vmem:[%s13352_s11 + $0x990] sm:$0xff]   ;;  %v10460_v5 = vld [vmem:[%s13352_s11 + $0x960] sm:$0xff]  }
 0x985   :  { %9432 = vmatprep.subr.bf16.mxu0 %v10417_v35  ;;  %v10457_v35 = vld [vmem:[%s13352_s11 + $0x918] sm:$0xff]  }
 0x986   :  { %9411 = vmatpush3.bf16.msra.mxu1 %v10416_v23  ;;  %v10459_v23 = vld [vmem:[%s13352_s11 + $0x998] sm:$0xff]  }
 0x987   :  { %9412 = vmatprep.subr.bf16.mxu1 %v10419_v56  ;;  %v10462_v56 = vld [vmem:[%s13352_s11 + $0x9e0] sm:$0xff]  }
 0x988   :  { %9433 = vmatpush3.bf16.msra.mxu0 %v10418_v22  ;;  %v10461_v22 = vld [vmem:[%s13352_s11 + $0x920] sm:$0xff]  }
 0x989   :  { %9434 = vmatprep.subr.bf16.mxu0 %v10421_v4  ;;  %v10464_v4 = vld [vmem:[%s13352_s11 + $0x968] sm:$0xff]  }
 0x98a   :  { %9413 = vmatpush3.bf16.msra.mxu1 %v10420_v39  ;;  %v10463_v39 = vld [vmem:[%s13352_s11 + $0x9a0] sm:$0xff]  }
 0x98b   :  { %9414 = vmatprep.subr.bf16.mxu1 %v10423_v26  ;;  %v10466_v26 = vld [vmem:[%s13352_s11 + $0x9e8] sm:$0xff]  }
 0x98c   :  { %9435 = vmatpush3.bf16.msra.mxu0 %v10422_v42  ;;  %v10465_v42 = vld [vmem:[%s13352_s11 + $0x928] sm:$0xff]  }
 0x98d   :  { %9436 = vmatprep.subr.bf16.mxu0 %v10425_v52  ;;  %v10468_v52 = vld [vmem:[%s13352_s11 + $0x970] sm:$0xff]  }
 0x98e   :  { %9415 = vmatpush3.bf16.msra.mxu1 %v10424_v57 }
 0x98f   :  { %9416 = vmatprep.subr.bf16.mxu1 %v10427_v49  ;;  %v10467_v49 = vld [vmem:[%s13352_s11 + $0x9a8] sm:$0xff]  }
 0x990   :  { %9437 = vmatpush3.bf16.msra.mxu0 %v10426_v33 }
 0x991   :  { %9438 = vmatprep.subr.bf16.mxu0 %v10429_v32  ;;  %v10470_v32 = vld [vmem:[%s13352_s11 + $0x9f0] sm:$0xff]  }
 0x992   :  { %9417 = vmatpush3.bf16.msra.mxu1 %v10428_v36 }
 0x993   :  { %9418 = vmatprep.subr.bf16.mxu1 %v10431_v54 }
 0x994   :  { %v9116_v48 = vpop.f32.mrb[40].mxu1  ;;  %9439 = vmatpush3.bf16.msra.mxu0 %v10430_v30 }
 0x995   :  { %v9117_v25 = vpop.f32.mrb[41].mxu1  ;;  %9440 = vmatprep.subr.bf16.mxu0 %v10433_v17  ;;  %v10469_v17 = vld [vmem:[%s13352_s11 + $0x930] sm:$0xff]  }
 0x996   :  { %v9118_v21 = vadd.f32 %v9117_v25, %v9116_v48  ;;  %v9119_v60 = vpop.f32.mrb[42].mxu1  ;;  %v9138_v20 = vpop.f32.mrb[36].mxu0  ;;  %9419 = vmatpush3.bf16.msra.mxu1 %v10432_v28 }
 0x997   :  { %v9120_v8 = vpop.f32.mrb[43].mxu1  ;;  %v9139_v19 = vpop.f32.mrb[37].mxu0  ;;  %9420 = vmatprep.subr.bf16.mxu1 %v10435_v18  ;;  %v10474_v60 = vld [vmem:[%s13352_s11 + $0x9f8] sm:$0xff]  }
 0x998   :  { %v7277_v34 = vadd.f32 %v9118_v21, %v13072_v46  ;;  %v9140_v2 = vadd.f32 %v9139_v19, %v9138_v20  ;;  %v9141_v14 = vpop.f32.mrb[38].mxu0  ;;  %9441 = vmatpush3.bf16.msra.mxu0 %v10434_v45  ;;  %v5233_v46 = vpack.c.bf16 %v13067_v29, %v13067_v29  ;;  %v10450_v29 = vld [vmem:[%s13352_s11 + $0x9c8] sm:$0xff]   ;;  %v5237_v8 = vpack.c.bf16 %v13180_v24, %v13180_v24 }
 0x999   :  { %v9142_v59 = vpop.f32.mrb[39].mxu0  ;;  %9442 = vmatprep.subr.bf16.mxu0 %v10437_v15  ;;  %v10471_v15 = vld [vmem:[%s13352_s11 + $0x9b0] sm:$0xff]   ;;  %v5239_v19 = vpack.c.bf16 %v13191_v3, %v13191_v3 }
 0x99a   :  { %v13185_v51 = vadd.f32 %v9140_v2, %v7277_v34  ;;  %9421 = vmatpush3.bf16.msra.mxu1 %v10436_v10  ;;  %v10473_v10 = vld [vmem:[%s13352_s11 + $0x938] sm:$0xff]  }
 0x99b   :  { %9422 = vmatprep.subr.bf16.mxu1 %v10439_v58 }
 0x99c   :  { %9443 = vmatpush3.bf16.msra.mxu0 %v10438_v27 }
 0x99d   :  { %9444 = vmatprep.subr.bf16.mxu0 %v10441_v50 }
 0x99e   :  { %9423 = vmatpush3.bf16.msra.mxu1 %v10440_v37 }
 0x99f   :  { %9452 = vmatprep.subr.bf16.mxu1 %v10443_v16 }
 0x9a0   :  { %9445 = vmatpush3.bf16.msra.mxu0 %v10442_v61 }
 0x9a1   :  { %7835 = vmatmul.mubr.bf16.vlgmr.msra.gmra.mrb[68].mxu1 %v5233_v46  ;;  %9474 = vmatprep.subr.bf16.mxu0 %v10445_v62 }
 0x9a2   :  { %9453 = vmatpush3.bf16.msra.mxu1 %v10444_v9  ;;  %7914 = vmatprep.mubr.bf16.mxu1 %v5238_v44 }
 0x9a3   :  { %7875 = vmatmul.mubr.bf16.vlgmr.msra.gmra.mrb[64].mxu0 %v5235_v12  ;;  %9454 = vmatprep.subr.bf16.mxu1 %v10448_v31 }
 0x9a4   :  { %9475 = vmatpush3.bf16.msra.mxu0 %v10446_v13  ;;  %7954 = vmatprep.mubr.bf16.mxu0 %v5240_v55 }
 0x9a5   :  { %9476 = vmatprep.subr.bf16.mxu0 %v10450_v29 }
 0x9a6   :  { %9455 = vmatpush3.bf16.msra.mxu1 %v10449_v38  ;;  %v10476_v38 = vld [vmem:[%s13353_s12] sm:$0xff]  }
 0x9a7   :  { %9456 = vmatprep.subr.bf16.mxu1 %v10452_v40  ;;  %v10639_v40 = vmov 0.0  }
 0x9a8   :  { %9477 = vmatpush3.bf16.msra.mxu0 %v10451_v63  ;;  %v10477_v63 = vld [vmem:[%s13353_s12 + $0x8] sm:$0xff]  }
 0x9a9   :  { %9478 = vmatprep.subr.bf16.mxu0 %v10454_v6  ;;  %v10478_v6 = vld [vmem:[%s13353_s12 + $0x10] sm:$0xff]  }
 0x9aa   :  { %9457 = vmatpush3.bf16.msra.mxu1 %v10453_v11  ;;  %v10479_v11 = vld [vmem:[%s13353_s12 + $0x18] sm:$0xff]  }
 0x9ab   :  { %9458 = vmatprep.subr.bf16.mxu1 %v10456_v0  ;;  %v10480_v0 = vld [vmem:[%s13353_s12 + $0x20] sm:$0xff]  }
 0x9ac   :  { %9479 = vmatpush3.bf16.msra.mxu0 %v10455_v41 }
 0x9ad   :  { %9480 = vmatprep.subr.bf16.mxu0 %v10458_v7 }
 0x9ae   :  { %9459 = vmatpush3.bf16.msra.mxu1 %v10457_v35 }
 0x9af   :  { %9460 = vmatprep.subr.bf16.mxu1 %v10460_v5 }
 0x9b0   :  { %9481 = vmatpush3.bf16.msra.mxu0 %v10459_v23 }
 0x9b1   :  { %9482 = vmatprep.subr.bf16.mxu0 %v10462_v56 }
 0x9b2   :  { %9461 = vmatpush3.bf16.msra.mxu1 %v10461_v22 }
 0x9b3   :  { %9462 = vmatprep.subr.bf16.mxu1 %v10464_v4 }
 0x9b4   :  { %v9160_v57 = vpop.f32.mrb[44].mxu1  ;;  %9483 = vmatpush3.bf16.msra.mxu0 %v10463_v39 }
 0x9b5   :  { %v9161_v33 = vpop.f32.mrb[45].mxu1  ;;  %9484 = vmatprep.subr.bf16.mxu0 %v10466_v26 }
 0x9b6   :  { %v9162_v36 = vadd.f32 %v9161_v33, %v9160_v57  ;;  %v9163_v54 = vpop.f32.mrb[46].mxu1  ;;  %v9182_v30 = vpop.f32.mrb[40].mxu0  ;;  %9463 = vmatpush3.bf16.msra.mxu1 %v10465_v42  ;;  %v10481_v42 = vld [vmem:[%s13353_s12 + $0x28] sm:$0xff]   ;;  %v10483_v33 = vld [vmem:[%s13353_s12 + $0x38] sm:$0xff]  }
 0x9b7   :  { %v9164_v28 = vpop.f32.mrb[47].mxu1  ;;  %v9183_v18 = vpop.f32.mrb[41].mxu0  ;;  %9464 = vmatprep.subr.bf16.mxu1 %v10468_v52 }
 0x9b8   :  { %v7357_v48 = vadd.f32 %v9162_v36, %v13185_v51  ;;  %v9184_v45 = vadd.f32 %v9183_v18, %v9182_v30  ;;  %v9185_v25 = vpop.f32.mrb[42].mxu0  ;;  %9485 = vmatpush3.bf16.msra.mxu0 %v10467_v49  ;;  %v10482_v49 = vld [vmem:[%s13353_s12 + $0x30] sm:$0xff]   ;;  %s10641_s12 = smov [#allocation12]  }
 0x9b9   :  { %v9186_v21 = vpop.f32.mrb[43].mxu0  ;;  %9486 = vmatprep.subr.bf16.mxu0 %v10470_v32  ;;  %s8077_s5 = sshll.u32 %s10641_s12, 4  ;;  %s8078_s5 = int_to_ptr.vmem [resolvable:$true] %s8077_s5 }
 0x9ba   :  { %v7397_v20 = vadd.f32 %v9184_v45, %v7357_v48  ;;  %9465 = vmatpush3.bf16.msra.mxu1 %v10469_v17  ;;  %s10594_s23 = scalar_lea.vmem %s8078_s5, 32  ;;  %p10599_p13 = scmp.lt.s32.totalorder %s8078_s5, %s8078_s5 }
 0x9bb   :  { %9466 = vmatprep.subr.bf16.mxu1 %v10472_v47  ;;  %p10595_p12 = scmp.ne.s32.totalorder %s8078_s5, %s10594_s23  ;;  %p10600_p0 = scmp.lt.s32.totalorder %s10594_s23, %s10594_s23 }
 0x9bc   :  { %9487 = vmatpush3.bf16.msra.mxu0 %v10471_v15 }
 0x9bd   :  { %9488 = vmatprep.subr.bf16.mxu0 %v10474_v60  ;;  %p10601_p1 = por %p10600_p0, %p10599_p13 }
 0x9be   :  { %9467 = vmatpush3.bf16.msra.mxu1 %v10473_v10 }
 0x9bf   :  { %9705 = vmatprep.subr.bf16.mxu1 %v10639_v40  ;;  %p10602_p2 = pnand %p10601_p1, %p10595_p12 }
 0x9c0   :  { %9489 = vmatpush3.bf16.msra.mxu0 %v10475_v53 }
 0x9c1   :  { %7915 = vmatmul.mubr.bf16.vlgmr.msra.gmra.mrb[72].mxu1 %v5237_v8 }
 0x9c2   :  { %9706 = vmatpush3.bf16.msra.mxu1 %v10476_v38  ;;  %9721 = vmatprep.mubr.msk.bf16.mxu1 %vm10640_vm0, %v10639_v40 }
 0x9c3   :  { %7955 = vmatmul.mubr.bf16.vlgmr.msra.gmra.mrb[68].mxu0 %v5239_v19  ;;  %9707 = vmatprep.subr.bf16.mxu1 %v10639_v40 }
 0x9c6   :  { %9708 = vmatpush3.bf16.msra.mxu1 %v10477_v63 }
 0x9c7   :  { %9709 = vmatprep.subr.bf16.mxu1 %v10639_v40 }
 0x9ca   :  { %9710 = vmatpush3.bf16.msra.mxu1 %v10478_v6 }
 0x9cb   :  { %9711 = vmatprep.subr.bf16.mxu1 %v10639_v40 }
 0x9ce   :  { %9712 = vmatpush3.bf16.msra.mxu1 %v10479_v11 }
 0x9cf   :  { %9713 = vmatprep.subr.bf16.mxu1 %v10639_v40 }
 0x9d2   :  { %9714 = vmatpush3.bf16.msra.mxu1 %v10480_v0 }
 0x9d3   :  { %9715 = vmatprep.subr.bf16.mxu1 %v10639_v40 }
 0x9d4   :  { %v9204_v58 = vpop.f32.mrb[48].mxu1 }
 0x9d5   :  { %v9205_v34 = vpop.f32.mrb[49].mxu1 }
 0x9d6   :  { %v9206_v2 = vadd.f32 %v9205_v34, %v9204_v58  ;;  %v9207_v14 = vpop.f32.mrb[50].mxu1  ;;  %v9226_v27 = vpop.f32.mrb[44].mxu0  ;;  %9716 = vmatpush3.bf16.msra.mxu1 %v10481_v42 }
 0x9d7   :  { %v9208_v59 = vpop.f32.mrb[51].mxu1  ;;  %v9227_v50 = vpop.f32.mrb[45].mxu0  ;;  %9717 = vmatprep.subr.bf16.mxu1 %v10639_v40 }
 0x9d8   :  { %v7437_v51 = vadd.f32 %v9206_v2, %v7397_v20  ;;  %v9228_v37 = vadd.f32 %v9227_v50, %v9226_v27  ;;  %v9229_v16 = vpop.f32.mrb[46].mxu0 }
 0x9d9   :  { %v9230_v61 = vpop.f32.mrb[47].mxu0 }
 0x9da   :  { %v7477_v1 = vadd.f32 %v9228_v37, %v7437_v51  ;;  %9718 = vmatpush3.bf16.msra.mxu1 %v10482_v49 }
 0x9db   :  { %9719 = vmatprep.subr.bf16.mxu1 %v10639_v40 }
 0x9de   :  { %9720 = vmatpush3.bf16.msra.mxu1 %v10483_v33 }
 0x9f4   :  { %v9248_v62 = vpop.f32.mrb[52].mxu1 }
 0x9f5   :  { %v9249_v24 = vpop.f32.mrb[53].mxu1 }
 0x9f6   :  { %v9250_v9 = vadd.f32 %v9249_v24, %v9248_v62  ;;  %v9251_v43 = vpop.f32.mrb[54].mxu1  ;;  %v9270_v46 = vpop.f32.mrb[48].mxu0 }
 0x9f7   :  { %v9252_v31 = vpop.f32.mrb[55].mxu1  ;;  %v9271_v3 = vpop.f32.mrb[49].mxu0 }
 0x9f8   :  { %v7517_v44 = vadd.f32 %v9250_v9, %v7477_v1  ;;  %v9272_v13 = vadd.f32 %v9271_v3, %v9270_v46  ;;  %v9273_v12 = vpop.f32.mrb[50].mxu0 }
 0x9f9   :  { %v9274_v29 = vpop.f32.mrb[51].mxu0 }
 0x9fa   :  { %v7557_v55 = vadd.f32 %v9272_v13, %v7517_v44 }
 0xa14   :  { %v9292_v41 = vpop.f32.mrb[56].mxu1 }
 0xa15   :  { %v9293_v7 = vpop.f32.mrb[57].mxu1 }
 0xa16   :  { %v9294_v35 = vadd.f32 %v9293_v7, %v9292_v41  ;;  %v9295_v5 = vpop.f32.mrb[58].mxu1  ;;  %v9314_v23 = vpop.f32.mrb[52].mxu0  ;;  %v7980_v7 = vld [vmem:[#allocation11 + $0x41] ss:$0 sm:$0xff] }
 0xa17   :  { %v9296_v56 = vpop.f32.mrb[59].mxu1  ;;  %v9315_v22 = vpop.f32.mrb[53].mxu0 }
 0xa18   :  { %v7597_v4 = vadd.f32 %v9294_v35, %v7557_v55  ;;  %v9316_v39 = vadd.f32 %v9315_v22, %v9314_v23  ;;  %v9317_v26 = vpop.f32.mrb[54].mxu0 }
 0xa19   :  { %v9318_v52 = vpop.f32.mrb[55].mxu0 }
 0xa1a   :  { %v7637_v57 = vadd.f32 %v9316_v39, %v7597_v4 }
 0xa34   :  { %v9336_v32 = vpop.f32.mrb[60].mxu1 }
 0xa35   :  { %v9337_v36 = vpop.f32.mrb[61].mxu1 }
 0xa36   :  { %v9338_v54 = vadd.f32 %v9337_v36, %v9336_v32  ;;  %v9339_v30 = vpop.f32.mrb[62].mxu1  ;;  %v9358_v17 = vpop.f32.mrb[56].mxu0 }
 0xa37   :  { %v9340_v28 = vpop.f32.mrb[63].mxu1  ;;  %v9359_v18 = vpop.f32.mrb[57].mxu0 }
 0xa38   :  { %v7677_v47 = vadd.f32 %v9338_v54, %v7637_v57  ;;  %v9360_v48 = vadd.f32 %v9359_v18, %v9358_v17  ;;  %v9361_v45 = vpop.f32.mrb[58].mxu0 }
 0xa39   :  { %v9362_v25 = vpop.f32.mrb[59].mxu0 }
 0xa3a   :  { %v7717_v15 = vadd.f32 %v9360_v48, %v7677_v47 }
 0xa54   :  { %v9380_v21 = vpop.f32.mrb[64].mxu1 }
 0xa55   :  { %v9381_v60 = vpop.f32.mrb[65].mxu1 }
 0xa56   :  { %v9382_v20 = vadd.f32 %v9381_v60, %v9380_v21  ;;  %v9383_v10 = vpop.f32.mrb[66].mxu1  ;;  %v9402_v53 = vpop.f32.mrb[60].mxu0 }
 0xa57   :  { %v9384_v8 = vpop.f32.mrb[67].mxu1  ;;  %v9403_v19 = vpop.f32.mrb[61].mxu0 }
 0xa58   :  { %v7757_v58 = vadd.f32 %v9382_v20, %v7717_v15  ;;  %v9404_v34 = vadd.f32 %v9403_v19, %v9402_v53  ;;  %v9405_v2 = vpop.f32.mrb[62].mxu0 }
 0xa59   :  { %v9406_v14 = vpop.f32.mrb[63].mxu0 }
 0xa5a   :  { %v7797_v27 = vadd.f32 %v9404_v34, %v7757_v58 }
 0xa74   :  { %v9424_v59 = vpop.f32.mrb[68].mxu1 }
 0xa75   :  { %v9425_v50 = vpop.f32.mrb[69].mxu1 }
 0xa76   :  { %v9426_v51 = vadd.f32 %v9425_v50, %v9424_v59  ;;  %v9427_v37 = vpop.f32.mrb[70].mxu1  ;;  %v9446_v16 = vpop.f32.mrb[64].mxu0 }
 0xa77   :  { %v9428_v61 = vpop.f32.mrb[71].mxu1  ;;  %v9447_v1 = vpop.f32.mrb[65].mxu0 }
 0xa78   :  { %v7837_v62 = vadd.f32 %v9426_v51, %v7797_v27  ;;  %v9448_v24 = vadd.f32 %v9447_v1, %v9446_v16  ;;  %v9449_v9 = vpop.f32.mrb[66].mxu0 }
 0xa79   :  { %v9450_v43 = vpop.f32.mrb[67].mxu0 }
 0xa7a   :  { %v7877_v46 = vadd.f32 %v9448_v24, %v7837_v62 }
 0xa94   :  { %v9468_v31 = vpop.f32.mrb[72].mxu1 }
 0xa95   :  { %v9469_v3 = vpop.f32.mrb[73].mxu1 }
 0xa96   :  { %v9470_v44 = vadd.f32 %v9469_v3, %v9468_v31  ;;  %v9471_v13 = vpop.f32.mrb[74].mxu1  ;;  %v9490_v12 = vpop.f32.mrb[68].mxu0 }
 0xa97   :  { %v9472_v29 = vpop.f32.mrb[75].mxu1  ;;  %v9491_v55 = vpop.f32.mrb[69].mxu0 }
 0xa98   :  { %v7917_v38 = vadd.f32 %v9470_v44, %v7877_v46  ;;  %v9492_v40 = vadd.f32 %v9491_v55, %v9490_v12  ;;  %v9493_v63 = vpop.f32.mrb[70].mxu0 }
 0xa99   :  { %v9494_v6 = vpop.f32.mrb[71].mxu0 }
 0xa9a   :  { %v7957_v11 = vadd.f32 %v9492_v40, %v7917_v38 }
 0xa9c   :  { %v7962_v0 = vmax.f32 %v7957_v11, 0.0 }
 0xa9e   :  { %v7979_v41 = vpack.c.bf16 %v7962_v0, %v7962_v0 }
 0xaa0   :  { %9722 = vmatmul.mubr.bf16.vlgmr.msra.gmra.mrb[76].mxu1 %v7979_v41 }
 0xb73   :  { %v8063_v35 = vpop.f32.mrb[76].mxu1 }
 0xb74   :  { %v8064_v5 = vadd.f32 %v8063_v35, %v7980_v7  ;;  %v9723_v23 = vpop.f32.mrb[77].mxu1 }
 0xb75   :  { %v8066_v56 = vpop.f32.mrb[78].mxu1 }
 0xb76   :  { %v9724_v22 = vpop.f32.mrb[79].mxu1  ;;  %8070 = vst.msk [vmem:[#allocation12] sm:$0x3] %vm8069_vm1, %v8064_v5 }
 0xb77   :  { %10605 = shalt.err (!%p10602_p2)
}
 0xb78   :  { %s10606_s17 = scalar_lea.hbm %s13355_s14, 32 }
 0xb79   :  { %p10607_p3 = scmp.ne.s32.totalorder %s13355_s14, %s10606_s17  ;;  %p10610_p4 = scmp.lt.u32.totalorder %s10606_s17, %s13355_s14 }
 0xb7b   :  { %p10612_p5 = pnand %p10610_p4, %p10607_p3 }
 0xb7d   :  { %10615 = shalt.err (!%p10612_p5)
}
 0xb7e   :  { %8080 = dma.vmem_to_hbm [thread:$0]  %s8078_s5, 32, %s13355_s14, [#allocation5]  }
 0xb7f   :  { %10622 = dma.done.wait [#allocation5], 32  }
 0xb80   :  { %10623 = vsyncadd [#allocation5], 4294967264 }
 0xb81   :  { %8084 = vsyncpa [#allocation4], 1 }
 0xb82   :  { %8085 = vsyncpa [#allocation7], 1 }
 0xb83   :  { %8086 = vsyncpa [#allocation10], 1 }
 0xb84   :  { %8087 = vsyncpa [#allocation5], 1 }

</bundles_post_ra>
